<compile_context>
chip_gen: v5e
topology: v5e:2x2
jax: 0.10.0
libtpu: 0.0.40
codegen_flags: <defaults>
</compile_context>

<pallas_src>
import functools

import jax
import jax.numpy as jnp
from jax import lax
from jax.experimental import pallas as pl
from jax.experimental.pallas import tpu as pltpu

BN_EPS = 1e-5


# ----------------------------------------------------------------------------
# Fused Bottleneck kernel (one image per grid step)
# ----------------------------------------------------------------------------
def _bottleneck_kernel(*refs, rext, tap_offsets, res_off, has_downsample):
    if has_downsample:
        (x_ref, mask_ref, w1_ref, s1_ref, b1_ref,
         w2_ref, s2_ref, b2_ref, w3_ref, s3_ref, b3_ref,
         wd_ref, sd_ref, bd_ref, o_ref, h1_scr) = refs
    else:
        (x_ref, mask_ref, w1_ref, s1_ref, b1_ref,
         w2_ref, s2_ref, b2_ref, w3_ref, s3_ref, b3_ref,
         o_ref, h1_scr) = refs
        wd_ref = sd_ref = bd_ref = None

    # conv1 (1x1) + BN1 + ReLU over every padded row; the conv2 zero-padding ring
    # (and slack rows) are forced to exactly 0 via a precomputed interior mask.
    x_all = x_ref[...]                                       # (R, Cin) bf16
    a1 = jnp.dot(x_all, w1_ref[...], preferred_element_type=jnp.float32)
    a1 = jnp.maximum(a1 * s1_ref[...] + b1_ref[...], 0.0)
    h1_scr[...] = a1 * mask_ref[...]                         # (R, width) f32, ring = 0

    # conv2 (3x3, stride=1, pad=1) == sum of 9 shifted 1x1 matmuls.  In the
    # flattened padded layout (row stride W+2), tap (dy, dx) is a contiguous slice
    # of h1 at offset dy*(W+2)+dx.  Accumulate in f32, operands in bf16.
    width = w2_ref.shape[2]
    acc2 = jnp.zeros((rext, width), jnp.float32)
    for t, off in enumerate(tap_offsets):
        win = h1_scr[pl.ds(off, rext), :].astype(jnp.bfloat16)
        acc2 = acc2 + jnp.dot(win, w2_ref[t], preferred_element_type=jnp.float32)
    h2 = jnp.maximum(acc2 * s2_ref[...] + b2_ref[...], 0.0).astype(jnp.bfloat16)

    # conv3 (1x1) + BN3 (no ReLU before the residual add).
    a3 = jnp.dot(h2, w3_ref[...], preferred_element_type=jnp.float32)
    a3 = a3 * s3_ref[...] + b3_ref[...]

    # Residual: identity (or downsample 1x1 + BN), reusing the x rows that are
    # already resident in VMEM (no second HBM read of x).
    x_res = x_ref[pl.ds(res_off, rext), :]                   # (Rext, Cin) bf16
    if has_downsample:
        idn = jnp.dot(x_res, wd_ref[...], preferred_element_type=jnp.float32)
        idn = idn * sd_ref[...] + bd_ref[...]
    else:
        idn = x_res.astype(jnp.float32)

    o_ref[...] = jnp.maximum(a3 + idn, 0.0).astype(o_ref.dtype)


# ----------------------------------------------------------------------------
# Wrapper
# ----------------------------------------------------------------------------
def _fold_bn(bn):
    s = bn["gamma"] * lax.rsqrt(bn["rvar"] + BN_EPS)
    return s, bn["beta"] - bn["rmean"] * s


def bottleneck_forward(x_nchw, params, *, stride=1, groups=1, dilation=1):
    """Forward pass of the PyTorch Bottleneck module (eval-mode BN), NCHW in/out."""
    if stride != 1 or groups != 1 or dilation != 1:
        # TODO(synk): only the default stride=1/groups=1/dilation=1 variant is fused.
        raise NotImplementedError("fused Bottleneck kernel supports stride=groups=dilation=1")

    x = jnp.transpose(x_nchw, (0, 2, 3, 1))                  # NCHW -> NHWC
    n, h, w, cin = x.shape
    wp2, hp2 = w + 2, h + 2
    rext = h * wp2                                           # extended output rows
    r_rows = -(-(hp2 * wp2 + 2) // 8) * 8                    # padded rows + slack, 8-aligned

    width = params["w1"].shape[1]
    cout = params["w3"].shape[1]
    has_ds = "wd" in params

    # Flattened zero-padded layout: one zero ring around the image (conv2's pad=1),
    # row stride W+2, plus slack rows so every 3x3 tap slice stays in bounds.
    xp = jnp.pad(x, ((0, 0), (1, 1), (1, 1), (0, 0)))
    xf = xp.reshape(n, hp2 * wp2, cin)
    xf = jnp.pad(xf, ((0, 0), (0, r_rows - hp2 * wp2), (0, 0)))
    x_in = xf.astype(jnp.bfloat16)

    # Static interior mask (1 inside the image, 0 on the padding ring / slack rows).
    f = jnp.arange(r_rows)
    ph, pw = f // wp2, f % wp2
    interior = (ph >= 1) & (ph <= h) & (pw >= 1) & (pw <= w)
    mask = interior.astype(jnp.float32)[:, None]             # (R, 1)

    s1, b1 = _fold_bn(params["bn1"])
    s2, b2 = _fold_bn(params["bn2"])
    s3, b3 = _fold_bn(params["bn3"])

    w1 = params["w1"].astype(jnp.bfloat16)                              # (Cin, width)
    w2 = params["w2"].reshape(9, width, width).astype(jnp.bfloat16)     # HWIO -> (9, I, O)
    w3 = params["w3"].astype(jnp.bfloat16)                              # (width, Cout)

    args = [x_in, mask,
            w1, s1[None, :], b1[None, :],
            w2, s2[None, :], b2[None, :],
            w3, s3[None, :], b3[None, :]]
    in_specs = [
        pl.BlockSpec((None, r_rows, cin), lambda i: (i, 0, 0)),
        pl.BlockSpec((r_rows, 1), lambda i: (0, 0)),
        pl.BlockSpec((cin, width), lambda i: (0, 0)),
        pl.BlockSpec((1, width), lambda i: (0, 0)),
        pl.BlockSpec((1, width), lambda i: (0, 0)),
        pl.BlockSpec((9, width, width), lambda i: (0, 0, 0)),
        pl.BlockSpec((1, width), lambda i: (0, 0)),
        pl.BlockSpec((1, width), lambda i: (0, 0)),
        pl.BlockSpec((width, cout), lambda i: (0, 0)),
        pl.BlockSpec((1, cout), lambda i: (0, 0)),
        pl.BlockSpec((1, cout), lambda i: (0, 0)),
    ]
    if has_ds:
        sd, bd = _fold_bn(params["bnd"])
        args += [params["wd"].astype(jnp.bfloat16), sd[None, :], bd[None, :]]
        in_specs += [
            pl.BlockSpec((cin, cout), lambda i: (0, 0)),
            pl.BlockSpec((1, cout), lambda i: (0, 0)),
            pl.BlockSpec((1, cout), lambda i: (0, 0)),
        ]

    kernel = functools.partial(
        _bottleneck_kernel,
        rext=rext,
        tap_offsets=tuple(dy * wp2 + dx for dy in range(3) for dx in range(3)),
        res_off=wp2 + 1,
        has_downsample=has_ds,
    )

    out_ext = pl.pallas_call(
        kernel,
        out_shape=jax.ShapeDtypeStruct((n, rext, cout), jnp.float32),
        grid=(n,),
        in_specs=in_specs,
        out_specs=pl.BlockSpec((None, rext, cout), lambda i: (i, 0, 0)),
        scratch_shapes=[pltpu.VMEM((r_rows, width), jnp.float32)],
        compiler_params=pltpu.CompilerParams(
            dimension_semantics=("parallel",),
            # Working set is ~2 MiB; keep the scoped limit far below v7x's 64 MiB.
            vmem_limit_bytes=32 * 1024 * 1024,
        ),
    )(*args)

    # Drop the 2 junk columns per row of the extended layout, back to NCHW.
    out = out_ext.reshape(n, h, wp2, cout)[:, :, :w, :]
    return jnp.transpose(out, (0, 3, 1, 2))


# ----------------------------------------------------------------------------
# Pure-JAX reference (same bf16-operand / f32-accumulate discipline), for self-check
# ----------------------------------------------------------------------------
def bottleneck_reference(x_nchw, params):
    x = jnp.transpose(x_nchw, (0, 2, 3, 1)).astype(jnp.bfloat16)

    def conv(v, w_hwio, pad):
        return lax.conv_general_dilated(
            v.astype(jnp.bfloat16), w_hwio.astype(jnp.bfloat16),
            window_strides=(1, 1), padding=((pad, pad), (pad, pad)),
            dimension_numbers=("NHWC", "HWIO", "NHWC"),
            preferred_element_type=jnp.float32)

    def bn(v, p):
        s = p["gamma"] * lax.rsqrt(p["rvar"] + BN_EPS)
        return v * s + (p["beta"] - p["rmean"] * s)

    w1 = params["w1"][None, None]
    w3 = params["w3"][None, None]
    h = jnp.maximum(bn(conv(x, w1, 0), params["bn1"]), 0.0)
    h = jnp.maximum(bn(conv(h, params["w2"], 1), params["bn2"]), 0.0)
    h = bn(conv(h, w3, 0), params["bn3"])
    if "wd" in params:
        idn = bn(conv(x, params["wd"][None, None], 0), params["bnd"])
    else:
        idn = x.astype(jnp.float32)
    out = jnp.maximum(h + idn, 0.0)
    return jnp.transpose(out, (0, 3, 1, 2))


# ----------------------------------------------------------------------------
# Deterministic parameter construction (mirrors Bottleneck.__init__ shapes)
# ----------------------------------------------------------------------------
def init_bottleneck_params(key, inplanes, planes, *, base_width=64, groups=1,
                           with_downsample=None, expansion=4):
    width = int(planes * (base_width / 64.0)) * groups
    cout = planes * expansion
    if with_downsample is None:
        with_downsample = inplanes != cout
    keys = iter(jax.random.split(key, 32))

    def conv_w(cin, co, k):
        fan_out = k * k * co                       # kaiming_normal_(mode='fan_out', relu)
        std = (2.0 / fan_out) ** 0.5
        wv = jax.random.normal(next(keys), (k, k, cin, co), jnp.float32) * std
        return wv if k > 1 else wv.reshape(cin, co)  # 1x1 convs stored as (Cin, Cout)

    def bn_p(c):
        return {
            "gamma": jax.random.uniform(next(keys), (c,), jnp.float32, 0.5, 1.5),
            "beta": 0.1 * jax.random.normal(next(keys), (c,), jnp.float32),
            "rmean": 0.1 * jax.random.normal(next(keys), (c,), jnp.float32),
            "rvar": jax.random.uniform(next(keys), (c,), jnp.float32, 0.5, 1.5),
        }

    params = {
        "w1": conv_w(inplanes, width, 1), "bn1": bn_p(width),
        "w2": conv_w(width, width, 3),    "bn2": bn_p(width),
        "w3": conv_w(width, cout, 1),     "bn3": bn_p(cout),
    }
    if with_downsample:
        params["wd"] = conv_w(inplanes, cout, 1)
        params["bnd"] = bn_p(cout)
    return params


if __name__ == "__main__":
    key = jax.random.PRNGKey(0)
    k_x, k_p = jax.random.split(key)

    # Bottleneck(inplanes=64, planes=64), stride=1, downsample present
    # (inplanes != planes*expansion) — the standard first block of layer1.
    n, cin, h, w = 2, 64, 16, 16
    planes = 64
    x = jax.random.normal(k_x, (n, cin, h, w), jnp.float32)
    params = init_bottleneck_params(k_p, inplanes=cin, planes=planes)

    out = jax.jit(bottleneck_forward)(x, params)
    jax.block_until_ready(out)
    assert out.shape == (n, 4 * planes, h, w), out.shape
    assert bool(jnp.all(jnp.isfinite(out)))

    # Self-check against the pure-JAX reference (same bf16/f32 discipline).
    ref = jax.jit(bottleneck_reference)(x, params)
    max_err = float(jnp.max(jnp.abs(out - ref)))
    assert max_err < 1e-1, max_err

    print("KERNEL_OK")
</pallas_src>

<mosaic_0001>
module attributes {stable_mosaic.version = 11 : i64} {
  func.func @_bottleneck_kernel(%arg0: i32, %arg1: memref<1x328x64xbf16, #tpu.memory_space<vmem>>, %arg2: memref<328x1xf32, #tpu.memory_space<vmem>>, %arg3: memref<64x64xbf16, #tpu.memory_space<vmem>>, %arg4: memref<1x64xf32, #tpu.memory_space<vmem>>, %arg5: memref<1x64xf32, #tpu.memory_space<vmem>>, %arg6: memref<9x64x64xbf16, #tpu.memory_space<vmem>>, %arg7: memref<1x64xf32, #tpu.memory_space<vmem>>, %arg8: memref<1x64xf32, #tpu.memory_space<vmem>>, %arg9: memref<64x256xbf16, #tpu.memory_space<vmem>>, %arg10: memref<1x256xf32, #tpu.memory_space<vmem>>, %arg11: memref<1x256xf32, #tpu.memory_space<vmem>>, %arg12: memref<64x256xbf16, #tpu.memory_space<vmem>>, %arg13: memref<1x256xf32, #tpu.memory_space<vmem>>, %arg14: memref<1x256xf32, #tpu.memory_space<vmem>>, %arg15: memref<1x288x256xf32, #tpu.memory_space<vmem>>, %arg16: memref<328x64xf32, #tpu.memory_space<vmem>>) attributes {dimension_semantics = [#tpu.dimension_semantics<parallel>], iteration_bounds = array<i64: 2>, scalar_prefetch = 0 : i64, scratch_operands = 1 : i64, tpu.core_type = #tpu.core_type<tc>, window_params = [{transform_indices = @transform_0, window_bounds = array<i64: 1, 328, 64>}, {pipeline_mode = #tpu.pipeline_mode<synchronous>, transform_indices = @transform_1, window_bounds = array<i64: 328, 1>}, {pipeline_mode = #tpu.pipeline_mode<synchronous>, transform_indices = @transform_2, window_bounds = array<i64: 64, 64>}, {pipeline_mode = #tpu.pipeline_mode<synchronous>, transform_indices = @transform_3, window_bounds = array<i64: 1, 64>}, {pipeline_mode = #tpu.pipeline_mode<synchronous>, transform_indices = @transform_4, window_bounds = array<i64: 1, 64>}, {pipeline_mode = #tpu.pipeline_mode<synchronous>, transform_indices = @transform_5, window_bounds = array<i64: 9, 64, 64>}, {pipeline_mode = #tpu.pipeline_mode<synchronous>, transform_indices = @transform_6, window_bounds = array<i64: 1, 64>}, {pipeline_mode = #tpu.pipeline_mode<synchronous>, transform_indices = @transform_7, window_bounds = array<i64: 1, 64>}, {pipeline_mode = #tpu.pipeline_mode<synchronous>, transform_indices = @transform_8, window_bounds = array<i64: 64, 256>}, {pipeline_mode = #tpu.pipeline_mode<synchronous>, transform_indices = @transform_9, window_bounds = array<i64: 1, 256>}, {pipeline_mode = #tpu.pipeline_mode<synchronous>, transform_indices = @transform_10, window_bounds = array<i64: 1, 256>}, {pipeline_mode = #tpu.pipeline_mode<synchronous>, transform_indices = @transform_11, window_bounds = array<i64: 64, 256>}, {pipeline_mode = #tpu.pipeline_mode<synchronous>, transform_indices = @transform_12, window_bounds = array<i64: 1, 256>}, {pipeline_mode = #tpu.pipeline_mode<synchronous>, transform_indices = @transform_13, window_bounds = array<i64: 1, 256>}, {transform_indices = @transform_14, window_bounds = array<i64: 1, 288, 256>}]} {
    %c0 = arith.constant 0 : index
    %c0_0 = arith.constant 0 : index
    %c0_1 = arith.constant 0 : index
    %0 = vector.load %arg1[%c0, %c0_0, %c0_1] : memref<1x328x64xbf16, #tpu.memory_space<vmem>>, vector<1x328x64xbf16>
    %1 = vector.shape_cast %0 : vector<1x328x64xbf16> to vector<328x64xbf16>
    %c0_2 = arith.constant 0 : index
    %c0_3 = arith.constant 0 : index
    %2 = vector.load %arg3[%c0_2, %c0_3] : memref<64x64xbf16, #tpu.memory_space<vmem>>, vector<64x64xbf16>
    %cst = arith.constant dense<0.000000e+00> : vector<328x64xf32>
    %3 = tpu.matmul %1, %2, %cst {dimension_numbers = #tpu.dot_dimension_numbers<[1], [0], [0], [1], [0, 0, 1, 1], [], []>} : vector<328x64xbf16>, vector<64x64xbf16>, vector<328x64xf32> -> vector<328x64xf32>
    %c0_4 = arith.constant 0 : index
    %c0_5 = arith.constant 0 : index
    %4 = vector.load %arg4[%c0_4, %c0_5] : memref<1x64xf32, #tpu.memory_space<vmem>>, vector<1x64xf32>
    %5 = vector.broadcast %4 : vector<1x64xf32> to vector<328x64xf32>
    %6 = arith.mulf %3, %5 : vector<328x64xf32>
    %c0_6 = arith.constant 0 : index
    %c0_7 = arith.constant 0 : index
    %7 = vector.load %arg5[%c0_6, %c0_7] : memref<1x64xf32, #tpu.memory_space<vmem>>, vector<1x64xf32>
    %8 = vector.broadcast %7 : vector<1x64xf32> to vector<328x64xf32>
    %9 = arith.addf %6, %8 : vector<328x64xf32>
    %cst_8 = arith.constant 0.000000e+00 : f32
    %10 = vector.broadcast %cst_8 : f32 to vector<328x64xf32>
    %11 = arith.maximumf %9, %10 : vector<328x64xf32>
    %c0_9 = arith.constant 0 : index
    %c0_10 = arith.constant 0 : index
    %12 = vector.load %arg2[%c0_9, %c0_10] : memref<328x1xf32, #tpu.memory_space<vmem>>, vector<328x1xf32>
    %13 = vector.broadcast %12 : vector<328x1xf32> to vector<328x64xf32>
    %14 = arith.mulf %11, %13 : vector<328x64xf32>
    %c0_11 = arith.constant 0 : index
    %c0_12 = arith.constant 0 : index
    %15 = vector.load %arg16[%c0_11, %c0_12] : memref<328x64xf32, #tpu.memory_space<vmem>>, vector<328x64xf32>
    tpu.vector_store %arg16[%c0_11, %c0_12], %14 {strides = array<i32>} : memref<328x64xf32, #tpu.memory_space<vmem>>, vector<328x64xf32>,
    %cst_13 = arith.constant 0.000000e+00 : f32
    %16 = vector.broadcast %cst_13 : f32 to vector<288x64xf32>
    %c0_14 = arith.constant 0 : index
    %c0_15 = arith.constant 0 : index
    %17 = vector.load %arg16[%c0_14, %c0_15] : memref<328x64xf32, #tpu.memory_space<vmem>>, vector<288x64xf32>
    %18 = arith.truncf %17 : vector<288x64xf32> to vector<288x64xbf16>
    %c0_16 = arith.constant 0 : index
    %c0_17 = arith.constant 0 : index
    %c0_18 = arith.constant 0 : index
    %19 = vector.load %arg6[%c0_16, %c0_17, %c0_18] : memref<9x64x64xbf16, #tpu.memory_space<vmem>>, vector<1x64x64xbf16>
    %20 = vector.shape_cast %19 : vector<1x64x64xbf16> to vector<64x64xbf16>
    %cst_19 = arith.constant dense<0.000000e+00> : vector<288x64xf32>
    %21 = tpu.matmul %18, %20, %cst_19 {dimension_numbers = #tpu.dot_dimension_numbers<[1], [0], [0], [1], [0, 0, 1, 1], [], []>} : vector<288x64xbf16>, vector<64x64xbf16>, vector<288x64xf32> -> vector<288x64xf32>
    %22 = arith.addf %16, %21 : vector<288x64xf32>
    %c1 = arith.constant 1 : index
    %c0_20 = arith.constant 0 : index
    %23 = vector.load %arg16[%c1, %c0_20] : memref<328x64xf32, #tpu.memory_space<vmem>>, vector<288x64xf32>
    %24 = arith.truncf %23 : vector<288x64xf32> to vector<288x64xbf16>
    %c1_21 = arith.constant 1 : index
    %c0_22 = arith.constant 0 : index
    %c0_23 = arith.constant 0 : index
    %25 = vector.load %arg6[%c1_21, %c0_22, %c0_23] : memref<9x64x64xbf16, #tpu.memory_space<vmem>>, vector<1x64x64xbf16>
    %26 = vector.shape_cast %25 : vector<1x64x64xbf16> to vector<64x64xbf16>
    %cst_24 = arith.constant dense<0.000000e+00> : vector<288x64xf32>
    %27 = tpu.matmul %24, %26, %cst_24 {dimension_numbers = #tpu.dot_dimension_numbers<[1], [0], [0], [1], [0, 0, 1, 1], [], []>} : vector<288x64xbf16>, vector<64x64xbf16>, vector<288x64xf32> -> vector<288x64xf32>
    %28 = arith.addf %22, %27 : vector<288x64xf32>
    %c2 = arith.constant 2 : index
    %c0_25 = arith.constant 0 : index
    %29 = vector.load %arg16[%c2, %c0_25] : memref<328x64xf32, #tpu.memory_space<vmem>>, vector<288x64xf32>
    %30 = arith.truncf %29 : vector<288x64xf32> to vector<288x64xbf16>
    %c2_26 = arith.constant 2 : index
    %c0_27 = arith.constant 0 : index
    %c0_28 = arith.constant 0 : index
    %31 = vector.load %arg6[%c2_26, %c0_27, %c0_28] : memref<9x64x64xbf16, #tpu.memory_space<vmem>>, vector<1x64x64xbf16>
    %32 = vector.shape_cast %31 : vector<1x64x64xbf16> to vector<64x64xbf16>
    %cst_29 = arith.constant dense<0.000000e+00> : vector<288x64xf32>
    %33 = tpu.matmul %30, %32, %cst_29 {dimension_numbers = #tpu.dot_dimension_numbers<[1], [0], [0], [1], [0, 0, 1, 1], [], []>} : vector<288x64xbf16>, vector<64x64xbf16>, vector<288x64xf32> -> vector<288x64xf32>
    %34 = arith.addf %28, %33 : vector<288x64xf32>
    %c18 = arith.constant 18 : index
    %c0_30 = arith.constant 0 : index
    %35 = vector.load %arg16[%c18, %c0_30] : memref<328x64xf32, #tpu.memory_space<vmem>>, vector<288x64xf32>
    %36 = arith.truncf %35 : vector<288x64xf32> to vector<288x64xbf16>
    %c3 = arith.constant 3 : index
    %c0_31 = arith.constant 0 : index
    %c0_32 = arith.constant 0 : index
    %37 = vector.load %arg6[%c3, %c0_31, %c0_32] : memref<9x64x64xbf16, #tpu.memory_space<vmem>>, vector<1x64x64xbf16>
    %38 = vector.shape_cast %37 : vector<1x64x64xbf16> to vector<64x64xbf16>
    %cst_33 = arith.constant dense<0.000000e+00> : vector<288x64xf32>
    %39 = tpu.matmul %36, %38, %cst_33 {dimension_numbers = #tpu.dot_dimension_numbers<[1], [0], [0], [1], [0, 0, 1, 1], [], []>} : vector<288x64xbf16>, vector<64x64xbf16>, vector<288x64xf32> -> vector<288x64xf32>
    %40 = arith.addf %34, %39 : vector<288x64xf32>
    %c19 = arith.constant 19 : index
    %c0_34 = arith.constant 0 : index
    %41 = vector.load %arg16[%c19, %c0_34] : memref<328x64xf32, #tpu.memory_space<vmem>>, vector<288x64xf32>
    %42 = arith.truncf %41 : vector<288x64xf32> to vector<288x64xbf16>
    %c4 = arith.constant 4 : index
    %c0_35 = arith.constant 0 : index
    %c0_36 = arith.constant 0 : index
    %43 = vector.load %arg6[%c4, %c0_35, %c0_36] : memref<9x64x64xbf16, #tpu.memory_space<vmem>>, vector<1x64x64xbf16>
    %44 = vector.shape_cast %43 : vector<1x64x64xbf16> to vector<64x64xbf16>
    %cst_37 = arith.constant dense<0.000000e+00> : vector<288x64xf32>
    %45 = tpu.matmul %42, %44, %cst_37 {dimension_numbers = #tpu.dot_dimension_numbers<[1], [0], [0], [1], [0, 0, 1, 1], [], []>} : vector<288x64xbf16>, vector<64x64xbf16>, vector<288x64xf32> -> vector<288x64xf32>
    %46 = arith.addf %40, %45 : vector<288x64xf32>
    %c20 = arith.constant 20 : index
    %c0_38 = arith.constant 0 : index
    %47 = vector.load %arg16[%c20, %c0_38] : memref<328x64xf32, #tpu.memory_space<vmem>>, vector<288x64xf32>
    %48 = arith.truncf %47 : vector<288x64xf32> to vector<288x64xbf16>
    %c5 = arith.constant 5 : index
    %c0_39 = arith.constant 0 : index
    %c0_40 = arith.constant 0 : index
    %49 = vector.load %arg6[%c5, %c0_39, %c0_40] : memref<9x64x64xbf16, #tpu.memory_space<vmem>>, vector<1x64x64xbf16>
    %50 = vector.shape_cast %49 : vector<1x64x64xbf16> to vector<64x64xbf16>
    %cst_41 = arith.constant dense<0.000000e+00> : vector<288x64xf32>
    %51 = tpu.matmul %48, %50, %cst_41 {dimension_numbers = #tpu.dot_dimension_numbers<[1], [0], [0], [1], [0, 0, 1, 1], [], []>} : vector<288x64xbf16>, vector<64x64xbf16>, vector<288x64xf32> -> vector<288x64xf32>
    %52 = arith.addf %46, %51 : vector<288x64xf32>
    %c36 = arith.constant 36 : index
    %c0_42 = arith.constant 0 : index
    %53 = vector.load %arg16[%c36, %c0_42] : memref<328x64xf32, #tpu.memory_space<vmem>>, vector<288x64xf32>
    %54 = arith.truncf %53 : vector<288x64xf32> to vector<288x64xbf16>
    %c6 = arith.constant 6 : index
    %c0_43 = arith.constant 0 : index
    %c0_44 = arith.constant 0 : index
    %55 = vector.load %arg6[%c6, %c0_43, %c0_44] : memref<9x64x64xbf16, #tpu.memory_space<vmem>>, vector<1x64x64xbf16>
    %56 = vector.shape_cast %55 : vector<1x64x64xbf16> to vector<64x64xbf16>
    %cst_45 = arith.constant dense<0.000000e+00> : vector<288x64xf32>
    %57 = tpu.matmul %54, %56, %cst_45 {dimension_numbers = #tpu.dot_dimension_numbers<[1], [0], [0], [1], [0, 0, 1, 1], [], []>} : vector<288x64xbf16>, vector<64x64xbf16>, vector<288x64xf32> -> vector<288x64xf32>
    %58 = arith.addf %52, %57 : vector<288x64xf32>
    %c37 = arith.constant 37 : index
    %c0_46 = arith.constant 0 : index
    %59 = vector.load %arg16[%c37, %c0_46] : memref<328x64xf32, #tpu.memory_space<vmem>>, vector<288x64xf32>
    %60 = arith.truncf %59 : vector<288x64xf32> to vector<288x64xbf16>
    %c7 = arith.constant 7 : index
    %c0_47 = arith.constant 0 : index
    %c0_48 = arith.constant 0 : index
    %61 = vector.load %arg6[%c7, %c0_47, %c0_48] : memref<9x64x64xbf16, #tpu.memory_space<vmem>>, vector<1x64x64xbf16>
    %62 = vector.shape_cast %61 : vector<1x64x64xbf16> to vector<64x64xbf16>
    %cst_49 = arith.constant dense<0.000000e+00> : vector<288x64xf32>
    %63 = tpu.matmul %60, %62, %cst_49 {dimension_numbers = #tpu.dot_dimension_numbers<[1], [0], [0], [1], [0, 0, 1, 1], [], []>} : vector<288x64xbf16>, vector<64x64xbf16>, vector<288x64xf32> -> vector<288x64xf32>
    %64 = arith.addf %58, %63 : vector<288x64xf32>
    %c38 = arith.constant 38 : index
    %c0_50 = arith.constant 0 : index
    %65 = vector.load %arg16[%c38, %c0_50] : memref<328x64xf32, #tpu.memory_space<vmem>>, vector<288x64xf32>
    %66 = arith.truncf %65 : vector<288x64xf32> to vector<288x64xbf16>
    %c8 = arith.constant 8 : index
    %c0_51 = arith.constant 0 : index
    %c0_52 = arith.constant 0 : index
    %67 = vector.load %arg6[%c8, %c0_51, %c0_52] : memref<9x64x64xbf16, #tpu.memory_space<vmem>>, vector<1x64x64xbf16>
    %68 = vector.shape_cast %67 : vector<1x64x64xbf16> to vector<64x64xbf16>
    %cst_53 = arith.constant dense<0.000000e+00> : vector<288x64xf32>
    %69 = tpu.matmul %66, %68, %cst_53 {dimension_numbers = #tpu.dot_dimension_numbers<[1], [0], [0], [1], [0, 0, 1, 1], [], []>} : vector<288x64xbf16>, vector<64x64xbf16>, vector<288x64xf32> -> vector<288x64xf32>
    %70 = arith.addf %64, %69 : vector<288x64xf32>
    %c0_54 = arith.constant 0 : index
    %c0_55 = arith.constant 0 : index
    %71 = vector.load %arg7[%c0_54, %c0_55] : memref<1x64xf32, #tpu.memory_space<vmem>>, vector<1x64xf32>
    %72 = vector.broadcast %71 : vector<1x64xf32> to vector<288x64xf32>
    %73 = arith.mulf %70, %72 : vector<288x64xf32>
    %c0_56 = arith.constant 0 : index
    %c0_57 = arith.constant 0 : index
    %74 = vector.load %arg8[%c0_56, %c0_57] : memref<1x64xf32, #tpu.memory_space<vmem>>, vector<1x64xf32>
    %75 = vector.broadcast %74 : vector<1x64xf32> to vector<288x64xf32>
    %76 = arith.addf %73, %75 : vector<288x64xf32>
    %cst_58 = arith.constant 0.000000e+00 : f32
    %77 = vector.broadcast %cst_58 : f32 to vector<288x64xf32>
    %78 = arith.maximumf %76, %77 : vector<288x64xf32>
    %79 = arith.truncf %78 : vector<288x64xf32> to vector<288x64xbf16>
    %c0_59 = arith.constant 0 : index
    %c0_60 = arith.constant 0 : index
    %80 = vector.load %arg9[%c0_59, %c0_60] : memref<64x256xbf16, #tpu.memory_space<vmem>>, vector<64x256xbf16>
    %cst_61 = arith.constant dense<0.000000e+00> : vector<288x256xf32>
    %81 = tpu.matmul %79, %80, %cst_61 {dimension_numbers = #tpu.dot_dimension_numbers<[1], [0], [0], [1], [0, 0, 1, 1], [], []>} : vector<288x64xbf16>, vector<64x256xbf16>, vector<288x256xf32> -> vector<288x256xf32>
    %c0_62 = arith.constant 0 : index
    %c0_63 = arith.constant 0 : index
    %82 = vector.load %arg10[%c0_62, %c0_63] : memref<1x256xf32, #tpu.memory_space<vmem>>, vector<1x256xf32>
    %83 = vector.broadcast %82 : vector<1x256xf32> to vector<288x256xf32>
    %84 = arith.mulf %81, %83 : vector<288x256xf32>
    %c0_64 = arith.constant 0 : index
    %c0_65 = arith.constant 0 : index
    %85 = vector.load %arg11[%c0_64, %c0_65] : memref<1x256xf32, #tpu.memory_space<vmem>>, vector<1x256xf32>
    %86 = vector.broadcast %85 : vector<1x256xf32> to vector<288x256xf32>
    %87 = arith.addf %84, %86 : vector<288x256xf32>
    %c0_66 = arith.constant 0 : index
    %c19_67 = arith.constant 19 : index
    %c0_68 = arith.constant 0 : index
    %88 = vector.load %arg1[%c0_66, %c19_67, %c0_68] : memref<1x328x64xbf16, #tpu.memory_space<vmem>>, vector<1x288x64xbf16>
    %89 = vector.shape_cast %88 : vector<1x288x64xbf16> to vector<288x64xbf16>
    %c0_69 = arith.constant 0 : index
    %c0_70 = arith.constant 0 : index
    %90 = vector.load %arg12[%c0_69, %c0_70] : memref<64x256xbf16, #tpu.memory_space<vmem>>, vector<64x256xbf16>
    %cst_71 = arith.constant dense<0.000000e+00> : vector<288x256xf32>
    %91 = tpu.matmul %89, %90, %cst_71 {dimension_numbers = #tpu.dot_dimension_numbers<[1], [0], [0], [1], [0, 0, 1, 1], [], []>} : vector<288x64xbf16>, vector<64x256xbf16>, vector<288x256xf32> -> vector<288x256xf32>
    %c0_72 = arith.constant 0 : index
    %c0_73 = arith.constant 0 : index
    %92 = vector.load %arg13[%c0_72, %c0_73] : memref<1x256xf32, #tpu.memory_space<vmem>>, vector<1x256xf32>
    %93 = vector.broadcast %92 : vector<1x256xf32> to vector<288x256xf32>
    %94 = arith.mulf %91, %93 : vector<288x256xf32>
    %c0_74 = arith.constant 0 : index
    %c0_75 = arith.constant 0 : index
    %95 = vector.load %arg14[%c0_74, %c0_75] : memref<1x256xf32, #tpu.memory_space<vmem>>, vector<1x256xf32>
    %96 = vector.broadcast %95 : vector<1x256xf32> to vector<288x256xf32>
    %97 = arith.addf %94, %96 : vector<288x256xf32>
    %98 = arith.addf %87, %97 : vector<288x256xf32>
    %cst_76 = arith.constant 0.000000e+00 : f32
    %99 = vector.broadcast %cst_76 : f32 to vector<288x256xf32>
    %100 = arith.maximumf %98, %99 : vector<288x256xf32>
    %c0_77 = arith.constant 0 : index
    %c0_78 = arith.constant 0 : index
    %c0_79 = arith.constant 0 : index
    %101 = vector.load %arg15[%c0_77, %c0_78, %c0_79] : memref<1x288x256xf32, #tpu.memory_space<vmem>>, vector<1x288x256xf32>
    %102 = vector.shape_cast %101 : vector<1x288x256xf32> to vector<288x256xf32>
    %103 = vector.shape_cast %100 : vector<288x256xf32> to vector<1x288x256xf32>
    tpu.vector_store %arg15[%c0_77, %c0_78, %c0_79], %103 {strides = array<i32>} : memref<1x288x256xf32, #tpu.memory_space<vmem>>, vector<1x288x256xf32>,
    return
  }
  func.func @transform_0(%arg0: i32) -> (i32, i32, i32) {
    %c0_i32 = arith.constant 0 : i32
    %c0_i32_0 = arith.constant 0 : i32
    %c0_i32_1 = arith.constant 0 : i32
    return %arg0, %c0_i32, %c0_i32_0 : i32, i32, i32
  }
  func.func @transform_1(%arg0: i32) -> (i32, i32) {
    %c0_i32 = arith.constant 0 : i32
    %c0_i32_0 = arith.constant 0 : i32
    %c0_i32_1 = arith.constant 0 : i32
    return %c0_i32, %c0_i32_0 : i32, i32
  }
  func.func @transform_2(%arg0: i32) -> (i32, i32) {
    %c0_i32 = arith.constant 0 : i32
    %c0_i32_0 = arith.constant 0 : i32
    %c0_i32_1 = arith.constant 0 : i32
    return %c0_i32, %c0_i32_0 : i32, i32
  }
  func.func @transform_3(%arg0: i32) -> (i32, i32) {
    %c0_i32 = arith.constant 0 : i32
    %c0_i32_0 = arith.constant 0 : i32
    %c0_i32_1 = arith.constant 0 : i32
    return %c0_i32, %c0_i32_0 : i32, i32
  }
  func.func @transform_4(%arg0: i32) -> (i32, i32) {
    %c0_i32 = arith.constant 0 : i32
    %c0_i32_0 = arith.constant 0 : i32
    %c0_i32_1 = arith.constant 0 : i32
    return %c0_i32, %c0_i32_0 : i32, i32
  }
  func.func @transform_5(%arg0: i32) -> (i32, i32, i32) {
    %c0_i32 = arith.constant 0 : i32
    %c0_i32_0 = arith.constant 0 : i32
    %c0_i32_1 = arith.constant 0 : i32
    %c0_i32_2 = arith.constant 0 : i32
    return %c0_i32, %c0_i32_0, %c0_i32_1 : i32, i32, i32
  }
  func.func @transform_6(%arg0: i32) -> (i32, i32) {
    %c0_i32 = arith.constant 0 : i32
    %c0_i32_0 = arith.constant 0 : i32
    %c0_i32_1 = arith.constant 0 : i32
    return %c0_i32, %c0_i32_0 : i32, i32
  }
  func.func @transform_7(%arg0: i32) -> (i32, i32) {
    %c0_i32 = arith.constant 0 : i32
    %c0_i32_0 = arith.constant 0 : i32
    %c0_i32_1 = arith.constant 0 : i32
    return %c0_i32, %c0_i32_0 : i32, i32
  }
  func.func @transform_8(%arg0: i32) -> (i32, i32) {
    %c0_i32 = arith.constant 0 : i32
    %c0_i32_0 = arith.constant 0 : i32
    %c0_i32_1 = arith.constant 0 : i32
    return %c0_i32, %c0_i32_0 : i32, i32
  }
  func.func @transform_9(%arg0: i32) -> (i32, i32) {
    %c0_i32 = arith.constant 0 : i32
    %c0_i32_0 = arith.constant 0 : i32
    %c0_i32_1 = arith.constant 0 : i32
    return %c0_i32, %c0_i32_0 : i32, i32
  }
  func.func @transform_10(%arg0: i32) -> (i32, i32) {
    %c0_i32 = arith.constant 0 : i32
    %c0_i32_0 = arith.constant 0 : i32
    %c0_i32_1 = arith.constant 0 : i32
    return %c0_i32, %c0_i32_0 : i32, i32
  }
  func.func @transform_11(%arg0: i32) -> (i32, i32) {
    %c0_i32 = arith.constant 0 : i32
    %c0_i32_0 = arith.constant 0 : i32
    %c0_i32_1 = arith.constant 0 : i32
    return %c0_i32, %c0_i32_0 : i32, i32
  }
  func.func @transform_12(%arg0: i32) -> (i32, i32) {
    %c0_i32 = arith.constant 0 : i32
    %c0_i32_0 = arith.constant 0 : i32
    %c0_i32_1 = arith.constant 0 : i32
    return %c0_i32, %c0_i32_0 : i32, i32
  }
  func.func @transform_13(%arg0: i32) -> (i32, i32) {
    %c0_i32 = arith.constant 0 : i32
    %c0_i32_0 = arith.constant 0 : i32
    %c0_i32_1 = arith.constant 0 : i32
    return %c0_i32, %c0_i32_0 : i32, i32
  }
  func.func @transform_14(%arg0: i32) -> (i32, i32, i32) {
    %c0_i32 = arith.constant 0 : i32
    %c0_i32_0 = arith.constant 0 : i32
    %c0_i32_1 = arith.constant 0 : i32
    return %arg0, %c0_i32, %c0_i32_0 : i32, i32, i32
  }
}

</mosaic_0001>

<bundles_post_ra>
// kernel: bottleneck_forward.1
= control target key start
LH: loop header
LB: loop body
LE: loop exit
PB: predicated region body
PF: predicated region fallthrough
CT: control target
= control target key end

     0   :  { %s6226_s29 = smov 0   ;;  %s8477_s0 = inlined_call_operand.vmem [shape: bf16[2,328,64], index: 0, kind: input, shape index: {}]   ;;  %s8478_s1 = inlined_call_operand.vmem [shape: f32[328,1], index: 1, kind: input, shape index: {}]   ;;  %s8479_s2 = inlined_call_operand.vmem [shape: bf16[64,64], index: 2, kind: input, shape index: {}]   ;;  %s8480_s3 = inlined_call_operand.vmem [shape: f32[1,64], index: 3, kind: input, shape index: {}]   ;;  %s8481_s4 = inlined_call_operand.vmem [shape: f32[1,64], index: 4, kind: input, shape index: {}]   ;;  %s8482_s5 = inlined_call_operand.vmem [shape: bf16[9,64,64], index: 5, kind: input, shape index: {}]   ;;  %s8483_s6 = inlined_call_operand.vmem [shape: f32[1,64], index: 6, kind: input, shape index: {}]   ;;  %s8484_s7 = inlined_call_operand.vmem [shape: f32[1,64], index: 7, kind: input, shape index: {}]   ;;  %s8485_s8 = inlined_call_operand.vmem [shape: bf16[64,256], index: 8, kind: input, shape index: {}]   ;;  %s8486_s9 = inlined_call_operand.vmem [shape: f32[1,256], index: 9, kind: input, shape index: {}]   ;;  %s8487_s10 = inlined_call_operand.vmem [shape: f32[1,256], index: 10, kind: input, shape index: {}]   ;;  %s8488_s11 = inlined_call_operand.vmem [shape: bf16[64,256], index: 11, kind: input, shape index: {}]   ;;  %s8489_s12 = inlined_call_operand.vmem [shape: f32[1,256], index: 12, kind: input, shape index: {}]   ;;  %s8490_s13 = inlined_call_operand.vmem [shape: f32[1,256], index: 13, kind: input, shape index: {}]   ;;  %s8491_s14 = inlined_call_operand.vmem [shape: f32[2,288,256], index: 14, kind: output, shape index: {}]  }
   0x1 LB: > { %s5310_s30 = sadd.s32 4294967295, %s6148_s29   ;;  %p5314_p0 = scmp.ge.s32.totalorder %s6148_s29, 1  ;;  %s6148_s29 = sphi %s6226_s29, %s24_s29  }
   0x2   : > { %p412_p1 = scmp.lt.s32.totalorder %s6148_s29, 3 }
   0x4   : > { %p413_p2 = pnand %p5314_p0, %p412_p1 }
   0x6   : > { %416 = sbr.rel (%p413_p2) target bundleno = 1474 (0x5c2), region = 76 }
   0xb   : > { %v6037_v0 = vld [vmem:[%s8479_s2 + $0x18] sm:$0xff]  ;;  %p458_p3 = scmp.lt.s32.totalorder %s5310_s30, 1  ;;  %v6150_v1 = vmov 0   ;;  %v953_v2 = vld [vmem:[%s8478_s1] sm:$0xff]  ;;  %v6036_v4 = vld [vmem:[%s8479_s2 + $0x10] sm:$0xff]  ;;  %vm645_vm0 = vcmask 523264  }
   0xc   : > { %6132 = vset.pattern.permute.xlu1 %v6150_v1  ;;  %6131 = vset.pattern.permute.xlu0 %v6150_v1  ;;  %v969_v3 = vld [vmem:[%s8478_s1 + $0x80] sm:$0xff]  ;;  %v6035_v5 = vld [vmem:[%s8479_s2 + $0x8] sm:$0xff]  ;;  %v956_v10 = vld [vmem:[%s8478_s1 + $0x18] sm:$0xff]  ;;  %vm4420_vm1 = vsmask.f32 6400 }
   0xd   : > { %713 = vmatpush.bf16.msra.mxu0 %v6037_v0  ;;  %s8592_s30 = smov (!%p458_p3, %s5310_s30), 1  ;;  %996 = vperm.xlu1 %6132, %v953_v2   ;;  %v954_v6 = vld [vmem:[%s8478_s1 + $0x8] sm:$0xff]  ;;  %v6034_v7 = vld [vmem:[%s8479_s2] sm:$0xff]  ;;  %v972_v11 = vld [vmem:[%s8478_s1 + $0x98] sm:$0xff] }
   0xe   : > { %1076 = vperm.xlu0 %6131, %v969_v3   ;;  %6133 = vset.pattern.permute.xlu2 %v6150_v1  ;;  %s6120_s25 = smul.u32 164, %s8592_s30  ;;  %v970_v9 = vld [vmem:[%s8478_s1 + $0x88] sm:$0xff]  ;;  %v973_v13 = vld [vmem:[%s8478_s1 + $0xa0] sm:$0xff]  ;;  %v955_v14 = vld [vmem:[%s8478_s1 + $0x10] sm:$0xff] }
   0xf   : > { %6108 = vmatpush.bf16.msra.mxu3 %v6037_v0  ;;  %1006 = vperm.xlu2 %6133, %v955_v14   ;;  %v974_v15 = vld [vmem:[%s8478_s1 + $0xa8] sm:$0xff]  ;;  %v971_v18 = vld [vmem:[%s8478_s1 + $0x90] sm:$0xff]  ;;  %v957_v20 = vld [vmem:[%s8478_s1 + $0x20] sm:$0xff]  ;;  %s6121_s21 = smul.u32 576, %s8592_s30 }
  0x10   : > { %s6261_s18 = scalar_lea.vmem %s8477_s0, %s6120_s25  ;;  %v958_v16 = vld [vmem:[%s8478_s1 + $0x28] sm:$0xff]  ;;  %v959_v19 = vld [vmem:[%s8478_s1 + $0x30] sm:$0xff]  ;;  %v960_v21 = vld [vmem:[%s8478_s1 + $0x38] sm:$0xff] }
  0x11   : > { %714 = vmatpush.bf16.msra.mxu0 %v6036_v4  ;;  %v6014_v8 = vld [vmem:[%s6261_s18] sm:$0xff]  ;;  %v6015_v12 = vld [vmem:[%s6261_s18 + $0x8] sm:$0xff]  ;;  %v6016_v17 = vld [vmem:[%s6261_s18 + $0x10] sm:$0xff]  ;;  %s7926_s23 = scalar_lea.vmem %s8491_s14, %s6121_s21 }
  0x12   : > { %v6017_v22 = vld [vmem:[%s6261_s18 + $0x18] sm:$0xff]  ;;  %v977_v23 = vld [vmem:[%s8478_s1 + $0xc0] sm:$0xff]  ;;  %v975_v24 = vld [vmem:[%s8478_s1 + $0xb0] sm:$0xff] }
  0x13   : > { %6109 = vmatpush.bf16.msra.mxu3 %v6036_v4  ;;  %v978_v25 = vld [vmem:[%s8478_s1 + $0xc8] sm:$0xff]  ;;  %v6018_v26 = vld [vmem:[%s6261_s18 + $0x20] sm:$0xff]  ;;  %v963_v27 = vld [vmem:[%s8478_s1 + $0x50] sm:$0xff] }
  0x14   : > { %v976_v28 = vld [vmem:[%s8478_s1 + $0xb8] sm:$0xff]  ;;  %v979_v29 = vld [vmem:[%s8478_s1 + $0xd0] sm:$0xff]  ;;  %v961_v31 = vld [vmem:[%s8478_s1 + $0x40] sm:$0xff] }
  0x15   : > { %715 = vmatpush.bf16.msra.mxu0 %v6035_v5  ;;  %1001 = vperm.xlu1 %6132, %v954_v6   ;;  %v964_v30 = vld [vmem:[%s8478_s1 + $0x58] sm:$0xff]  ;;  %v6019_v33 = vld [vmem:[%s6261_s18 + $0x28] sm:$0xff]  ;;  %v965_v35 = vld [vmem:[%s8478_s1 + $0x60] sm:$0xff] }
  0x16   : > { %1081 = vperm.xlu0 %6131, %v970_v9   ;;  %v980_v32 = vld [vmem:[%s8478_s1 + $0xd8] sm:$0xff]  ;;  %v962_v34 = vld [vmem:[%s8478_s1 + $0x48] sm:$0xff]  ;;  %v983_v36 = vld [vmem:[%s8478_s1 + $0xf0] sm:$0xff] }
  0x17   : > { %6110 = vmatpush.bf16.msra.mxu3 %v6035_v5  ;;  %1086 = vperm.xlu2 %6133, %v971_v18   ;;  %v966_v37 = vld [vmem:[%s8478_s1 + $0x68] sm:$0xff]  ;;  %v6020_v38 = vld [vmem:[%s6261_s18 + $0x30] sm:$0xff]  ;;  %v984_v39 = vld [vmem:[%s8478_s1 + $0xf8] sm:$0xff] }
  0x18   : > { %v509_v40 = vld [vmem:[%s6261_s18 + $0xa0] sm:$0xf]  ;;  %v986_v44 = vld [vmem:[%s8478_s1 + $0x108] sm:$0xff]  ;;  %v6021_v46 = vld [vmem:[%s6261_s18 + $0x38] sm:$0xff] }
  0x19   : > { %716 = vmatpush.bf16.msra.mxu0 %v6034_v7  ;;  %v599_v41 = vunpack.c.l.b16 %v509_v40  ;;  %v985_v42 = vld [vmem:[%s8478_s1 + $0x100] sm:$0xff]  ;;  %v987_v47 = vld [vmem:[%s8478_s1 + $0x110] sm:$0xff]  ;;  %v6045_v48 = vld [vmem:[%s8482_s5 + $0x38] sm:$0xff] }
  0x1a   : > { %v981_v45 = vld [vmem:[%s8478_s1 + $0xe0] sm:$0xff]  ;;  %v982_v50 = vld [vmem:[%s8478_s1 + $0xe8] sm:$0xff]  ;;  %1488 = vmatpush.bf16.msra.mxu1 %v6045_v48  ;;  %v6044_v51 = vld [vmem:[%s8482_s5 + $0x30] sm:$0xff] }
  0x1b   : > { %6111 = vmatpush.bf16.msra.mxu3 %v6034_v7  ;;  %v620_v43 = vpack.c.b16 %v599_v41, %v599_v41  ;;  %v989_v49 = vld [vmem:[%s8478_s1 + $0x120] sm:$0xff]  ;;  %v990_v52 = vld [vmem:[%s8478_s1 + $0x128] sm:$0xff]  ;;  %v992_v54 = vld [vmem:[%s8478_s1 + $0x138] sm:$0xff] }
  0x1c   : > { %5413 = vmatmul.msk.bf16.vlgmr.msra.gmra.mxu0 %vm645_vm0, %v6014_v8  ;;  %v6043_v53 = vld [vmem:[%s8482_s5 + $0x28] sm:$0xff]  ;;  %v967_v55 = vld [vmem:[%s8478_s1 + $0x70] sm:$0xff]  ;;  %v6395_v56 = vld [vmem:[%s8480_s3] ss:$0 sm:$0xff] }
  0x1d   : > { %1011 = vperm.xlu1 %6132, %v956_v10   ;;  %v6042_v57 = vld [vmem:[%s8482_s5 + $0x20] sm:$0xff]  ;;  %v968_v1 = vld [vmem:[%s8478_s1 + $0x78] sm:$0xff] }
  0x1e   : > { %1091 = vperm.xlu0 %6131, %v972_v11   ;;  %5433 = vmatmul.msk.bf16.vlgmr.msra.gmra.mxu3 %vm645_vm0, %v620_v43  ;;  %v6403_v58 = vld [vmem:[%s8481_s4] ss:$0 sm:$0xff] }
  0x1f   : > { %1016 = vperm.xlu2 %6133, %v957_v20   ;;  %6112 = vmatpush.bf16.msrb.mxu3 %v6045_v48  ;;  %v6022_v59 = vld [vmem:[%s6261_s18 + $0x40] sm:$0xff] }
  0x20   : > { %1489 = vmatpush.bf16.msra.mxu1 %v6044_v51  ;;  %v993_v63 = vld [vmem:[%s8478_s1 + $0x140] sm:$0xff] }
  0x23   : > { %6113 = vmatpush.bf16.msrb.mxu3 %v6044_v51 }
  0x24   : > { %1490 = vmatpush.bf16.msra.mxu1 %v6043_v53 }
  0x25   : > { %1101 = vperm.xlu1 %6132, %v974_v15  }
  0x26   : > { %1096 = vperm.xlu0 %6131, %v973_v13  }
  0x27   : > { %1106 = vperm.xlu2 %6133, %v975_v24   ;;  %6114 = vmatpush.bf16.msrb.mxu3 %v6043_v53 }
  0x28   : > { %1491 = vmatpush.bf16.msra.mxu1 %v6042_v57 }
  0x2b   : > { %6115 = vmatpush.bf16.msrb.mxu3 %v6042_v57 }
  0x2c   : > { %5414 = vmatmul.msk.bf16.gmra.mxu0 %vm645_vm0, %v6015_v12  ;;  %v6023_v12 = vld [vmem:[%s6261_s18 + $0x48] sm:$0xff] }
  0x2d   : > { %1026 = vperm.xlu1 %6132, %v959_v19  }
  0x2e   : > { %1021 = vperm.xlu0 %6131, %v958_v16  }
  0x2f   : > { %1111 = vperm.xlu2 %6133, %v976_v28  }
  0x35   : > { %1031 = vperm.xlu1 %6132, %v960_v21  }
  0x36   : > { %1116 = vperm.xlu0 %6131, %v977_v23   ;;  %v988_v23 = vld [vmem:[%s8478_s1 + $0x118] sm:$0xff] }
  0x37   : > { %1036 = vperm.xlu2 %6133, %v961_v31  }
  0x3c   : > { %5415 = vmatmul.msk.bf16.gmra.mxu0 %vm645_vm0, %v6016_v17 }
  0x3d   : > { %1126 = vperm.xlu1 %6132, %v979_v29   ;;  %v6024_v29 = vld [vmem:[%s6261_s18 + $0x50] sm:$0xff] }
  0x3e   : > { %1121 = vperm.xlu0 %6131, %v978_v25  }
  0x3f   : > { %1041 = vperm.xlu2 %6133, %v962_v34  }
  0x45   : > { %1131 = vperm.xlu1 %6132, %v980_v32  }
  0x46   : > { %1046 = vperm.xlu0 %6131, %v963_v27  }
  0x47   : > { %1136 = vperm.xlu2 %6133, %v981_v45  }
  0x4c   : > { %5416 = vmatmul.msk.bf16.gmra.mxu0 %vm645_vm0, %v6017_v22 }
  0x4d   : > { %1056 = vperm.xlu1 %6132, %v965_v35   ;;  %v991_v35 = vld [vmem:[%s8478_s1 + $0x130] sm:$0xff] }
  0x4e   : > { %1051 = vperm.xlu0 %6131, %v964_v30  }
  0x4f   : > { %1141 = vperm.xlu2 %6133, %v982_v50  }
  0x55   : > { %1061 = vperm.xlu1 %6132, %v966_v37  }
  0x56   : > { %1146 = vperm.xlu0 %6131, %v983_v36  }
  0x57   : > { %1066 = vperm.xlu2 %6133, %v967_v55  }
  0x5c   : > { %5417 = vmatmul.msk.bf16.gmra.mxu0 %vm645_vm0, %v6018_v26 }
  0x5d   : > { %1156 = vperm.xlu1 %6132, %v985_v42  }
  0x5e   : > { %1151 = vperm.xlu0 %6131, %v984_v39  }
  0x5f   : > { %1071 = vperm.xlu2 %6133, %v968_v1  }
  0x65   : > { %1166 = vperm.xlu1 %6132, %v987_v47  }
  0x66   : > { %1161 = vperm.xlu0 %6131, %v986_v44  }
  0x67   : > { %1171 = vperm.xlu2 %6133, %v988_v23  }
  0x69   : > { %v1007_v14 = vpop.permute.xlu2 %1006 }
  0x6c   : > { %5418 = vmatmul.msk.bf16.gmra.mxu0 %vm645_vm0, %v6019_v33 }
  0x6d   : > { %1181 = vperm.xlu1 %6132, %v990_v52  }
  0x6e   : > { %1176 = vperm.xlu0 %6131, %v989_v49   ;;  %v6025_v49 = vld [vmem:[%s6261_s18 + $0x58] sm:$0xff] }
  0x6f   : > { %1186 = vperm.xlu2 %6133, %v991_v35  }
  0x71   : > { %v6434_v24 = vpop.permute.xlu2 %1086 }
  0x75   : > { %1196 = vperm.xlu1 %6132, %v993_v63  }
  0x76   : > { %1191 = vperm.xlu0 %6131, %v992_v54  }
  0x7c   : > { %5419 = vmatmul.msk.bf16.gmra.mxu0 %vm645_vm0, %v6020_v38  ;;  %v1017_v38 = vpop.permute.xlu2 %1016 }
  0x7f   : > { %v997_v62 = vpop.permute.xlu1 %996 }
  0x80   : > { %v6415_v2 = vpop.permute.xlu0 %1076 }
  0x84   : > { %v6453_v47 = vpop.permute.xlu2 %1106 }
  0x87   : > { %v1002_v7 = vpop.permute.xlu1 %1001 }
  0x88   : > { %v6420_v10 = vpop.permute.xlu0 %1081 }
  0x8c   : > { %5420 = vmatmul.msk.bf16.gmra.mxu0 %vm645_vm0, %v6021_v46  ;;  %v6463_v63 = vpop.permute.xlu2 %1111 }
  0x8f   : > { %v1012_v17 = vpop.permute.xlu1 %1011 }
  0x90   : > { %v6427_v21 = vpop.permute.xlu0 %1091 }
  0x97   : > { %v6437_v26 = vpop.permute.xlu1 %1101 }
  0x98   : > { %v6445_v36 = vpop.permute.xlu0 %1096 }
  0x99   : > { %v718_v60 = vpop.f32.mrf.mxu0 }
  0x9a   : > { %v826_v61 = vmul.f32 %v6395_v56, %v718_v60 }
  0x9c   : > { %v871_v0 = vadd.f32 %v6403_v58, %v826_v61  ;;  %5421 = vmatmul.msk.bf16.gmra.mxu0 %vm645_vm0, %v6022_v59 }
  0x9e   : > { %v912_v3 = vmax.f32 %v871_v0, 0.0 }
  0x9f   : > { %v1027_v40 = vpop.permute.xlu1 %1026 }
  0xa0   : > { %v1199_v4 = vmul.f32 %v997_v62, %v912_v3  ;;  %v1022_v45 = vpop.permute.xlu0 %1021 }
  0xa1   : > { %v720_v5 = vpop.f32.mrf.mxu0 }
  0xa2   : > { %1240 = vst.msk [vmem:[#allocation2] sm:$0xff] %vm645_vm0, %v1199_v4  ;;  %v827_v6 = vmul.f32 %v6395_v56, %v720_v5 }
  0xa4   : > { %v872_v8 = vadd.f32 %v6403_v58, %v827_v6  ;;  %v6026_v6 = vld [vmem:[%s6261_s18 + $0x60] sm:$0xff] }
  0xa6   : > { %v913_v9 = vmax.f32 %v872_v8, 0.0 }
  0xa7   : > { %v1032_v50 = vpop.permute.xlu1 %1031 }
  0xa8   : > { %v1200_v11 = vmul.f32 %v1002_v7, %v913_v9  ;;  %v6468_v4 = vpop.permute.xlu0 %1116 }
  0xa9   : > { %v723_v13 = vpop.f32.mrf.mxu0 }
  0xaa   : > { %1241 = vst.msk [vmem:[#allocation2 + $0x8] sm:$0xff] %vm645_vm0, %v1200_v11  ;;  %v828_v15 = vmul.f32 %v6395_v56, %v723_v13 }
  0xac   : > { %v873_v16 = vadd.f32 %v6403_v58, %v828_v15  ;;  %5422 = vmatmul.msk.bf16.gmra.mxu0 %vm645_vm0, %v6023_v12 }
  0xae   : > { %v914_v18 = vmax.f32 %v873_v16, 0.0 }
  0xaf   : > { %v6461_v61 = vpop.permute.xlu1 %1126 }
  0xb0   : > { %v1201_v19 = vmul.f32 %v1007_v14, %v914_v18  ;;  %v1037_v14 = vpop.permute.xlu2 %1036 }
  0xb1   : > { %v725_v20 = vpop.f32.mrf.mxu0  ;;  %v1343_v31 = vld [vmem:[#allocation2 + $0x1] sm:$0xff] }
  0xb2   : > { %1242 = vst.msk [vmem:[#allocation2 + $0x10] sm:$0xff] %vm645_vm0, %v1201_v19  ;;  %v829_v22 = vmul.f32 %v6395_v56, %v725_v20  ;;  %v6478_v19 = vpop.permute.xlu0 %1121 }
  0xb4   : > { %v874_v25 = vadd.f32 %v6403_v58, %v829_v22 }
  0xb6   : > { %v915_v27 = vmax.f32 %v874_v25, 0.0 }
  0xb7   : > { %v6471_v11 = vpop.permute.xlu1 %1131 }
  0xb8   : > { %v1202_v28 = vmul.f32 %v1012_v17, %v915_v27  ;;  %v1042_v25 = vpop.permute.xlu2 %1041 }
  0xb9   : > { %v728_v30 = vpop.f32.mrf.mxu0  ;;  %v1344_v32 = vld [vmem:[#allocation2 + $0x9] sm:$0xff] }
  0xba   : > { %1243 = vst.msk [vmem:[#allocation2 + $0x18] sm:$0xff] %vm645_vm0, %v1202_v28  ;;  %v830_v33 = vmul.f32 %v6395_v56, %v728_v30  ;;  %v1379_v34 = vpack.c.bf16 %v1344_v32, %v1343_v31  ;;  %v1047_v35 = vpop.permute.xlu0 %1046 }
  0xbc   : > { %v875_v37 = vadd.f32 %v6403_v58, %v830_v33  ;;  %5423 = vmatmul.msk.bf16.gmra.mxu0 %vm645_vm0, %v6024_v29  ;;  %5458 = vmatmul.msk.bf16.vlgmr.msra.gmra.mxu1 %vm645_vm0, %v1379_v34  ;;  %v6027_v29 = vld [vmem:[%s6261_s18 + $0x68] sm:$0xff] }
  0xbe   : > { %v916_v39 = vmax.f32 %v875_v37, 0.0 }
  0xbf   : > { %v1057_v22 = vpop.permute.xlu1 %1056 }
  0xc0   : > { %v1203_v41 = vmul.f32 %v1017_v38, %v916_v39 }
  0xc1   : > { %v730_v42 = vpop.f32.mrf.mxu0  ;;  %v1345_v52 = vld [vmem:[#allocation2 + $0x11] sm:$0xff] }
  0xc2   : > { %1244 = vst.msk [vmem:[#allocation2 + $0x20] sm:$0xff] %vm645_vm0, %v1203_v41  ;;  %v831_v43 = vmul.f32 %v6395_v56, %v730_v42 }
  0xc4   : > { %v876_v44 = vadd.f32 %v6403_v58, %v831_v43 }
  0xc6   : > { %v917_v46 = vmax.f32 %v876_v44, 0.0  ;;  %v1052_v44 = vpop.permute.xlu0 %1051 }
  0xc7   : > { %v1062_v38 = vpop.permute.xlu1 %1061 }
  0xc8   : > { %v1204_v48 = vmul.f32 %v1022_v45, %v917_v46 }
  0xc9   : > { %v733_v51 = vpop.f32.mrf.mxu0  ;;  %v1346_v53 = vld [vmem:[#allocation2 + $0x19] sm:$0xff] }
  0xca   : > { %1245 = vst.msk [vmem:[#allocation2 + $0x28] sm:$0xff] %vm645_vm0, %v1204_v48  ;;  %v832_v54 = vmul.f32 %v6395_v56, %v733_v51  ;;  %v1380_v55 = vpack.c.bf16 %v1346_v53, %v1345_v52  ;;  %v6494_v48 = vpop.permute.xlu2 %1136 }
  0xcc   : > { %v877_v57 = vadd.f32 %v6403_v58, %v832_v54  ;;  %5424 = vmatmul.msk.bf16.gmra.mxu0 %vm645_vm0, %v6025_v49  ;;  %5459 = vmatmul.msk.bf16.gmra.mxu1 %vm645_vm0, %v1380_v55 }
  0xce   : > { %v918_v59 = vmax.f32 %v877_v57, 0.0 }
  0xcf   : > { %v6492_v45 = vpop.permute.xlu1 %1156 }
  0xd0   : > { %v1205_v60 = vmul.f32 %v1027_v40, %v918_v59 }
  0xd1   : > { %v735_v62 = vpop.f32.mrf.mxu0  ;;  %v1347_v8 = vld [vmem:[#allocation2 + $0x21] sm:$0xff] }
  0xd2   : > { %1246 = vst.msk [vmem:[#allocation2 + $0x30] sm:$0xff] %vm645_vm0, %v1205_v60  ;;  %v833_v0 = vmul.f32 %v6395_v56, %v735_v62 }
  0xd4   : > { %v878_v1 = vadd.f32 %v6403_v58, %v833_v0 }
  0xd6   : > { %v919_v3 = vmax.f32 %v878_v1, 0.0  ;;  %v6504_v1 = vpop.permute.xlu2 %1141 }
  0xd7   : > { %v6502_v59 = vpop.permute.xlu1 %1166 }
  0xd8   : > { %v1206_v5 = vmul.f32 %v1032_v50, %v919_v3  ;;  %v6028_v50 = vld [vmem:[%s6261_s18 + $0x70] sm:$0xff] }
  0xd9   : > { %v738_v7 = vpop.f32.mrf.mxu0  ;;  %v1348_v9 = vld [vmem:[#allocation2 + $0x29] sm:$0xff] }
  0xda   : > { %1247 = vst.msk [vmem:[#allocation2 + $0x38] sm:$0xff] %vm645_vm0, %v1206_v5  ;;  %v834_v12 = vmul.f32 %v6395_v56, %v738_v7  ;;  %v1381_v13 = vpack.c.bf16 %v1348_v9, %v1347_v8  ;;  %v6041_v5 = vld [vmem:[%s8482_s5 + $0x18] sm:$0xff]  ;;  %v818_v9 = vpop.f32.mrf.mxu3 }
  0xdb   : > { %6116 = vmatpush.bf16.msra.mxu2 %v6041_v5  ;;  %1665 = vmatpush.bf16.msrb.mxu0 %v6041_v5  ;;  %v6031_v5 = vld [vmem:[%s6261_s18 + $0x88] sm:$0xff] }
  0xdc   : > { %v879_v15 = vadd.f32 %v6403_v58, %v834_v12  ;;  %5425 = vmatmul.msk.bf16.gmra.mxu0 %vm645_vm0, %v6026_v6  ;;  %5460 = vmatmul.msk.bf16.gmra.mxu1 %vm645_vm0, %v1381_v13  ;;  %v6040_v12 = vld [vmem:[%s8482_s5 + $0x10] sm:$0xff] }
  0xde   : > { %v920_v16 = vmax.f32 %v879_v15, 0.0  ;;  %v866_v15 = vmul.f32 %v6395_v56, %v818_v9 }
  0xdf   : > { %v6512_v7 = vpop.permute.xlu1 %1181  ;;  %6117 = vmatpush.bf16.msra.mxu2 %v6040_v12  ;;  %1666 = vmatpush.bf16.msrb.mxu0 %v6040_v12 }
  0xe0   : > { %v1207_v17 = vmul.f32 %v1037_v14, %v920_v16  ;;  %v6029_v14 = vld [vmem:[%s6261_s18 + $0x78] sm:$0xff] }
  0xe1   : > { %v740_v18 = vpop.f32.mrf.mxu0  ;;  %v1349_v31 = vld [vmem:[#allocation2 + $0x31] sm:$0xff] }
  0xe2   : > { %1248 = vst.msk [vmem:[#allocation2 + $0x40] sm:$0xff] %vm645_vm0, %v1207_v17  ;;  %v835_v20 = vmul.f32 %v6395_v56, %v740_v18 }
  0xe4   : > { %v880_v23 = vadd.f32 %v6403_v58, %v835_v20 }
  0xe6   : > { %v921_v27 = vmax.f32 %v880_v23, 0.0  ;;  %v911_v23 = vadd.f32 %v6403_v58, %v866_v15  ;;  %v6052_v15 = vld [vmem:[%s8482_s5 + $0x70] sm:$0xff] }
  0xe8   : > { %v1208_v28 = vmul.f32 %v1042_v25, %v921_v27  ;;  %v1067_v25 = vpop.permute.xlu2 %1066  ;;  %v6039_v27 = vld [vmem:[%s8482_s5 + $0x8] sm:$0xff] }
  0xe9   : > { %v743_v30 = vpop.f32.mrf.mxu0  ;;  %v1350_v32 = vld [vmem:[#allocation2 + $0x39] sm:$0xff]  ;;  %6118 = vmatpush.bf16.msra.mxu2 %v6039_v27  ;;  %1667 = vmatpush.bf16.msrb.mxu0 %v6039_v27 }
  0xea   : > { %1249 = vst.msk [vmem:[#allocation2 + $0x48] sm:$0xff] %vm645_vm0, %v1208_v28  ;;  %v836_v33 = vmul.f32 %v6395_v56, %v743_v30  ;;  %v1382_v34 = vpack.c.bf16 %v1350_v32, %v1349_v31  ;;  %v1197_v30 = vpop.permute.xlu1 %1196 }
  0xec   : > { %v881_v37 = vadd.f32 %v6403_v58, %v836_v33  ;;  %5426 = vmatmul.msk.bf16.gmra.mxu0 %vm645_vm0, %v6027_v29  ;;  %5461 = vmatmul.msk.bf16.gmra.mxu1 %vm645_vm0, %v1382_v34  ;;  %v952_v29 = vmax.f32 %v911_v23, 0.0  ;;  %v6038_v33 = vld [vmem:[%s8482_s5] sm:$0xff]  ;;  %v820_v34 = vpop.f32.mrf.mxu3 }
  0xed   : > { %6119 = vmatpush.bf16.msra.mxu2 %v6038_v33  ;;  %1668 = vmatpush.bf16.msrb.mxu0 %v6038_v33 }
  0xee   : > { %v922_v39 = vmax.f32 %v881_v37, 0.0  ;;  %v1239_v32 = vmul.f32 %v1197_v30, %v952_v29  ;;  %v6032_v30 = vld [vmem:[%s6261_s18 + $0x90] sm:$0xff] }
  0xf0   : > { %v1209_v40 = vmul.f32 %v1047_v35, %v922_v39  ;;  %1280 = vst.msk [vmem:[#allocation2 + $0x140] sm:$0xff] %vm645_vm0, %v1239_v32 }
  0xf1   : > { %v745_v41 = vpop.f32.mrf.mxu0  ;;  %v1351_v52 = vld [vmem:[#allocation2 + $0x41] sm:$0xff] }
  0xf2   : > { %1250 = vst.msk [vmem:[#allocation2 + $0x50] sm:$0xff] %vm645_vm0, %v1209_v40  ;;  %v837_v42 = vmul.f32 %v6395_v56, %v745_v41  ;;  %v1072_v40 = vpop.permute.xlu2 %1071 }
  0xf4   : > { %v882_v43 = vadd.f32 %v6403_v58, %v837_v42 }
  0xf6   : > { %v923_v46 = vmax.f32 %v882_v43, 0.0  ;;  %v6030_v43 = vld [vmem:[%s6261_s18 + $0x80] sm:$0xff] }
  0xf8   : > { %v1210_v49 = vmul.f32 %v1052_v44, %v923_v46 }
  0xf9   : > { %v748_v51 = vpop.f32.mrf.mxu0  ;;  %v1352_v53 = vld [vmem:[#allocation2 + $0x49] sm:$0xff] }
  0xfa   : > { %1251 = vst.msk [vmem:[#allocation2 + $0x58] sm:$0xff] %vm645_vm0, %v1210_v49  ;;  %v838_v54 = vmul.f32 %v6395_v56, %v748_v51  ;;  %v1383_v55 = vpack.c.bf16 %v1352_v53, %v1351_v52 }
  0xfc   : > { %v883_v57 = vadd.f32 %v6403_v58, %v838_v54  ;;  %5427 = vmatmul.msk.bf16.gmra.mxu0 %vm645_vm0, %v6028_v50  ;;  %5462 = vmatmul.msk.bf16.gmra.mxu1 %vm645_vm0, %v1383_v55 }
  0xfe   : > { %v924_v60 = vmax.f32 %v883_v57, 0.0 }
 0x100   : > { %v1211_v62 = vmul.f32 %v1057_v22, %v924_v60  ;;  %v6057_v60 = vld [vmem:[%s8482_s5 + $0x98] sm:$0xff] }
 0x101   : > { %v750_v0 = vpop.f32.mrf.mxu0  ;;  %v1353_v17 = vld [vmem:[#allocation2 + $0x51] sm:$0xff]  ;;  %2457 = vmatpush.bf16.msrb.mxu2 %v6057_v60 }
 0x102   : > { %1252 = vst.msk [vmem:[#allocation2 + $0x60] sm:$0xff] %vm645_vm0, %v1211_v62  ;;  %v839_v3 = vmul.f32 %v6395_v56, %v750_v0 }
 0x104   : > { %v884_v6 = vadd.f32 %v6403_v58, %v839_v3 }
 0x106   : > { %v925_v8 = vmax.f32 %v884_v6, 0.0 }
 0x108   : > { %v1212_v13 = vmul.f32 %v1062_v38, %v925_v8 }
 0x109   : > { %v753_v16 = vpop.f32.mrf.mxu0  ;;  %v1354_v18 = vld [vmem:[#allocation2 + $0x59] sm:$0xff] }
 0x10a   : > { %1253 = vst.msk [vmem:[#allocation2 + $0x68] sm:$0xff] %vm645_vm0, %v1212_v13  ;;  %v840_v20 = vmul.f32 %v6395_v56, %v753_v16  ;;  %v1384_v22 = vpack.c.bf16 %v1354_v18, %v1353_v17  ;;  %v6053_v13 = vld [vmem:[%s8482_s5 + $0x78] sm:$0xff] }
 0x10b   : > { %2181 = vmatpush.bf16.msrb.mxu1 %v6053_v13 }
 0x10c   : > { %v885_v28 = vadd.f32 %v6403_v58, %v840_v20  ;;  %5428 = vmatmul.msk.bf16.gmra.mxu0 %vm645_vm0, %v6029_v14  ;;  %5463 = vmatmul.msk.bf16.gmra.mxu1 %vm645_vm0, %v1384_v22 }
 0x10e   : > { %v926_v31 = vmax.f32 %v885_v28, 0.0 }
 0x10f   : > { %2182 = vmatpush.bf16.msrb.mxu1 %v6052_v15  ;;  %v1282_v15 = vld [vmem:[#allocation2 + $0x8] sm:$0xff] }
 0x110   : > { %v1213_v35 = vmul.f32 %v1067_v25, %v926_v31  ;;  %v6051_v25 = vld [vmem:[%s8482_s5 + $0x68] sm:$0xff] }
 0x111   : > { %v755_v37 = vpop.f32.mrf.mxu0  ;;  %v1355_v46 = vld [vmem:[#allocation2 + $0x61] sm:$0xff] }
 0x112   : > { %1254 = vst.msk [vmem:[#allocation2 + $0x70] sm:$0xff] %vm645_vm0, %v1213_v35  ;;  %v841_v38 = vmul.f32 %v6395_v56, %v755_v37 }
 0x113   : > { %2183 = vmatpush.bf16.msrb.mxu1 %v6051_v25 }
 0x114   : > { %v886_v39 = vadd.f32 %v6403_v58, %v841_v38 }
 0x116   : > { %v927_v41 = vmax.f32 %v886_v39, 0.0 }
 0x118   : > { %v1214_v42 = vmul.f32 %v1072_v40, %v927_v41 }
 0x119   : > { %v758_v44 = vpop.f32.mrf.mxu0  ;;  %v1356_v49 = vld [vmem:[#allocation2 + $0x69] sm:$0xff] }
 0x11a   : > { %1255 = vst.msk [vmem:[#allocation2 + $0x78] sm:$0xff] %vm645_vm0, %v1214_v42  ;;  %v842_v50 = vmul.f32 %v6395_v56, %v758_v44  ;;  %v1385_v51 = vpack.c.bf16 %v1356_v49, %v1355_v46  ;;  %v6049_v49 = vld [vmem:[%s8482_s5 + $0x58] sm:$0xff] }
 0x11b   : > { %1905 = vmatpush.bf16.msra.mxu3 %v6049_v49 }
 0x11c   : > { %v887_v52 = vadd.f32 %v6403_v58, %v842_v50  ;;  %5429 = vmatmul.msk.bf16.gmra.mxu0 %vm645_vm0, %v6030_v43  ;;  %5464 = vmatmul.msk.bf16.gmra.mxu1 %vm645_vm0, %v1385_v51 }
 0x11e   : > { %v928_v53 = vmax.f32 %v887_v52, 0.0  ;;  %v6033_v52 = vld [vmem:[%s6261_s18 + $0x98] sm:$0xff] }
 0x120   : > { %v1215_v54 = vmul.f32 %v6415_v2, %v928_v53 }
 0x121   : > { %v760_v55 = vpop.f32.mrf.mxu0  ;;  %v1357_v8 = vld [vmem:[#allocation2 + $0x71] sm:$0xff] }
 0x122   : > { %1256 = vst.msk [vmem:[#allocation2 + $0x80] sm:$0xff] %vm645_vm0, %v1215_v54  ;;  %v843_v57 = vmul.f32 %v6395_v56, %v760_v55 }
 0x124   : > { %v888_v62 = vadd.f32 %v6403_v58, %v843_v57 }
 0x126   : > { %v929_v0 = vmax.f32 %v888_v62, 0.0 }
 0x128   : > { %v1216_v3 = vmul.f32 %v6420_v10, %v929_v0  ;;  %v6056_v0 = vld [vmem:[%s8482_s5 + $0x90] sm:$0xff] }
 0x129   : > { %v763_v6 = vpop.f32.mrf.mxu0  ;;  %v1358_v9 = vld [vmem:[#allocation2 + $0x79] sm:$0xff]  ;;  %2458 = vmatpush.bf16.msrb.mxu2 %v6056_v0 }
 0x12a   : > { %1257 = vst.msk [vmem:[#allocation2 + $0x88] sm:$0xff] %vm645_vm0, %v1216_v3  ;;  %v844_v2 = vmul.f32 %v6395_v56, %v763_v6  ;;  %v1386_v12 = vpack.c.bf16 %v1358_v9, %v1357_v8  ;;  %v1297_v18 = vld [vmem:[#allocation2 + $0x80] sm:$0xff] }
 0x12c   : > { %v889_v14 = vadd.f32 %v6403_v58, %v844_v2  ;;  %5430 = vmatmul.msk.bf16.gmra.mxu0 %vm645_vm0, %v6031_v5  ;;  %5465 = vmatmul.msk.bf16.gmra.mxu1 %vm645_vm0, %v1386_v12 }
 0x12e   : > { %v930_v10 = vmax.f32 %v889_v14, 0.0 }
 0x130   : > { %v1217_v16 = vmul.f32 %v6434_v24, %v930_v10  ;;  %v6050_v24 = vld [vmem:[%s8482_s5 + $0x60] sm:$0xff] }
 0x131   : > { %v765_v17 = vpop.f32.mrf.mxu0  ;;  %v1298_v20 = vld [vmem:[#allocation2 + $0x88] sm:$0xff]  ;;  %2184 = vmatpush.bf16.msrb.mxu1 %v6050_v24  ;;  %v2036_v24 = vld [vmem:[#allocation2 + $0x12] sm:$0xff] }
 0x132   : > { %1258 = vst.msk [vmem:[#allocation2 + $0x90] sm:$0xff] %vm645_vm0, %v1217_v16  ;;  %v845_v22 = vmul.f32 %v6395_v56, %v765_v17  ;;  %v1325_v23 = vpack.c.bf16 %v1298_v20, %v1297_v18  ;;  %v1359_v33 = vld [vmem:[#allocation2 + $0x81] sm:$0xff] }
 0x133   : > { %v2037_v17 = vld [vmem:[#allocation2 + $0x1a] sm:$0xff] }
 0x134   : > { %v890_v27 = vadd.f32 %v6403_v58, %v845_v22  ;;  %5500 = vmatmul.msk.bf16.vlgmr.msra.gmra.mxu2 %vm645_vm0, %v1325_v23  ;;  %v1281_v23 = vld [vmem:[#allocation2] sm:$0xff] }
 0x136   : > { %v931_v28 = vmax.f32 %v890_v27, 0.0 }
 0x138   : > { %v1218_v29 = vmul.f32 %v6427_v21, %v931_v28  ;;  %v1317_v28 = vpack.c.bf16 %v1282_v15, %v1281_v23  ;;  %v2041_v15 = vld [vmem:[#allocation2 + $0x3a] sm:$0xff] }
 0x139   : > { %v768_v31 = vpop.f32.mrf.mxu0  ;;  %v6574_v32 = vpop.f32.mrf.mxu1  ;;  %v1360_v34 = vld [vmem:[#allocation2 + $0x89] sm:$0xff] }
 0x13a   : > { %1259 = vst.msk [vmem:[#allocation2 + $0x98] sm:$0xff] %vm645_vm0, %v1218_v29  ;;  %v846_v35 = vmul.f32 %v6395_v56, %v768_v31  ;;  %v1387_v37 = vpack.c.bf16 %v1360_v34, %v1359_v33  ;;  %v1299_v42 = vld [vmem:[#allocation2 + $0x90] sm:$0xff]  ;;  %v6615_v29 = vpack.c.bf16 %v2037_v17, %v2036_v24 }
 0x13c   : > { %v891_v38 = vadd.f32 %v6403_v58, %v846_v35  ;;  %5431 = vmatmul.msk.bf16.gmra.mxu0 %vm645_vm0, %v6032_v30  ;;  %5466 = vmatmul.msk.bf16.gmra.mxu1 %vm645_vm0, %v1387_v37 }
 0x13e   : > { %v932_v21 = vmax.f32 %v891_v38, 0.0 }
 0x140   : > { %v1219_v39 = vmul.f32 %v6445_v36, %v932_v21 }
 0x141   : > { %v770_v40 = vpop.f32.mrf.mxu0  ;;  %v6582_v41 = vpop.f32.mrf.mxu1  ;;  %v1300_v43 = vld [vmem:[#allocation2 + $0x98] sm:$0xff] }
 0x142   : > { %1260 = vst.msk [vmem:[#allocation2 + $0xa0] sm:$0xff] %vm645_vm0, %v1219_v39  ;;  %v847_v44 = vmul.f32 %v6395_v56, %v770_v40  ;;  %v1326_v46 = vpack.c.bf16 %v1300_v43, %v1299_v42  ;;  %v1361_v55 = vld [vmem:[#allocation2 + $0x91] sm:$0xff] }
 0x143   : > { %v6048_v39 = vld [vmem:[%s8482_s5 + $0x50] sm:$0xff]  ;;  %v1284_v42 = vld [vmem:[#allocation2 + $0x18] sm:$0xff] }
 0x144   : > { %v892_v50 = vadd.f32 %v6403_v58, %v847_v44  ;;  %5501 = vmatmul.msk.bf16.gmra.mxu2 %vm645_vm0, %v1326_v46  ;;  %1906 = vmatpush.bf16.msra.mxu3 %v6048_v39  ;;  %v2039_v44 = vld [vmem:[#allocation2 + $0x2a] sm:$0xff] }
 0x145   : > { %v6047_v39 = vld [vmem:[%s8482_s5 + $0x48] sm:$0xff] }
 0x146   : > { %v933_v36 = vmax.f32 %v892_v50, 0.0 }
 0x148   : > { %v1220_v51 = vmul.f32 %v6437_v26, %v933_v36  ;;  %1907 = vmatpush.bf16.msra.mxu3 %v6047_v39 }
 0x149   : > { %v773_v53 = vpop.f32.mrf.mxu0  ;;  %v6593_v54 = vpop.f32.mrf.mxu1  ;;  %v1362_v57 = vld [vmem:[#allocation2 + $0x99] sm:$0xff] }
 0x14a   : > { %1261 = vst.msk [vmem:[#allocation2 + $0xa8] sm:$0xff] %vm645_vm0, %v1220_v51  ;;  %v848_v60 = vmul.f32 %v6395_v56, %v773_v53  ;;  %v1388_v62 = vpack.c.bf16 %v1362_v57, %v1361_v55  ;;  %v1301_v9 = vld [vmem:[#allocation2 + $0xa0] sm:$0xff]  ;;  %v1283_v51 = vld [vmem:[#allocation2 + $0x10] sm:$0xff] }
 0x14b   : > { %v1318_v55 = vpack.c.bf16 %v1284_v42, %v1283_v51  ;;  %v2038_v57 = vld [vmem:[#allocation2 + $0x22] sm:$0xff]  ;;  %v1287_v51 = vld [vmem:[#allocation2 + $0x30] sm:$0xff] }
 0x14c   : > { %v893_v3 = vadd.f32 %v6403_v58, %v848_v60  ;;  %5432 = vmatmul.msk.bf16.gmra.mxu0 %vm645_vm0, %v6033_v52  ;;  %5467 = vmatmul.msk.bf16.gmra.mxu1 %vm645_vm0, %v1388_v62  ;;  %v6637_v60 = vpack.c.bf16 %v2039_v44, %v2038_v57  ;;  %v2042_v57 = vld [vmem:[#allocation2 + $0x42] sm:$0xff] }
 0x14e   : > { %v934_v26 = vmax.f32 %v893_v3, 0.0 }
 0x150   : > { %v1221_v5 = vmul.f32 %v6453_v47, %v934_v26 }
 0x151   : > { %v775_v6 = vpop.f32.mrf.mxu0  ;;  %v6604_v8 = vpop.f32.mrf.mxu1  ;;  %v1302_v2 = vld [vmem:[#allocation2 + $0xa8] sm:$0xff] }
 0x152   : > { %1262 = vst.msk [vmem:[#allocation2 + $0xb0] sm:$0xff] %vm645_vm0, %v1221_v5  ;;  %v849_v12 = vmul.f32 %v6395_v56, %v775_v6  ;;  %v1327_v13 = vpack.c.bf16 %v1302_v2, %v1301_v9  ;;  %v1363_v20 = vld [vmem:[#allocation2 + $0xa1] sm:$0xff] }
 0x154   : > { %v894_v14 = vadd.f32 %v6403_v58, %v849_v12  ;;  %5502 = vmatmul.msk.bf16.gmra.mxu2 %vm645_vm0, %v1327_v13  ;;  %v6055_v12 = vld [vmem:[%s8482_s5 + $0x88] sm:$0xff] }
 0x155   : > { %2459 = vmatpush.bf16.msrb.mxu2 %v6055_v12 }
 0x156   : > { %v935_v10 = vmax.f32 %v894_v14, 0.0  ;;  %v1286_v14 = vld [vmem:[#allocation2 + $0x28] sm:$0xff] }
 0x158   : > { %v1222_v16 = vmul.f32 %v6463_v63, %v935_v10 }
 0x159   : > { %v778_v47 = vpop.f32.mrf.mxu0  ;;  %v6611_v18 = vpop.f32.mrf.mxu1  ;;  %v1364_v22 = vld [vmem:[#allocation2 + $0xa9] sm:$0xff] }
 0x15a   : > { %1263 = vst.msk [vmem:[#allocation2 + $0xb8] sm:$0xff] %vm645_vm0, %v1222_v16  ;;  %v850_v25 = vmul.f32 %v6395_v56, %v778_v47  ;;  %v1389_v27 = vpack.c.bf16 %v1364_v22, %v1363_v20  ;;  %v1303_v35 = vld [vmem:[#allocation2 + $0xb0] sm:$0xff]  ;;  %v1285_v22 = vld [vmem:[#allocation2 + $0x20] sm:$0xff] }
 0x15c   : > { %v895_v30 = vadd.f32 %v6403_v58, %v850_v25  ;;  %5468 = vmatmul.msk.bf16.vlgmr.msrb.gmra.mxu3 %vm645_vm0, %v1389_v27  ;;  %5492 = vmatmul.msk.bf16.vlgmr.msrb.gmra.mxu0 %vm645_vm0, %v1317_v28  ;;  %v1319_v27 = vpack.c.bf16 %v1286_v14, %v1285_v22  ;;  %v2040_v28 = vld [vmem:[#allocation2 + $0x32] sm:$0xff] }
 0x15d   : > { %5576 = vmatmul.msk.bf16.vlgmr.msrb.gmra.mxu1 %vm645_vm0, %v6615_v29  ;;  %v6659_v24 = vpack.c.bf16 %v2041_v15, %v2040_v28  ;;  %v1290_v15 = vld [vmem:[#allocation2 + $0x48] sm:$0xff] }
 0x15e   : > { %v936_v63 = vmax.f32 %v895_v30, 0.0 }
 0x160   : > { %v1223_v31 = vmul.f32 %v6468_v4, %v936_v63 }
 0x161   : > { %v780_v33 = vpop.f32.mrf.mxu0  ;;  %v6623_v34 = vpop.f32.mrf.mxu1  ;;  %v1304_v37 = vld [vmem:[#allocation2 + $0xb8] sm:$0xff] }
 0x162   : > { %1264 = vst.msk [vmem:[#allocation2 + $0xc0] sm:$0xff] %vm645_vm0, %v1223_v31  ;;  %v851_v38 = vmul.f32 %v6395_v56, %v780_v33  ;;  %v1328_v21 = vpack.c.bf16 %v1304_v37, %v1303_v35  ;;  %v1365_v50 = vld [vmem:[#allocation2 + $0xb1] sm:$0xff] }
 0x164   : > { %v896_v40 = vadd.f32 %v6403_v58, %v851_v38  ;;  %5503 = vmatmul.msk.bf16.gmra.mxu2 %vm645_vm0, %v1328_v21 }
 0x166   : > { %v937_v4 = vmax.f32 %v896_v40, 0.0 }
 0x168   : > { %v1224_v43 = vmul.f32 %v6478_v19, %v937_v4  ;;  %v1288_v4 = vld [vmem:[#allocation2 + $0x38] sm:$0xff] }
 0x169   : > { %v783_v46 = vpop.f32.mrf.mxu0  ;;  %v6633_v49 = vpop.f32.mrf.mxu1  ;;  %v1366_v36 = vld [vmem:[#allocation2 + $0xb9] sm:$0xff] }
 0x16a   : > { %1265 = vst.msk [vmem:[#allocation2 + $0xc8] sm:$0xff] %vm645_vm0, %v1224_v43  ;;  %v852_v52 = vmul.f32 %v6395_v56, %v783_v46  ;;  %v1390_v53 = vpack.c.bf16 %v1366_v36, %v1365_v50  ;;  %v1305_v5 = vld [vmem:[#allocation2 + $0xc0] sm:$0xff]  ;;  %v2043_v43 = vld [vmem:[#allocation2 + $0x4a] sm:$0xff] }
 0x16c   : > { %v897_v62 = vadd.f32 %v6403_v58, %v852_v52  ;;  %5469 = vmatmul.msk.bf16.gmra.mxu3 %vm645_vm0, %v1390_v53  ;;  %5493 = vmatmul.msk.bf16.gmra.mxu0 %vm645_vm0, %v1318_v55  ;;  %v1320_v55 = vpack.c.bf16 %v1288_v4, %v1287_v51  ;;  %v1292_v51 = vld [vmem:[#allocation2 + $0x58] sm:$0xff] }
 0x16d   : > { %5577 = vmatmul.msk.bf16.gmra.mxu1 %vm645_vm0, %v6637_v60 }
 0x16e   : > { %v938_v19 = vmax.f32 %v897_v62, 0.0  ;;  %v6681_v62 = vpack.c.bf16 %v2043_v43, %v2042_v57 }
 0x170   : > { %v1225_v0 = vmul.f32 %v6461_v61, %v938_v19 }
 0x171   : > { %v785_v3 = vpop.f32.mrf.mxu0  ;;  %v6645_v26 = vpop.f32.mrf.mxu1  ;;  %v1306_v6 = vld [vmem:[#allocation2 + $0xc8] sm:$0xff] }
 0x172   : > { %1266 = vst.msk [vmem:[#allocation2 + $0xd0] sm:$0xff] %vm645_vm0, %v1225_v0  ;;  %v853_v9 = vmul.f32 %v6395_v56, %v785_v3  ;;  %v1329_v2 = vpack.c.bf16 %v1306_v6, %v1305_v5  ;;  %v1367_v47 = vld [vmem:[#allocation2 + $0xc1] sm:$0xff] }
 0x174   : > { %v898_v13 = vadd.f32 %v6403_v58, %v853_v9  ;;  %5504 = vmatmul.msk.bf16.gmra.mxu2 %vm645_vm0, %v1329_v2 }
 0x176   : > { %v939_v61 = vmax.f32 %v898_v13, 0.0 }
 0x178   : > { %v1226_v10 = vmul.f32 %v6471_v11, %v939_v61 }
 0x179   : > { %v788_v16 = vpop.f32.mrf.mxu0  ;;  %v6655_v17 = vpop.f32.mrf.mxu1  ;;  %v1368_v20 = vld [vmem:[#allocation2 + $0xc9] sm:$0xff] }
 0x17a   : > { %1267 = vst.msk [vmem:[#allocation2 + $0xd8] sm:$0xff] %vm645_vm0, %v1226_v10  ;;  %v854_v23 = vmul.f32 %v6395_v56, %v788_v16  ;;  %v1391_v25 = vpack.c.bf16 %v1368_v20, %v1367_v47  ;;  %v1307_v35 = vld [vmem:[#allocation2 + $0xd0] sm:$0xff]  ;;  %v2045_v47 = vld [vmem:[#allocation2 + $0x5a] sm:$0xff] }
 0x17c   : > { %v899_v30 = vadd.f32 %v6403_v58, %v854_v23  ;;  %5470 = vmatmul.msk.bf16.gmra.mxu3 %vm645_vm0, %v1391_v25  ;;  %5494 = vmatmul.msk.bf16.gmra.mxu0 %vm645_vm0, %v1319_v27  ;;  %v1289_v27 = vld [vmem:[#allocation2 + $0x40] sm:$0xff] }
 0x17d   : > { %5578 = vmatmul.msk.bf16.gmra.mxu1 %vm645_vm0, %v6659_v24 }
 0x17e   : > { %v940_v11 = vmax.f32 %v899_v30, 0.0 }
 0x180   : > { %v1227_v63 = vmul.f32 %v6494_v48, %v940_v11  ;;  %v1321_v11 = vpack.c.bf16 %v1290_v15, %v1289_v27  ;;  %v6064_v15 = vld [vmem:[%s8482_s5 + $0xd0] sm:$0xff] }
 0x181   : > { %v790_v31 = vpop.f32.mrf.mxu0  ;;  %v6667_v33 = vpop.f32.mrf.mxu1  ;;  %v1308_v37 = vld [vmem:[#allocation2 + $0xd8] sm:$0xff] }
 0x182   : > { %1268 = vst.msk [vmem:[#allocation2 + $0xe0] sm:$0xff] %vm645_vm0, %v1227_v63  ;;  %v855_v38 = vmul.f32 %v6395_v56, %v790_v31  ;;  %v1330_v21 = vpack.c.bf16 %v1308_v37, %v1307_v35  ;;  %v1369_v50 = vld [vmem:[#allocation2 + $0xd1] sm:$0xff]  ;;  %v6054_v31 = vld [vmem:[%s8482_s5 + $0x80] sm:$0xff] }
 0x183   : > { %v2044_v63 = vld [vmem:[#allocation2 + $0x52] sm:$0xff]  ;;  %2460 = vmatpush.bf16.msrb.mxu2 %v6054_v31 }
 0x184   : > { %v900_v40 = vadd.f32 %v6403_v58, %v855_v38  ;;  %5505 = vmatmul.msk.bf16.gmra.mxu2 %vm645_vm0, %v1330_v21  ;;  %v6701_v35 = vpack.c.bf16 %v2045_v47, %v2044_v63  ;;  %v1172_v63 = vpop.permute.xlu2 %1171 }
 0x186   : > { %v941_v48 = vmax.f32 %v900_v40, 0.0 }
 0x188   : > { %v1228_v42 = vmul.f32 %v6504_v1, %v941_v48  ;;  %v1147_v1 = vpop.permute.xlu0 %1146 }
 0x189   : > { %v793_v44 = vpop.f32.mrf.mxu0  ;;  %v6677_v46 = vpop.f32.mrf.mxu1  ;;  %v1370_v36 = vld [vmem:[#allocation2 + $0xd9] sm:$0xff] }
 0x18a   : > { %1269 = vst.msk [vmem:[#allocation2 + $0xe8] sm:$0xff] %vm645_vm0, %v1228_v42  ;;  %v856_v52 = vmul.f32 %v6395_v56, %v793_v44  ;;  %v1392_v53 = vpack.c.bf16 %v1370_v36, %v1369_v50  ;;  %v1309_v9 = vld [vmem:[#allocation2 + $0xe0] sm:$0xff] }
 0x18b   : > { %v6046_v44 = vld [vmem:[%s8482_s5 + $0x40] sm:$0xff] }
 0x18c   : > { %v901_v19 = vadd.f32 %v6403_v58, %v856_v52  ;;  %5471 = vmatmul.msk.bf16.gmra.mxu3 %vm645_vm0, %v1392_v53  ;;  %5495 = vmatmul.msk.bf16.gmra.mxu0 %vm645_vm0, %v1320_v55  ;;  %v2047_v53 = vld [vmem:[#allocation2 + $0x6a] sm:$0xff] }
 0x18d   : > { %5579 = vmatmul.msk.bf16.gmra.mxu1 %vm645_vm0, %v6681_v62  ;;  %1908 = vmatpush.bf16.msra.mxu3 %v6046_v44 }
 0x18e   : > { %v942_v0 = vmax.f32 %v901_v19, 0.0 }
 0x190   : > { %v1229_v3 = vmul.f32 %v1147_v1, %v942_v0  ;;  %v1152_v10 = vpop.permute.xlu0 %1151  ;;  %v1291_v0 = vld [vmem:[#allocation2 + $0x50] sm:$0xff] }
 0x191   : > { %v795_v5 = vpop.f32.mrf.mxu0  ;;  %v6688_v6 = vpop.f32.mrf.mxu1  ;;  %v1310_v2 = vld [vmem:[#allocation2 + $0xe8] sm:$0xff] }
 0x192   : > { %1270 = vst.msk [vmem:[#allocation2 + $0xf0] sm:$0xff] %vm645_vm0, %v1229_v3  ;;  %v857_v12 = vmul.f32 %v6395_v56, %v795_v5  ;;  %v1331_v13 = vpack.c.bf16 %v1310_v2, %v1309_v9  ;;  %v1371_v23 = vld [vmem:[#allocation2 + $0xe1] sm:$0xff]  ;;  %v1322_v9 = vpack.c.bf16 %v1292_v51, %v1291_v0 }
 0x193   : > { %v2046_v2 = vld [vmem:[#allocation2 + $0x62] sm:$0xff] }
 0x194   : > { %v902_v61 = vadd.f32 %v6403_v58, %v857_v12  ;;  %5506 = vmatmul.msk.bf16.gmra.mxu2 %vm645_vm0, %v1331_v13  ;;  %v6722_v12 = vpack.c.bf16 %v2047_v53, %v2046_v2 }
 0x196   : > { %v943_v14 = vmax.f32 %v902_v61, 0.0  ;;  %v6065_v61 = vld [vmem:[%s8482_s5 + $0xd8] sm:$0xff] }
 0x197   : > { %3009 = vmatpush.bf16.msra.mxu0 %v6065_v61 }
 0x198   : > { %v1230_v16 = vmul.f32 %v1152_v10, %v943_v14  ;;  %v1162_v36 = vpop.permute.xlu0 %1161 }
 0x199   : > { %v798_v20 = vpop.f32.mrf.mxu0  ;;  %v6694_v22 = vpop.f32.mrf.mxu1  ;;  %v1372_v25 = vld [vmem:[#allocation2 + $0xe9] sm:$0xff] }
 0x19a   : > { %1271 = vst.msk [vmem:[#allocation2 + $0xf8] sm:$0xff] %vm645_vm0, %v1230_v16  ;;  %v858_v28 = vmul.f32 %v6395_v56, %v798_v20  ;;  %v1393_v30 = vpack.c.bf16 %v1372_v25, %v1371_v23  ;;  %v1311_v48 = vld [vmem:[#allocation2 + $0xf0] sm:$0xff] }
 0x19b   : > { %3010 = vmatpush.bf16.msra.mxu0 %v6064_v15 }
 0x19c   : > { %v903_v37 = vadd.f32 %v6403_v58, %v858_v28  ;;  %5472 = vmatmul.msk.bf16.gmra.mxu3 %vm645_vm0, %v1393_v30  ;;  %5496 = vmatmul.msk.bf16.gmra.mxu0 %vm645_vm0, %v1321_v11  ;;  %v1294_v11 = vld [vmem:[#allocation2 + $0x68] sm:$0xff] }
 0x19d   : > { %5580 = vmatmul.msk.bf16.gmra.mxu1 %vm645_vm0, %v6701_v35 }
 0x19e   : > { %v944_v38 = vmax.f32 %v903_v37, 0.0 }
 0x1a0   : > { %v1231_v21 = vmul.f32 %v6492_v45, %v944_v38  ;;  %v1293_v38 = vld [vmem:[#allocation2 + $0x60] sm:$0xff]  ;;  %v1177_v0 = vpop.permute.xlu0 %1176 }
 0x1a1   : > { %v800_v39 = vpop.f32.mrf.mxu0  ;;  %v6709_v40 = vpop.f32.mrf.mxu1  ;;  %v1312_v4 = vld [vmem:[#allocation2 + $0xf8] sm:$0xff] }
 0x1a2   : > { %1272 = vst.msk [vmem:[#allocation2 + $0x100] sm:$0xff] %vm645_vm0, %v1231_v21  ;;  %v859_v42 = vmul.f32 %v6395_v56, %v800_v39  ;;  %v1332_v43 = vpack.c.bf16 %v1312_v4, %v1311_v48  ;;  %v1373_v19 = vld [vmem:[#allocation2 + $0xf1] sm:$0xff]  ;;  %v2049_v21 = vld [vmem:[#allocation2 + $0x7a] sm:$0xff] }
 0x1a4   : > { %v904_v50 = vadd.f32 %v6403_v58, %v859_v42  ;;  %5507 = vmatmul.msk.bf16.gmra.mxu2 %vm645_vm0, %v1332_v43  ;;  %v1323_v42 = vpack.c.bf16 %v1294_v11, %v1293_v38  ;;  %v6138_v43 = vld [vmem:[%s8480_s3] ss:$0 sm:$0xff] }
 0x1a6   : > { %v945_v45 = vmax.f32 %v904_v50, 0.0 }
 0x1a8   : > { %v1232_v52 = vmul.f32 %v1162_v36, %v945_v45  ;;  %v2048_v36 = vld [vmem:[#allocation2 + $0x72] sm:$0xff] }
 0x1a9   : > { %v803_v55 = vpop.f32.mrf.mxu0  ;;  %v6718_v57 = vpop.f32.mrf.mxu1  ;;  %v1374_v1 = vld [vmem:[#allocation2 + $0xf9] sm:$0xff]  ;;  %v6754_v51 = vpack.c.bf16 %v2049_v21, %v2048_v36 }
 0x1aa   : > { %8495 = vst [vmem:[#allocation3_spill] sm:$0xff] %v6718_v57  ;;  %v860_v3 = vmul.f32 %v6395_v56, %v803_v55  ;;  %v1394_v5 = vpack.c.bf16 %v1374_v1, %v1373_v19  ;;  %v1313_v20 = vld [vmem:[#allocation2 + $0x100] sm:$0xff]  ;;  %v6061_v55 = vld [vmem:[%s8482_s5 + $0xb8] sm:$0xff] }
 0x1ab   : > { %1273 = vst.msk [vmem:[#allocation2 + $0x108] sm:$0xff] %vm645_vm0, %v1232_v52  ;;  %v6139_v52 = vld [vmem:[%s8481_s4] ss:$0 sm:$0xff]  ;;  %v6073_v19 = vld [vmem:[%s8482_s5 + $0x118] sm:$0xff]  ;;  %2733 = vmatpush.bf16.msrb.mxu3 %v6061_v55 }
 0x1ac   : > { %v905_v13 = vadd.f32 %v6403_v58, %v860_v3  ;;  %5473 = vmatmul.msk.bf16.gmra.mxu3 %vm645_vm0, %v1394_v5  ;;  %5497 = vmatmul.msk.bf16.gmra.mxu0 %vm645_vm0, %v1322_v9 }
 0x1ad   : > { %5581 = vmatmul.msk.bf16.gmra.mxu1 %vm645_vm0, %v6722_v12  ;;  %3561 = vmatpush.bf16.msra.mxu2 %v6073_v19  ;;  %v2312_v19 = vld [vmem:[#allocation2 + $0x13] sm:$0xff] }
 0x1ae   : > { %v946_v14 = vmax.f32 %v905_v13, 0.0 }
 0x1b0   : > { %v1233_v10 = vmul.f32 %v6502_v59, %v946_v14  ;;  %v6063_v59 = vld [vmem:[%s8482_s5 + $0xc8] sm:$0xff] }
 0x1b1   : > { %v805_v16 = vpop.f32.mrf.mxu0  ;;  %v6736_v47 = vpop.f32.mrf.mxu1  ;;  %3011 = vmatpush.bf16.msra.mxu0 %v6063_v59  ;;  %v2051_v59 = vld [vmem:[#allocation2 + $0x8a] sm:$0xff] }
 0x1b2   : > { %8496 = vst [vmem:[#allocation4_spill] sm:$0xff] %v6736_v47  ;;  %v1314_v23 = vld [vmem:[#allocation2 + $0x108] sm:$0xff]  ;;  %v861_v25 = vmul.f32 %v6395_v56, %v805_v16  ;;  %v6062_v56 = vld [vmem:[%s8482_s5 + $0xc0] sm:$0xff]  ;;  %v6069_v16 = vld [vmem:[%s8482_s5 + $0xf8] sm:$0xff] }
 0x1b3   : > { %1274 = vst.msk [vmem:[#allocation2 + $0x110] sm:$0xff] %vm645_vm0, %v1233_v10  ;;  %v1333_v27 = vpack.c.bf16 %v1314_v23, %v1313_v20  ;;  %v1375_v48 = vld [vmem:[#allocation2 + $0x101] sm:$0xff]  ;;  %3285 = vmatpush.bf16.msra.mxu1 %v6069_v16 }
 0x1b4   : > { %v906_v28 = vadd.f32 %v6403_v58, %v861_v25  ;;  %v2053_v16 = vld [vmem:[#allocation2 + $0x9a] sm:$0xff]  ;;  %v2066_v47 = vld [vmem:[#allocation2 + $0x102] sm:$0xff] }
 0x1b5   : > { %5508 = vmatmul.msk.bf16.gmra.mxu2 %vm645_vm0, %v1333_v27  ;;  %3012 = vmatpush.bf16.msra.mxu0 %v6062_v56  ;;  %v1296_v27 = vld [vmem:[#allocation2 + $0x78] sm:$0xff] }
 0x1b6   : > { %v947_v30 = vmax.f32 %v906_v28, 0.0 }
 0x1b7   : > { %v1710_v31 = vpop.f32.mrf.mxu2 }
 0x1b8   : > { %v1234_v37 = vmul.f32 %v1172_v63, %v947_v30 }
 0x1b9   : > { %v808_v39 = vpop.f32.mrf.mxu0  ;;  %v1533_v58 = vpop.f32.mrf.mxu1 }
 0x1ba   : > { %v1376_v4 = vld [vmem:[#allocation2 + $0x109] sm:$0xff]  ;;  %1275 = vst.msk [vmem:[#allocation2 + $0x118] sm:$0xff] %vm645_vm0, %v1234_v37  ;;  %v862_v44 = vmul.f32 %v6138_v43, %v808_v39  ;;  %v6752_v50 = vadd.f32 %v1710_v31, %v1533_v58 }
 0x1bb   : > { %v1395_v45 = vpack.c.bf16 %v1376_v4, %v1375_v48  ;;  %v1315_v13 = vld [vmem:[#allocation2 + $0x110] sm:$0xff]  ;;  %v2050_v58 = vld [vmem:[#allocation2 + $0x82] sm:$0xff] }
 0x1bc   : > { %8497 = vst [vmem:[#allocation5_spill] sm:$0xff] %v6752_v50  ;;  %v907_v53 = vadd.f32 %v6139_v52, %v862_v44  ;;  %5498 = vmatmul.msk.bf16.gmra.mxu0 %vm645_vm0, %v1323_v42  ;;  %v1295_v37 = vld [vmem:[#allocation2 + $0x70] sm:$0xff]  ;;  %v6780_v48 = vpack.c.bf16 %v2051_v59, %v2050_v58  ;;  %v1187_v42 = vpop.permute.xlu2 %1186 }
 0x1bd   : > { %5474 = vmatmul.msk.bf16.gmra.mxu3 %vm645_vm0, %v1395_v45  ;;  %5582 = vmatmul.msk.bf16.gmra.mxu1 %vm645_vm0, %v6754_v51  ;;  %v1324_v39 = vpack.c.bf16 %v1296_v27, %v1295_v37  ;;  %v2313_v45 = vld [vmem:[#allocation2 + $0x1b] sm:$0xff]  ;;  %v2052_v27 = vld [vmem:[#allocation2 + $0x92] sm:$0xff]  ;;  %v2314_v37 = vld [vmem:[#allocation2 + $0x23] sm:$0xff] }
 0x1be   : > { %v948_v1 = vmax.f32 %v907_v53, 0.0  ;;  %v6793_v59 = vpack.c.bf16 %v2053_v16, %v2052_v27  ;;  %v2869_v16 = vld [vmem:[#allocation2 + $0x4c] sm:$0xff] }
 0x1bf   : > { %v1712_v3 = vpop.f32.mrf.mxu2 }
 0x1c0   : > { %v1235_v5 = vmul.f32 %v1177_v0, %v948_v1 }
 0x1c1   : > { %v810_v9 = vpop.f32.mrf.mxu0  ;;  %v1535_v2 = vpop.f32.mrf.mxu1  ;;  %v1316_v61 = vld [vmem:[#allocation2 + $0x118] sm:$0xff] }
 0x1c2   : > { %1276 = vst.msk [vmem:[#allocation2 + $0x120] sm:$0xff] %vm645_vm0, %v1235_v5  ;;  %v863_v14 = vmul.f32 %v6138_v43, %v810_v9  ;;  %v6770_v10 = vadd.f32 %v1712_v3, %v1535_v2  ;;  %v1334_v15 = vpack.c.bf16 %v1316_v61, %v1315_v13  ;;  %v1377_v63 = vld [vmem:[#allocation2 + $0x111] sm:$0xff]  ;;  %v2348_v3 = vpack.c.bf16 %v2313_v45, %v2312_v19  ;;  %v1192_v2 = vpop.permute.xlu0 %1191 }
 0x1c3   : > { %v1761_v61 = vld [vmem:[#allocation2 + $0xa] sm:$0xff]  ;;  %v2866_v45 = vld [vmem:[#allocation2 + $0x34] sm:$0xff] }
 0x1c4   : > { %8498 = vst [vmem:[#allocation6_spill] sm:$0xff] %v6770_v10  ;;  %v908_v20 = vadd.f32 %v6139_v52, %v863_v14  ;;  %v2865_v14 = vld [vmem:[#allocation2 + $0x2c] sm:$0xff]  ;;  %v2878_v10 = vld [vmem:[#allocation2 + $0x94] sm:$0xff] }
 0x1c5   : > { %5509 = vmatmul.msk.bf16.gmra.mxu2 %vm645_vm0, %v1334_v15 }
 0x1c6   : > { %v949_v23 = vmax.f32 %v908_v20, 0.0  ;;  %v1760_v20 = vld [vmem:[#allocation2 + $0x2] sm:$0xff] }
 0x1c7   : > { %v1715_v25 = vpop.f32.mrf.mxu2 }
 0x1c8   : > { %v1236_v28 = vmul.f32 %v6512_v7, %v949_v23  ;;  %v2864_v23 = vld [vmem:[#allocation2 + $0x24] sm:$0xff] }
 0x1c9   : > { %v813_v30 = vpop.f32.mrf.mxu0  ;;  %v1538_v11 = vpop.f32.mrf.mxu1  ;;  %v1378_v31 = vld [vmem:[#allocation2 + $0x119] sm:$0xff] }
 0x1ca   : > { %1277 = vst.msk [vmem:[#allocation2 + $0x128] sm:$0xff] %vm645_vm0, %v1236_v28  ;;  %v864_v38 = vmul.f32 %v6138_v43, %v813_v30  ;;  %v6778_v21 = vadd.f32 %v1715_v25, %v1538_v11  ;;  %v1396_v56 = vpack.c.bf16 %v1378_v31, %v1377_v63  ;;  %v2900_v28 = vpack.c.bf16 %v2865_v14, %v2864_v23  ;;  %v2315_v63 = vld [vmem:[#allocation2 + $0x2b] sm:$0xff]  ;;  %v2057_v23 = vld [vmem:[#allocation2 + $0xba] sm:$0xff] }
 0x1cc   : > { %8499 = vst [vmem:[#allocation7_spill] sm:$0xff] %v6778_v21  ;;  %v909_v4 = vadd.f32 %v6139_v52, %v864_v38  ;;  %5499 = vmatmul.msk.bf16.gmra.mxu0 %vm645_vm0, %v1324_v39  ;;  %v2064_v21 = vld [vmem:[#allocation2 + $0xf2] sm:$0xff] }
 0x1cd   : > { %5475 = vmatmul.msk.bf16.gmra.mxu3 %vm645_vm0, %v1396_v56  ;;  %5583 = vmatmul.msk.bf16.gmra.mxu1 %vm645_vm0, %v6780_v48  ;;  %v2349_v56 = vpack.c.bf16 %v2315_v63, %v2314_v37 }
 0x1ce   : > { %v950_v7 = vmax.f32 %v909_v4, 0.0  ;;  %v2867_v4 = vld [vmem:[#allocation2 + $0x3c] sm:$0xff] }
 0x1cf   : > { %v1717_v44 = vpop.f32.mrf.mxu2 }
 0x1d0   : > { %v1237_v36 = vmul.f32 %v1187_v42, %v950_v7 }
 0x1d1   : > { %v815_v53 = vpop.f32.mrf.mxu0  ;;  %v1540_v55 = vpop.f32.mrf.mxu1 }
 0x1d2   : > { %1278 = vst.msk [vmem:[#allocation2 + $0x130] sm:$0xff] %vm645_vm0, %v1237_v36  ;;  %v865_v1 = vmul.f32 %v6138_v43, %v815_v53  ;;  %v6787_v0 = vadd.f32 %v1717_v44, %v1540_v55  ;;  %v1796_v43 = vpack.c.bf16 %v1761_v61, %v1760_v20  ;;  %v2055_v44 = vld [vmem:[#allocation2 + $0xaa] sm:$0xff]  ;;  %v2054_v53 = vld [vmem:[#allocation2 + $0xa2] sm:$0xff]  ;;  %v2901_v55 = vpack.c.bf16 %v2867_v4, %v2866_v45 }
 0x1d3   : > { %v6812_v19 = vpack.c.bf16 %v2055_v44, %v2054_v53  ;;  %v2318_v4 = vld [vmem:[#allocation2 + $0x43] sm:$0xff]  ;;  %v6072_v53 = vld [vmem:[%s8482_s5 + $0x110] sm:$0xff] }
 0x1d4   : > { %8500 = vst [vmem:[#allocation8_spill] sm:$0xff] %v6787_v0  ;;  %v910_v5 = vadd.f32 %v6139_v52, %v865_v1  ;;  %3562 = vmatpush.bf16.msra.mxu2 %v6072_v53 }
 0x1d5   : > { %5618 = vmatmul.msk.bf16.vlgmr.msrb.gmra.mxu2 %vm645_vm0, %v2348_v3 }
 0x1d6   : > { %v951_v9 = vmax.f32 %v910_v5, 0.0  ;;  %v2317_v5 = vld [vmem:[#allocation2 + $0x3b] sm:$0xff] }
 0x1d7   : > { %v1720_v13 = vpop.f32.mrf.mxu2 }
 0x1d8   : > { %v1238_v15 = vmul.f32 %v1192_v2, %v951_v9  ;;  %v2316_v2 = vld [vmem:[#allocation2 + $0x33] sm:$0xff] }
 0x1d9   : > { %v6799_v52 = vpop.f32.mrf.mxu0  ;;  %v2350_v14 = vpack.c.bf16 %v2317_v5, %v2316_v2  ;;  %v2871_v5 = vld [vmem:[#allocation2 + $0x5c] sm:$0xff]  ;;  %v2071_v57 = vld [vmem:[#allocation2 + $0x12a] sm:$0xff] }
 0x1da   : > { %1279 = vst.msk [vmem:[#allocation2 + $0x138] sm:$0xff] %vm645_vm0, %v1238_v15  ;;  %v6791_v25 = vpop.f32.mrf.mxu1 }
 0x1dc   : > { %5702 = vmatmul.msk.bf16.vlgmr.msra.gmra.mxu0 %vm645_vm0, %v2900_v28  ;;  %v2056_v28 = vld [vmem:[#allocation2 + $0xb2] sm:$0xff] }
 0x1dd   : > { %5534 = vmatmul.msk.bf16.vlgmr.msra.gmra.mxu3 %vm645_vm0, %v1796_v43  ;;  %5584 = vmatmul.msk.bf16.gmra.mxu1 %vm645_vm0, %v6793_v59  ;;  %v2868_v43 = vld [vmem:[#allocation2 + $0x44] sm:$0xff] }
 0x1df   : > { %v1543_v30 = vpop.f32.mrf.mxu3  ;;  %v1722_v11 = vpop.f32.mrf.mxu2 }
 0x1e0   : > { %v6801_v31 = vadd.f32 %v1720_v13, %v1543_v30  ;;  %v2902_v30 = vpack.c.bf16 %v2869_v16, %v2868_v43  ;;  %v2058_v16 = vld [vmem:[#allocation2 + $0xc2] sm:$0xff]  ;;  %v6068_v43 = vld [vmem:[%s8482_s5 + $0xf0] sm:$0xff] }
 0x1e1   : > { %v6806_v7 = vpop.f32.mrf.mxu0  ;;  %3286 = vmatpush.bf16.msra.mxu1 %v6068_v43 }
 0x1e2   : > { %8501 = vst [vmem:[#allocation9_spill] sm:$0xff] %v6801_v31  ;;  %v6803_v38 = vpop.f32.mrf.mxu1  ;;  %v2876_v31 = vld [vmem:[#allocation2 + $0x84] sm:$0xff] }
 0x1e5   : > { %5619 = vmatmul.msk.bf16.gmra.mxu2 %vm645_vm0, %v2349_v56 }
 0x1e7   : > { %v1545_v39 = vpop.f32.mrf.mxu3  ;;  %v1725_v58 = vpop.f32.mrf.mxu2 }
 0x1e8   : > { %v6808_v42 = vadd.f32 %v1722_v11, %v1545_v39  ;;  %v6830_v11 = vpack.c.bf16 %v2057_v23, %v2056_v28  ;;  %v2319_v39 = vld [vmem:[#allocation2 + $0x4b] sm:$0xff] }
 0x1e9   : > { %v6821_v13 = vpop.f32.mrf.mxu0  ;;  %v2351_v45 = vpack.c.bf16 %v2319_v39, %v2318_v4 }
 0x1ea   : > { %8502 = vst [vmem:[#allocation10_spill] sm:$0xff] %v6808_v42  ;;  %v6810_v36 = vpop.f32.mrf.mxu1  ;;  %v2065_v42 = vld [vmem:[#allocation2 + $0xfa] sm:$0xff] }
 0x1ec   : > { %5703 = vmatmul.msk.bf16.gmra.mxu0 %vm645_vm0, %v2901_v55 }
 0x1ed   : > { %5535 = vmatmul.msk.bf16.gmra.mxu3 %vm645_vm0, %v6615_v29  ;;  %5585 = vmatmul.msk.bf16.gmra.mxu1 %vm645_vm0, %v6812_v19 }
 0x1ef   : > { %v1548_v1 = vpop.f32.mrf.mxu3  ;;  %v1727_v3 = vpop.f32.mrf.mxu2 }
 0x1f0   : > { %v6819_v9 = vadd.f32 %v1725_v58, %v1548_v1 }
 0x1f1   : > { %v6832_v63 = vpop.f32.mrf.mxu0 }
 0x1f2   : > { %8503 = vst [vmem:[#allocation11_spill] sm:$0xff] %v6819_v9  ;;  %v6823_v61 = vpop.f32.mrf.mxu1  ;;  %v2062_v9 = vld [vmem:[#allocation2 + $0xe2] sm:$0xff] }
 0x1f5   : > { %5620 = vmatmul.msk.bf16.gmra.mxu2 %vm645_vm0, %v2350_v14  ;;  %v2059_v14 = vld [vmem:[#allocation2 + $0xca] sm:$0xff] }
 0x1f6   : > { %v6859_v28 = vpack.c.bf16 %v2059_v14, %v2058_v16  ;;  %v2872_v16 = vld [vmem:[#allocation2 + $0x64] sm:$0xff] }
 0x1f7   : > { %v1550_v15 = vpop.f32.mrf.mxu3  ;;  %v1730_v29 = vpop.f32.mrf.mxu2 }
 0x1f8   : > { %v6826_v20 = vadd.f32 %v1727_v3, %v1550_v15  ;;  %v2870_v15 = vld [vmem:[#allocation2 + $0x54] sm:$0xff] }
 0x1f9   : > { %v6850_v55 = vpop.f32.mrf.mxu0  ;;  %v2903_v23 = vpack.c.bf16 %v2871_v5, %v2870_v15  ;;  %v2873_v5 = vld [vmem:[#allocation2 + $0x6c] sm:$0xff]  ;;  %v2061_v15 = vld [vmem:[#allocation2 + $0xda] sm:$0xff] }
 0x1fa   : > { %8504 = vst [vmem:[#allocation12_spill] sm:$0xff] %v6826_v20  ;;  %v6828_v27 = vpop.f32.mrf.mxu1 }
 0x1fc   : > { %5704 = vmatmul.msk.bf16.gmra.mxu0 %vm645_vm0, %v2902_v30 }
 0x1fd   : > { %5536 = vmatmul.msk.bf16.gmra.mxu3 %vm645_vm0, %v6637_v60  ;;  %5586 = vmatmul.msk.bf16.gmra.mxu1 %vm645_vm0, %v6830_v11  ;;  %v6060_v60 = vld [vmem:[%s8482_s5 + $0xb0] sm:$0xff] }
 0x1fe   : > { %2734 = vmatpush.bf16.msrb.mxu3 %v6060_v60 }
 0x1ff   : > { %v1553_v37 = vpop.f32.mrf.mxu3  ;;  %v1732_v56 = vpop.f32.mrf.mxu2 }
 0x200   : > { %v6839_v58 = vadd.f32 %v1730_v29, %v1553_v37 }
 0x201   : > { %v6866_v39 = vpop.f32.mrf.mxu0 }
 0x202   : > { %8505 = vst [vmem:[#allocation13_spill] sm:$0xff] %v6839_v58  ;;  %v6841_v44 = vpop.f32.mrf.mxu1  ;;  %v2874_v58 = vld [vmem:[#allocation2 + $0x74] sm:$0xff] }
 0x205   : > { %5621 = vmatmul.msk.bf16.gmra.mxu2 %vm645_vm0, %v2351_v45  ;;  %v2320_v45 = vld [vmem:[#allocation2 + $0x53] sm:$0xff] }
 0x207   : > { %v1555_v1 = vpop.f32.mrf.mxu3  ;;  %v1735_v3 = vpop.f32.mrf.mxu2 }
 0x208   : > { %v6852_v2 = vadd.f32 %v1732_v56, %v1555_v1  ;;  %v2321_v56 = vld [vmem:[#allocation2 + $0x5b] sm:$0xff] }
 0x209   : > { %v2352_v53 = vpack.c.bf16 %v2321_v56, %v2320_v45  ;;  %v2323_v45 = vld [vmem:[#allocation2 + $0x6b] sm:$0xff] }
 0x20a   : > { %8506 = vst [vmem:[#allocation14_spill] sm:$0xff] %v6852_v2  ;;  %v6854_v29 = vpop.f32.mrf.mxu1  ;;  %v2060_v2 = vld [vmem:[#allocation2 + $0xd2] sm:$0xff] }
 0x20c   : > { %5705 = vmatmul.msk.bf16.gmra.mxu0 %vm645_vm0, %v2903_v23  ;;  %v6875_v23 = vpop.f32.mrf.mxu0 }
 0x20d   : > { %5537 = vmatmul.msk.bf16.gmra.mxu3 %vm645_vm0, %v6659_v24  ;;  %5587 = vmatmul.msk.bf16.gmra.mxu1 %vm645_vm0, %v6859_v28 }
 0x20f   : > { %v1558_v30 = vpop.f32.mrf.mxu3  ;;  %v1737_v37 = vpop.f32.mrf.mxu2 }
 0x210   : > { %v6868_v4 = vadd.f32 %v1735_v3, %v1558_v30  ;;  %v2904_v3 = vpack.c.bf16 %v2873_v5, %v2872_v16  ;;  %v6879_v30 = vpack.c.bf16 %v2061_v15, %v2060_v2  ;;  %v2875_v15 = vld [vmem:[#allocation2 + $0x7c] sm:$0xff] }
 0x212   : > { %8507 = vst [vmem:[#allocation15_spill] sm:$0xff] %v6868_v4  ;;  %v6870_v60 = vpop.f32.mrf.mxu1 }
 0x214   : > { %v6890_v5 = vpop.f32.mrf.mxu0 }
 0x215   : > { %5622 = vmatmul.msk.bf16.gmra.mxu2 %vm645_vm0, %v2352_v53 }
 0x217   : > { %v1560_v24 = vpop.f32.mrf.mxu3  ;;  %v1740_v1 = vpop.f32.mrf.mxu2 }
 0x218   : > { %v6873_v14 = vadd.f32 %v1737_v37, %v1560_v24  ;;  %v2322_v24 = vld [vmem:[#allocation2 + $0x63] sm:$0xff] }
 0x219   : > { %v2353_v4 = vpack.c.bf16 %v2323_v45, %v2322_v24  ;;  %v2325_v24 = vld [vmem:[#allocation2 + $0x7b] sm:$0xff] }
 0x21a   : > { %8508 = vst [vmem:[#allocation16_spill] sm:$0xff] %v6873_v14  ;;  %v6877_v43 = vpop.f32.mrf.mxu1 }
 0x21c   : > { %5706 = vmatmul.msk.bf16.gmra.mxu0 %vm645_vm0, %v2904_v3  ;;  %v2063_v3 = vld [vmem:[#allocation2 + $0xea] sm:$0xff] }
 0x21d   : > { %5538 = vmatmul.msk.bf16.gmra.mxu3 %vm645_vm0, %v6681_v62  ;;  %5588 = vmatmul.msk.bf16.gmra.mxu1 %vm645_vm0, %v6879_v30 }
 0x21f   : > { %v1563_v37 = vpop.f32.mrf.mxu3  ;;  %v1742_v56 = vpop.f32.mrf.mxu2 }
 0x220   : > { %v6886_v53 = vadd.f32 %v1740_v1, %v1563_v37  ;;  %v2905_v1 = vpack.c.bf16 %v2875_v15, %v2874_v58  ;;  %v6897_v37 = vpack.c.bf16 %v2063_v3, %v2062_v9  ;;  %v2877_v15 = vld [vmem:[#allocation2 + $0x8c] sm:$0xff] }
 0x222   : > { %8509 = vst [vmem:[#allocation17_spill] sm:$0xff] %v6886_v53  ;;  %v6888_v14 = vpop.f32.mrf.mxu1 }
 0x225   : > { %5623 = vmatmul.msk.bf16.gmra.mxu2 %vm645_vm0, %v2353_v4  ;;  %v6904_v4 = vpop.f32.mrf.mxu0 }
 0x227   : > { %v1565_v2 = vpop.f32.mrf.mxu3  ;;  %v1745_v62 = vpop.f32.mrf.mxu2 }
 0x228   : > { %v6893_v16 = vadd.f32 %v1742_v56, %v1565_v2 }
 0x22a   : > { %8510 = vst [vmem:[#allocation18_spill] sm:$0xff] %v6893_v16  ;;  %v6895_v20 = vpop.f32.mrf.mxu1  ;;  %v2324_v16 = vld [vmem:[#allocation2 + $0x73] sm:$0xff] }
 0x22b   : > { %v2354_v9 = vpack.c.bf16 %v2325_v24, %v2324_v16 }
 0x22c   : > { %5707 = vmatmul.msk.bf16.gmra.mxu0 %vm645_vm0, %v2905_v1 }
 0x22d   : > { %5539 = vmatmul.msk.bf16.gmra.mxu3 %vm645_vm0, %v6701_v35  ;;  %5589 = vmatmul.msk.bf16.gmra.mxu1 %vm645_vm0, %v6897_v37  ;;  %v6911_v3 = vpop.f32.mrf.mxu0 }
 0x22f   : > { %v1568_v56 = vpop.f32.mrf.mxu3  ;;  %v1747_v45 = vpop.f32.mrf.mxu2 }
 0x230   : > { %v6906_v2 = vadd.f32 %v1745_v62, %v1568_v56  ;;  %v2906_v62 = vpack.c.bf16 %v2877_v15, %v2876_v31  ;;  %v6917_v56 = vpack.c.bf16 %v2065_v42, %v2064_v21  ;;  %v2879_v42 = vld [vmem:[#allocation2 + $0x9c] sm:$0xff] }
 0x232   : > { %8511 = vst [vmem:[#allocation19_spill] sm:$0xff] %v6906_v2  ;;  %v6908_v53 = vpop.f32.mrf.mxu1 }
 0x233   : > { %8513 = vst [vmem:[#allocation21_spill] sm:$0xff] %v6917_v56 }
 0x235   : > { %5624 = vmatmul.msk.bf16.gmra.mxu2 %vm645_vm0, %v2354_v9 }
 0x237   : > { %v1570_v58 = vpop.f32.mrf.mxu3 }
 0x238   : > { %v1750_v35 = vpop.f32.mrf.mxu2  ;;  %v6913_v1 = vadd.f32 %v1747_v45, %v1570_v58  ;;  %v2327_v45 = vld [vmem:[#allocation2 + $0x8b] sm:$0xff]  ;;  %v2326_v58 = vld [vmem:[#allocation2 + $0x83] sm:$0xff] }
 0x239   : > { %v2355_v21 = vpack.c.bf16 %v2327_v45, %v2326_v58  ;;  %v2329_v58 = vld [vmem:[#allocation2 + $0x9b] sm:$0xff] }
 0x23a   : > { %8512 = vst [vmem:[#allocation20_spill] sm:$0xff] %v6913_v1  ;;  %v6915_v0 = vpop.f32.mrf.mxu1  ;;  %v6926_v1 = vpop.f32.mrf.mxu0 }
 0x23c   : > { %5708 = vmatmul.msk.bf16.gmra.mxu0 %vm645_vm0, %v2906_v62  ;;  %v2067_v62 = vld [vmem:[#allocation2 + $0x10a] sm:$0xff] }
 0x23d   : > { %5540 = vmatmul.msk.bf16.gmra.mxu3 %vm645_vm0, %v6722_v12  ;;  %5590 = vmatmul.msk.bf16.gmra.mxu1 %vm645_vm0, %v6917_v56  ;;  %v2882_v56 = vld [vmem:[#allocation2 + $0xb4] sm:$0xff] }
 0x240   : > { %v1573_v16 = vpop.f32.mrf.mxu3  ;;  %v1752_v24 = vpop.f32.mrf.mxu2 }
 0x241   : > { %v6924_v9 = vadd.f32 %v1750_v35, %v1573_v16  ;;  %v2907_v35 = vpack.c.bf16 %v2879_v42, %v2878_v10  ;;  %v6935_v16 = vpack.c.bf16 %v2067_v62, %v2066_v47  ;;  %v6071_v10 = vld [vmem:[%s8482_s5 + $0x108] sm:$0xff] }
 0x242   : > { %v6928_v2 = vpop.f32.mrf.mxu1  ;;  %3563 = vmatpush.bf16.msra.mxu2 %v6071_v10  ;;  %v6067_v62 = vld [vmem:[%s8482_s5 + $0xe8] sm:$0xff] }
 0x243   : > { %8514 = vst [vmem:[#allocation22_spill] sm:$0xff] %v6924_v9  ;;  %v6937_v9 = vpop.f32.mrf.mxu0  ;;  %3287 = vmatpush.bf16.msra.mxu1 %v6067_v62  ;;  %v2880_v10 = vld [vmem:[#allocation2 + $0xa4] sm:$0xff] }
 0x244   : > { %8517 = vst [vmem:[#allocation25_spill] sm:$0xff] %v6935_v16  ;;  %v2331_v62 = vld [vmem:[#allocation2 + $0xab] sm:$0xff] }
 0x245   : > { %5625 = vmatmul.msk.bf16.gmra.mxu2 %vm645_vm0, %v2355_v21 }
 0x248   : > { %v1575_v31 = vpop.f32.mrf.mxu3  ;;  %v1755_v12 = vpop.f32.mrf.mxu2 }
 0x249   : > { %v6931_v15 = vadd.f32 %v1752_v24, %v1575_v31  ;;  %v6059_v24 = vld [vmem:[%s8482_s5 + $0xa8] sm:$0xff] }
 0x24a   : > { %v6933_v50 = vpop.f32.mrf.mxu1  ;;  %2735 = vmatpush.bf16.msrb.mxu3 %v6059_v24 }
 0x24b   : > { %8515 = vst [vmem:[#allocation23_spill] sm:$0xff] %v6931_v15 }
 0x24c   : > { %8516 = vst [vmem:[#allocation24_spill] sm:$0xff] %v6933_v50  ;;  %5709 = vmatmul.msk.bf16.gmra.mxu0 %vm645_vm0, %v2907_v35  ;;  %v6958_v35 = vpop.f32.mrf.mxu0  ;;  %v2881_v50 = vld [vmem:[#allocation2 + $0xac] sm:$0xff] }
 0x24d   : > { %5541 = vmatmul.msk.bf16.gmra.mxu3 %vm645_vm0, %v6754_v51  ;;  %5591 = vmatmul.msk.bf16.gmra.mxu1 %vm645_vm0, %v6935_v16  ;;  %v2328_v51 = vld [vmem:[#allocation2 + $0x93] sm:$0xff] }
 0x24e   : > { %v2356_v42 = vpack.c.bf16 %v2329_v58, %v2328_v51  ;;  %v2068_v51 = vld [vmem:[#allocation2 + $0x112] sm:$0xff] }
 0x250   : > { %v1578_v47 = vpop.f32.mrf.mxu3  ;;  %v1757_v45 = vpop.f32.mrf.mxu2 }
 0x251   : > { %v6950_v21 = vadd.f32 %v1755_v12, %v1578_v47  ;;  %v2069_v12 = vld [vmem:[#allocation2 + $0x11a] sm:$0xff] }
 0x252   : > { %v6952_v31 = vpop.f32.mrf.mxu1  ;;  %v6066_v47 = vld [vmem:[%s8482_s5 + $0xe0] sm:$0xff] }
 0x253   : > { %8518 = vst [vmem:[#allocation26_spill] sm:$0xff] %v6950_v21  ;;  %v2908_v21 = vpack.c.bf16 %v2881_v50, %v2880_v10  ;;  %3288 = vmatpush.bf16.msra.mxu1 %v6066_v47 }
 0x254   : > { %8519 = vst [vmem:[#allocation27_spill] sm:$0xff] %v6952_v31  ;;  %v6967_v31 = vpack.c.bf16 %v2069_v12, %v2068_v51  ;;  %v2330_v12 = vld [vmem:[#allocation2 + $0xa3] sm:$0xff]  ;;  %v1673_v51 = vadd.f32 %v6806_v7, %v6582_v41  ;;  %v1676_v7 = vadd.f32 %v6821_v13, %v6593_v54 }
 0x255   : > { %5626 = vmatmul.msk.bf16.gmra.mxu2 %vm645_vm0, %v2356_v42 }
 0x256   : > { %8522 = vst [vmem:[#allocation30_spill] sm:$0xff] %v6967_v31 }
 0x258   : > { %v1580_v15 = vpop.f32.mrf.mxu3  ;;  %v2462_v16 = vpop.f32.mrf.mxu2 }
 0x259   : > { %v6960_v24 = vadd.f32 %v1757_v45, %v1580_v15  ;;  %v1671_v15 = vadd.f32 %v6799_v52, %v6574_v32 }
 0x25a   : > { %v6965_v58 = vpop.f32.mrf.mxu1 }
 0x25b   : > { %8520 = vst [vmem:[#allocation28_spill] sm:$0xff] %v6960_v24  ;;  %v6976_v24 = vpop.f32.mrf.mxu0 }
 0x25c   : > { %8521 = vst [vmem:[#allocation29_spill] sm:$0xff] %v6965_v58  ;;  %5710 = vmatmul.msk.bf16.gmra.mxu0 %vm645_vm0, %v2908_v21 }
 0x25d   : > { %5542 = vmatmul.msk.bf16.gmra.mxu3 %vm645_vm0, %v6780_v48  ;;  %5592 = vmatmul.msk.bf16.gmra.mxu1 %vm645_vm0, %v6967_v31  ;;  %v2357_v48 = vpack.c.bf16 %v2331_v62, %v2330_v12  ;;  %v2883_v31 = vld [vmem:[#allocation2 + $0xbc] sm:$0xff] }
 0x25e   : > { %v2070_v62 = vld [vmem:[#allocation2 + $0x122] sm:$0xff] }
 0x25f   : > { %v2089_v12 = vpack.c.bf16 %v2071_v57, %v2070_v62  ;;  %v3141_v62 = vld [vmem:[#allocation2 + $0x2d] sm:$0xff] }
 0x260   : > { %v1910_v45 = vpop.f32.mrf.mxu3  ;;  %v2464_v42 = vpop.f32.mrf.mxu2 }
 0x261   : > { %v2000_v50 = vadd.f32 %v1910_v45, %v1671_v15 }
 0x262   : > { %v6979_v47 = vpop.f32.mrf.mxu1 }
 0x263   : > { %v2276_v10 = vadd.f32 %v6791_v25, %v2000_v50  ;;  %v6986_v15 = vpop.f32.mrf.mxu0  ;;  %v2909_v50 = vpack.c.bf16 %v2883_v31, %v2882_v56 }
 0x265   : > { %5627 = vmatmul.msk.bf16.gmra.mxu2 %vm645_vm0, %v2357_v48  ;;  %v6982_v21 = vadd.f32 %v2462_v16, %v2276_v10  ;;  %v2332_v48 = vld [vmem:[#allocation2 + $0xb3] sm:$0xff] }
 0x268   : > { %v1912_v32 = vpop.f32.mrf.mxu3  ;;  %v2467_v52 = vpop.f32.mrf.mxu2 }
 0x269   : > { %v2001_v58 = vadd.f32 %v1912_v32, %v1673_v51  ;;  %v1678_v51 = vadd.f32 %v6832_v63, %v6604_v8  ;;  %v2885_v32 = vld [vmem:[#allocation2 + $0xcc] sm:$0xff]  ;;  %v1681_v8 = vadd.f32 %v6850_v55, %v6611_v18 }
 0x26a   : > { %v6989_v45 = vpop.f32.mrf.mxu1 }
 0x26b   : > { %v2277_v25 = vadd.f32 %v6803_v38, %v2001_v58  ;;  %v2333_v38 = vld [vmem:[#allocation2 + $0xbb] sm:$0xff] }
 0x26c   : > { %5711 = vmatmul.msk.bf16.gmra.mxu0 %vm645_vm0, %v2909_v50  ;;  %v2358_v31 = vpack.c.bf16 %v2333_v38, %v2332_v48  ;;  %v2884_v50 = vld [vmem:[#allocation2 + $0xc4] sm:$0xff] }
 0x26d   : > { %5543 = vmatmul.msk.bf16.gmra.mxu3 %vm645_vm0, %v6793_v59  ;;  %v6994_v41 = vadd.f32 %v2464_v42, %v2277_v25  ;;  %5593 = vmatmul.msk.bf16.gmra.mxu1 %vm645_vm0, %v2089_v12  ;;  %v7002_v59 = vpop.f32.mrf.mxu0  ;;  %v2335_v48 = vld [vmem:[#allocation2 + $0xcb] sm:$0xff] }
 0x270   : > { %v1915_v16 = vpop.f32.mrf.mxu3  ;;  %v2469_v10 = vpop.f32.mrf.mxu2 }
 0x271   : > { %v2002_v58 = vadd.f32 %v1915_v16, %v1676_v7  ;;  %v2910_v7 = vpack.c.bf16 %v2885_v32, %v2884_v50  ;;  %v3140_v16 = vld [vmem:[#allocation2 + $0x25] sm:$0xff]  ;;  %v1683_v32 = vadd.f32 %v6866_v39, %v6623_v34  ;;  %v1686_v39 = vadd.f32 %v6875_v23, %v6633_v49 }
 0x272   : > { %v7000_v57 = vpop.f32.mrf.mxu1  ;;  %v3176_v38 = vpack.c.bf16 %v3141_v62, %v3140_v16  ;;  %v6070_v49 = vld [vmem:[%s8482_s5 + $0x100] sm:$0xff] }
 0x273   : > { %v2278_v56 = vadd.f32 %v6810_v36, %v2002_v58  ;;  %3564 = vmatpush.bf16.msra.mxu2 %v6070_v49 }
 0x275   : > { %5628 = vmatmul.msk.bf16.gmra.mxu2 %vm645_vm0, %v2358_v31  ;;  %v7005_v42 = vadd.f32 %v2467_v52, %v2278_v56  ;;  %v7020_v63 = vpop.f32.mrf.mxu0  ;;  %v2334_v31 = vld [vmem:[#allocation2 + $0xc3] sm:$0xff] }
 0x278   : > { %v1917_v54 = vpop.f32.mrf.mxu3  ;;  %v2472_v13 = vpop.f32.mrf.mxu2 }
 0x279   : > { %v2003_v25 = vadd.f32 %v1917_v54, %v1678_v51 }
 0x27a   : > { %v7010_v12 = vpop.f32.mrf.mxu1 }
 0x27b   : > { %v2279_v36 = vadd.f32 %v6823_v61, %v2003_v25  ;;  %v2887_v25 = vld [vmem:[#allocation2 + $0xdc] sm:$0xff] }
 0x27c   : > { %5712 = vmatmul.msk.bf16.gmra.mxu0 %vm645_vm0, %v2910_v7  ;;  %v2886_v7 = vld [vmem:[#allocation2 + $0xd4] sm:$0xff] }
 0x27d   : > { %5544 = vmatmul.msk.bf16.gmra.mxu3 %vm645_vm0, %v6812_v19  ;;  %v7015_v52 = vadd.f32 %v2469_v10, %v2279_v36  ;;  %5744 = vmatmul.msk.bf16.vlgmr.msra.gmra.mxu1 %vm645_vm0, %v3176_v38  ;;  %v2359_v19 = vpack.c.bf16 %v2335_v48, %v2334_v31  ;;  %v7030_v62 = vpop.f32.mrf.mxu0  ;;  %v3143_v36 = vld [vmem:[#allocation2 + $0x3d] sm:$0xff]  ;;  %v2911_v38 = vpack.c.bf16 %v2887_v25, %v2886_v7  ;;  %v2336_v31 = vld [vmem:[#allocation2 + $0xd3] sm:$0xff] }
 0x27e   : > { %v3145_v7 = vld [vmem:[#allocation2 + $0x4d] sm:$0xff] }
 0x280   : > { %v1920_v61 = vpop.f32.mrf.mxu3  ;;  %v2474_v58 = vpop.f32.mrf.mxu2 }
 0x281   : > { %v2004_v56 = vadd.f32 %v1920_v61, %v1681_v8  ;;  %v3142_v8 = vld [vmem:[#allocation2 + $0x35] sm:$0xff] }
 0x282   : > { %v7023_v54 = vpop.f32.mrf.mxu1  ;;  %v3177_v61 = vpack.c.bf16 %v3143_v36, %v3142_v8 }
 0x283   : > { %v2280_v51 = vadd.f32 %v6828_v27, %v2004_v56 }
 0x285   : > { %5629 = vmatmul.msk.bf16.gmra.mxu2 %vm645_vm0, %v2359_v19  ;;  %v7026_v10 = vadd.f32 %v2472_v13, %v2280_v51  ;;  %v7043_v51 = vpop.f32.mrf.mxu0 }
 0x288   : > { %v1922_v18 = vpop.f32.mrf.mxu3  ;;  %v2477_v55 = vpop.f32.mrf.mxu2 }
 0x289   : > { %v2005_v50 = vadd.f32 %v1922_v18, %v1683_v32  ;;  %v1688_v18 = vadd.f32 %v6890_v5, %v6645_v26  ;;  %v1691_v5 = vadd.f32 %v6904_v4, %v6655_v17 }
 0x28a   : > { %v7033_v16 = vpop.f32.mrf.mxu1 }
 0x28b   : > { %v2281_v27 = vadd.f32 %v6841_v44, %v2005_v50  ;;  %v2337_v44 = vld [vmem:[#allocation2 + $0xdb] sm:$0xff]  ;;  %v2889_v50 = vld [vmem:[#allocation2 + $0xec] sm:$0xff] }
 0x28c   : > { %5713 = vmatmul.msk.bf16.gmra.mxu0 %vm645_vm0, %v2911_v38 }
 0x28d   : > { %5545 = vmatmul.msk.bf16.gmra.mxu3 %vm645_vm0, %v6830_v11  ;;  %v7038_v34 = vadd.f32 %v2474_v58, %v2281_v27  ;;  %5745 = vmatmul.msk.bf16.gmra.mxu1 %vm645_vm0, %v3177_v61  ;;  %v2360_v11 = vpack.c.bf16 %v2337_v44, %v2336_v31  ;;  %v6058_v58 = vld [vmem:[%s8482_s5 + $0xa0] sm:$0xff] }
 0x28e   : > { %2736 = vmatpush.bf16.msrb.mxu3 %v6058_v58  ;;  %v2888_v27 = vld [vmem:[#allocation2 + $0xe4] sm:$0xff] }
 0x28f   : > { %v2912_v8 = vpack.c.bf16 %v2889_v50, %v2888_v27  ;;  %v3144_v61 = vld [vmem:[#allocation2 + $0x45] sm:$0xff] }
 0x290   : > { %v1925_v13 = vpop.f32.mrf.mxu3  ;;  %v2479_v48 = vpop.f32.mrf.mxu2 }
 0x291   : > { %v2006_v56 = vadd.f32 %v1925_v13, %v1686_v39  ;;  %v3178_v39 = vpack.c.bf16 %v3145_v7, %v3144_v61  ;;  %v7060_v13 = vpop.f32.mrf.mxu0  ;;  %v2890_v7 = vld [vmem:[#allocation2 + $0xf4] sm:$0xff] }
 0x292   : > { %v7046_v32 = vpop.f32.mrf.mxu1 }
 0x293   : > { %v2282_v19 = vadd.f32 %v6854_v29, %v2006_v56  ;;  %v2339_v56 = vld [vmem:[#allocation2 + $0xeb] sm:$0xff] }
 0x295   : > { %5630 = vmatmul.msk.bf16.gmra.mxu2 %vm645_vm0, %v2360_v11  ;;  %v7055_v23 = vadd.f32 %v2477_v55, %v2282_v19  ;;  %v2338_v19 = vld [vmem:[#allocation2 + $0xe3] sm:$0xff] }
 0x296   : > { %v2361_v58 = vpack.c.bf16 %v2339_v56, %v2338_v19  ;;  %v2340_v56 = vld [vmem:[#allocation2 + $0xf3] sm:$0xff]  ;;  %v1698_v19 = vadd.f32 %v6937_v9, %v6688_v6  ;;  %v1701_v9 = vadd.f32 %v6958_v35, %v6694_v22 }
 0x298   : > { %v1927_v29 = vpop.f32.mrf.mxu3  ;;  %v2482_v25 = vpop.f32.mrf.mxu2 }
 0x299   : > { %v2007_v36 = vadd.f32 %v1927_v29, %v1688_v18  ;;  %v7078_v49 = vpop.f32.mrf.mxu0  ;;  %v2891_v29 = vld [vmem:[#allocation2 + $0xfc] sm:$0xff] }
 0x29a   : > { %v7062_v55 = vpop.f32.mrf.mxu1  ;;  %v2913_v27 = vpack.c.bf16 %v2891_v29, %v2890_v7  ;;  %v3148_v7 = vld [vmem:[#allocation2 + $0x65] sm:$0xff] }
 0x29b   : > { %v2283_v38 = vadd.f32 %v6870_v60, %v2007_v36  ;;  %v3147_v36 = vld [vmem:[#allocation2 + $0x5d] sm:$0xff] }
 0x29c   : > { %5714 = vmatmul.msk.bf16.gmra.mxu0 %vm645_vm0, %v2912_v8 }
 0x29d   : > { %5546 = vmatmul.msk.bf16.gmra.mxu3 %vm645_vm0, %v6859_v28  ;;  %v7067_v26 = vadd.f32 %v2479_v48, %v2283_v38  ;;  %5746 = vmatmul.msk.bf16.gmra.mxu1 %vm645_vm0, %v3178_v39  ;;  %v1693_v48 = vadd.f32 %v6911_v3, %v6667_v33  ;;  %v3146_v38 = vld [vmem:[#allocation2 + $0x55] sm:$0xff]  ;;  %v1696_v3 = vadd.f32 %v6926_v1, %v6677_v46 }
 0x29e   : > { %v3179_v8 = vpack.c.bf16 %v3147_v36, %v3146_v38  ;;  %v2341_v39 = vld [vmem:[#allocation2 + $0xfb] sm:$0xff]  ;;  %v2343_v38 = vld [vmem:[#allocation2 + $0x10b] sm:$0xff] }
 0x2a0   : > { %v1930_v60 = vpop.f32.mrf.mxu3  ;;  %v2484_v44 = vpop.f32.mrf.mxu2 }
 0x2a1   : > { %v2008_v31 = vadd.f32 %v1930_v60, %v1691_v5  ;;  %v7091_v5 = vpop.f32.mrf.mxu0 }
 0x2a2   : > { %v7080_v18 = vpop.f32.mrf.mxu1 }
 0x2a3   : > { %v2284_v11 = vadd.f32 %v6877_v43, %v2008_v31  ;;  %v2362_v31 = vpack.c.bf16 %v2341_v39, %v2340_v56  ;;  %v2895_v56 = vld [vmem:[#allocation2 + $0x11c] sm:$0xff] }
 0x2a5   : > { %5631 = vmatmul.msk.bf16.gmra.mxu2 %vm645_vm0, %v2361_v58  ;;  %v7074_v28 = vadd.f32 %v2482_v25, %v2284_v11  ;;  %v2893_v11 = vld [vmem:[#allocation2 + $0x10c] sm:$0xff] }
 0x2a8   : > { %v1932_v17 = vpop.f32.mrf.mxu3  ;;  %v2487_v4 = vpop.f32.mrf.mxu2 }
 0x2a9   : > { %v2009_v50 = vadd.f32 %v1932_v17, %v1693_v48  ;;  %v3149_v48 = vld [vmem:[#allocation2 + $0x6d] sm:$0xff]  ;;  %v2892_v17 = vld [vmem:[#allocation2 + $0x104] sm:$0xff]  ;;  %v7101_v29 = vpop.f32.mrf.mxu0 }
 0x2aa   : > { %v2914_v36 = vpack.c.bf16 %v2893_v11, %v2892_v17  ;;  %v3150_v11 = vld [vmem:[#allocation2 + $0x75] sm:$0xff] }
 0x2ab   : > { %v2285_v43 = vadd.f32 %v6888_v14, %v2009_v50  ;;  %v7093_v14 = vpop.f32.mrf.mxu1 }
 0x2ac   : > { %5715 = vmatmul.msk.bf16.gmra.mxu0 %vm645_vm0, %v2913_v27 }
 0x2ad   : > { %5547 = vmatmul.msk.bf16.gmra.mxu3 %vm645_vm0, %v6879_v30  ;;  %v7086_v33 = vadd.f32 %v2484_v44, %v2285_v43  ;;  %5747 = vmatmul.msk.bf16.gmra.mxu1 %vm645_vm0, %v3179_v8  ;;  %v3180_v43 = vpack.c.bf16 %v3149_v48, %v3148_v7  ;;  %v8523_v48 = vld [vmem:[#allocation21_spill] sm:$0xff] }
 0x2ae   : > { %v2345_v7 = vld [vmem:[#allocation2 + $0x11b] sm:$0xff] }
 0x2b0   : > { %v1935_v25 = vpop.f32.mrf.mxu3  ;;  %v2489_v61 = vpop.f32.mrf.mxu2 }
 0x2b1   : > { %v2010_v60 = vadd.f32 %v1935_v25, %v1696_v3  ;;  %v7115_v39 = vpop.f32.mrf.mxu0 }
 0x2b3   : > { %v2286_v30 = vadd.f32 %v6895_v20, %v2010_v60  ;;  %v7103_v50 = vpop.f32.mrf.mxu1  ;;  %v1703_v60 = vadd.f32 %v6976_v24, %v6709_v40  ;;  %v8524_v40 = vld [vmem:[#allocation3_spill] sm:$0xff] }
 0x2b4   : > { %v1706_v24 = vadd.f32 %v6986_v15, %v8524_v40  ;;  %v5830_v40 = vld [vmem:[%s8485_s8 + $0x30] sm:$0xf] }
 0x2b5   : > { %5632 = vmatmul.msk.bf16.gmra.mxu2 %vm645_vm0, %v2362_v31  ;;  %v7097_v44 = vadd.f32 %v2487_v4, %v2286_v30  ;;  %v3151_v31 = vld [vmem:[#allocation2 + $0x7d] sm:$0xff] }
 0x2b8   : > { %v1937_v46 = vpop.f32.mrf.mxu3  ;;  %v2492_v1 = vpop.f32.mrf.mxu2 }
 0x2b9   : > { %v2011_v58 = vadd.f32 %v1937_v46, %v1698_v19  ;;  %v2894_v19 = vld [vmem:[#allocation2 + $0x114] sm:$0xff]  ;;  %v7133_v17 = vpop.f32.mrf.mxu0 }
 0x2ba   : > { %v2915_v46 = vpack.c.bf16 %v2895_v56, %v2894_v19  ;;  %v2896_v19 = vld [vmem:[#allocation2 + $0x124] sm:$0xff] }
 0x2bb   : > { %v2287_v20 = vadd.f32 %v6908_v53, %v2011_v58  ;;  %v2342_v53 = vld [vmem:[#allocation2 + $0x103] sm:$0xff]  ;;  %v3181_v58 = vpack.c.bf16 %v3151_v31, %v3150_v11  ;;  %v3153_v31 = vld [vmem:[#allocation2 + $0x8d] sm:$0xff] }
 0x2bc   : > { %5716 = vmatmul.msk.bf16.gmra.mxu0 %vm645_vm0, %v2914_v36  ;;  %v2363_v25 = vpack.c.bf16 %v2343_v38, %v2342_v53  ;;  %v8526_v53 = vld [vmem:[#allocation4_spill] sm:$0xff] }
 0x2bd   : > { %5548 = vmatmul.msk.bf16.gmra.mxu3 %vm645_vm0, %v6897_v37  ;;  %v7109_v6 = vadd.f32 %v2489_v61, %v2287_v20  ;;  %5748 = vmatmul.msk.bf16.gmra.mxu1 %vm645_vm0, %v3180_v43  ;;  %v7117_v37 = vpop.f32.mrf.mxu1 }
 0x2c0   : > { %v1940_v4 = vpop.f32.mrf.mxu3  ;;  %v2494_v27 = vpop.f32.mrf.mxu2 }
 0x2c1   : > { %v2012_v8 = vadd.f32 %v1940_v4, %v1701_v9  ;;  %v2344_v9 = vld [vmem:[#allocation2 + $0x113] sm:$0xff] }
 0x2c2   : > { %v8525_v4 = vld [vmem:[#allocation24_spill] sm:$0xff] }
 0x2c3   : > { %v2288_v3 = vadd.f32 %v6915_v0, %v2012_v8  ;;  %v2364_v8 = vpack.c.bf16 %v2345_v7, %v2344_v9 }
 0x2c5   : > { %5633 = vmatmul.msk.bf16.gmra.mxu2 %vm645_vm0, %v2363_v25  ;;  %v7120_v61 = vadd.f32 %v2492_v1, %v2288_v3  ;;  %v7135_v20 = vpop.f32.mrf.mxu1  ;;  %v1708_v3 = vadd.f32 %v7002_v59, %v8526_v53 }
 0x2c8   : > { %v1942_v22 = vpop.f32.mrf.mxu3  ;;  %v2497_v35 = vpop.f32.mrf.mxu2 }
 0x2c9   : > { %v2013_v30 = vadd.f32 %v1942_v22, %v1703_v60  ;;  %v2897_v60 = vld [vmem:[#allocation2 + $0x12c] sm:$0xff]  ;;  %v7143_v22 = vpop.f32.mrf.mxu0 }
 0x2ca   : > { %v2916_v11 = vpack.c.bf16 %v2897_v60, %v2896_v19 }
 0x2cb   : > { %v2289_v0 = vadd.f32 %v6928_v2, %v2013_v30 }
 0x2cc   : > { %5717 = vmatmul.msk.bf16.gmra.mxu0 %vm645_vm0, %v2915_v46 }
 0x2cd   : > { %5549 = vmatmul.msk.bf16.gmra.mxu3 %vm645_vm0, %v8523_v48  ;;  %v7128_v1 = vadd.f32 %v2494_v27, %v2289_v0  ;;  %5749 = vmatmul.msk.bf16.gmra.mxu1 %vm645_vm0, %v3181_v58  ;;  %v7145_v56 = vpop.f32.mrf.mxu1  ;;  %v8527_v0 = vld [vmem:[#allocation27_spill] sm:$0xff] }
 0x2ce   : > { %v3152_v58 = vld [vmem:[#allocation2 + $0x85] sm:$0xff] }
 0x2cf   : > { %v3182_v48 = vpack.c.bf16 %v3153_v31, %v3152_v58 }
 0x2d0   : > { %v1945_v2 = vpop.f32.mrf.mxu3  ;;  %v2499_v36 = vpop.f32.mrf.mxu2 }
 0x2d1   : > { %v2014_v43 = vadd.f32 %v1945_v2, %v1706_v24  ;;  %v6081_v24 = vld [vmem:[%s8485_s8 + $0x34] sm:$0xf0]  ;;  %v6106_v2 = vld [vmem:[%s8488_s11 + $0x34] sm:$0xf] }
 0x2d2   : > { %v5831_v7 = vor.u32 %v6081_v24, %v5830_v40 }
 0x2d3   : > { %v2290_v38 = vadd.f32 %v8525_v4, %v2014_v43  ;;  %v2347_v4 = vld [vmem:[#allocation2 + $0x12b] sm:$0xff] }
 0x2d4   : > { %3932 = vmatpush.bf16.msra.mxu3 %v5831_v7  ;;  %v2898_v7 = vld [vmem:[#allocation2 + $0x134] sm:$0xff] }
 0x2d5   : > { %5634 = vmatmul.msk.bf16.gmra.mxu2 %vm645_vm0, %v2364_v8  ;;  %v7139_v27 = vadd.f32 %v2497_v35, %v2290_v38  ;;  %v8528_v35 = vld [vmem:[#allocation25_spill] sm:$0xff]  ;;  %v7169_v60 = vpop.f32.mrf.mxu1 }
 0x2d6   : > { %v8529_v8 = vld [vmem:[#allocation5_spill] sm:$0xff] }
 0x2d8   : > { %v1947_v15 = vpop.f32.mrf.mxu3  ;;  %v2502_v25 = vpop.f32.mrf.mxu2 }
 0x2d9   : > { %v2015_v30 = vadd.f32 %v1947_v15, %v1708_v3  ;;  %v2346_v3 = vld [vmem:[#allocation2 + $0x123] sm:$0xff]  ;;  %v7167_v15 = vpop.f32.mrf.mxu0 }
 0x2da   : > { %v2365_v19 = vpack.c.bf16 %v2347_v4, %v2346_v3  ;;  %v3154_v3 = vld [vmem:[#allocation2 + $0x95] sm:$0xff] }
 0x2db   : > { %v2291_v46 = vadd.f32 %v8527_v0, %v2015_v30  ;;  %v8530_v30 = vld [vmem:[#allocation29_spill] sm:$0xff]  ;;  %v6080_v0 = vld [vmem:[%s8485_s8 + $0x34] sm:$0xf] }
 0x2dc   : > { %5718 = vmatmul.msk.bf16.gmra.mxu0 %vm645_vm0, %v2916_v11  ;;  %v5970_v11 = vld [vmem:[%s8488_s11 + $0x30] sm:$0xf] }
 0x2dd   : > { %5550 = vmatmul.msk.bf16.gmra.mxu3 %vm645_vm0, %v8528_v35  ;;  %v7151_v59 = vadd.f32 %v2499_v36, %v2291_v46  ;;  %5750 = vmatmul.msk.bf16.gmra.mxu1 %vm645_vm0, %v3182_v48  ;;  %v5972_v36 = vld [vmem:[%s8488_s11 + $0x38] sm:$0xf0]  ;;  %v6107_v48 = vld [vmem:[%s8488_s11 + $0x34] sm:$0xf0] }
 0x2de   : > { %v5975_v38 = vor.u32 %v6106_v2, %v5972_v36  ;;  %v5832_v46 = vld [vmem:[%s8485_s8 + $0x38] sm:$0xf0]  ;;  %v5971_v35 = vor.u32 %v6107_v48, %v5970_v11 }
 0x2df   : > { %v5835_v58 = vor.u32 %v6080_v0, %v5832_v46  ;;  %v2899_v36 = vld [vmem:[#allocation2 + $0x13c] sm:$0xff] }
 0x2e0   : > { %v1950_v43 = vpop.f32.mrf.mxu3  ;;  %v2504_v9 = vpop.f32.mrf.mxu2  ;;  %4788 = vmatpush.bf16.msrb.mxu2 %v5975_v38  ;;  %4689 = vmatpush.bf16.msrb.mxu1 %v5971_v35  ;;  %v3155_v38 = vld [vmem:[#allocation2 + $0x9d] sm:$0xff]  ;;  %v3416_v35 = vld [vmem:[#allocation2 + $0x26] sm:$0xff] }
 0x2e1   : > { %v2016_v53 = vadd.f32 %v1950_v43, %v8529_v8  ;;  %4031 = vmatpush.bf16.msrb.mxu0 %v5835_v58  ;;  %v8532_v43 = vld [vmem:[#allocation6_spill] sm:$0xff]  ;;  %v7189_v0 = vpop.f32.mrf.mxu0  ;;  %v3417_v58 = vld [vmem:[#allocation2 + $0x2e] sm:$0xff] }
 0x2e3   : > { %v2292_v31 = vadd.f32 %v8530_v30, %v2016_v53  ;;  %v2917_v53 = vpack.c.bf16 %v2899_v36, %v2898_v7  ;;  %v3183_v30 = vpack.c.bf16 %v3155_v38, %v3154_v3  ;;  %v3452_v7 = vpack.c.bf16 %v3417_v58, %v3416_v35  ;;  %v2589_v38 = vld [vmem:[#allocation2 + $0x1c] sm:$0xff]  ;;  %v3157_v3 = vld [vmem:[#allocation2 + $0xad] sm:$0xff] }
 0x2e5   : > { %5635 = vmatmul.msk.bf16.gmra.mxu2 %vm645_vm0, %v2365_v19  ;;  %v7185_v40 = vadd.f32 %v2502_v25, %v2292_v31  ;;  %v7191_v19 = vpop.f32.mrf.mxu1  ;;  %v8533_v25 = vld [vmem:[#allocation30_spill] sm:$0xff] }
 0x2e7   : > { %8531 = vst [vmem:[#allocation21_spill] sm:$0xff] %v7185_v40  ;;  %v3435_v40 = vld [vmem:[#allocation2 + $0xbe] sm:$0xff] }
 0x2e8   : > { %v1952_v24 = vpop.f32.mrf.mxu3  ;;  %v2507_v2 = vpop.f32.mrf.mxu2 }
 0x2e9   : > { %v2017_v4 = vadd.f32 %v1952_v24, %v8532_v43 }
 0x2eb   : > { %v2293_v8 = vadd.f32 %v6979_v47, %v2017_v4  ;;  %v8535_v47 = vld [vmem:[#allocation7_spill] sm:$0xff] }
 0x2ec   : > { %5719 = vmatmul.msk.bf16.gmra.mxu0 %vm645_vm0, %v2917_v53 }
 0x2ed   : > { %5551 = vmatmul.msk.bf16.gmra.mxu3 %vm645_vm0, %v8533_v25  ;;  %v7196_v31 = vadd.f32 %v2504_v9, %v2293_v8  ;;  %5751 = vmatmul.msk.bf16.gmra.mxu1 %vm645_vm0, %v3183_v30  ;;  %v7204_v43 = vpop.f32.mrf.mxu1  ;;  %v8537_v8 = vld [vmem:[#allocation8_spill] sm:$0xff] }
 0x2ee   : > { %v2588_v30 = vld [vmem:[#allocation2 + $0x14] sm:$0xff] }
 0x2ef   : > { %8534 = vst [vmem:[#allocation3_spill] sm:$0xff] %v7196_v31 }
 0x2f0   : > { %v1955_v46 = vpop.f32.mrf.mxu3  ;;  %v2509_v11 = vpop.f32.mrf.mxu2 }
 0x2f1   : > { %v2018_v48 = vadd.f32 %v1955_v46, %v8535_v47  ;;  %v2624_v46 = vpack.c.bf16 %v2589_v38, %v2588_v30  ;;  %v3156_v47 = vld [vmem:[#allocation2 + $0xa5] sm:$0xff] }
 0x2f2   : > { %v3184_v31 = vpack.c.bf16 %v3157_v3, %v3156_v47  ;;  %v2591_v3 = vld [vmem:[#allocation2 + $0x2c] sm:$0xff]  ;;  %v8541_v30 = vld [vmem:[#allocation10_spill] sm:$0xff] }
 0x2f3   : > { %v2294_v24 = vadd.f32 %v6989_v45, %v2018_v48  ;;  %v3419_v48 = vld [vmem:[#allocation2 + $0x3e] sm:$0xff] }
 0x2f5   : > { %5786 = vmatmul.msk.bf16.vlgmr.msra.gmra.mxu2 %vm645_vm0, %v3452_v7  ;;  %v7202_v36 = vadd.f32 %v2507_v2, %v2294_v24  ;;  %v7212_v35 = vpop.f32.mrf.mxu1  ;;  %v8539_v24 = vld [vmem:[#allocation9_spill] sm:$0xff] }
 0x2f7   : > { %8536 = vst [vmem:[#allocation24_spill] sm:$0xff] %v7202_v36 }
 0x2f8   : > { %v1957_v4 = vpop.f32.mrf.mxu3  ;;  %v2512_v9 = vpop.f32.mrf.mxu2 }
 0x2f9   : > { %v2019_v53 = vadd.f32 %v1957_v4, %v8537_v8  ;;  %v3418_v4 = vld [vmem:[#allocation2 + $0x36] sm:$0xff] }
 0x2fb   : > { %v2295_v25 = vadd.f32 %v7000_v57, %v2019_v53  ;;  %v3453_v57 = vpack.c.bf16 %v3419_v48, %v3418_v4  ;;  %v8543_v4 = vld [vmem:[#allocation11_spill] sm:$0xff] }
 0x2fd   : > { %5660 = vmatmul.msk.bf16.vlgmr.msrb.gmra.mxu3 %vm645_vm0, %v2624_v46  ;;  %v7209_v45 = vadd.f32 %v2509_v11, %v2295_v25  ;;  %5752 = vmatmul.msk.bf16.gmra.mxu1 %vm645_vm0, %v3184_v31  ;;  %v3159_v25 = vld [vmem:[#allocation2 + $0xbd] sm:$0xff]  ;;  %v7220_v47 = vpop.f32.mrf.mxu1 }
 0x2fe   : > { %v2590_v46 = vld [vmem:[#allocation2 + $0x24] sm:$0xff] }
 0x2ff   : > { %8538 = vst [vmem:[#allocation4_spill] sm:$0xff] %v7209_v45 }
 0x300   : > { %v1960_v2 = vpop.f32.mrf.mxu3  ;;  %v2514_v58 = vpop.f32.mrf.mxu2 }
 0x301   : > { %v2020_v7 = vadd.f32 %v1960_v2, %v8539_v24  ;;  %v2625_v2 = vpack.c.bf16 %v2591_v3, %v2590_v46  ;;  %v3158_v24 = vld [vmem:[#allocation2 + $0xb5] sm:$0xff] }
 0x302   : > { %v3185_v36 = vpack.c.bf16 %v3159_v25, %v3158_v24  ;;  %v3161_v25 = vld [vmem:[#allocation2 + $0xcd] sm:$0xff] }
 0x303   : > { %v2296_v8 = vadd.f32 %v7010_v12, %v2020_v7  ;;  %v3421_v7 = vld [vmem:[#allocation2 + $0x4e] sm:$0xff] }
 0x304   : > { %v2592_v46 = vld [vmem:[#allocation2 + $0x34] sm:$0xff] }
 0x305   : > { %5787 = vmatmul.msk.bf16.gmra.mxu2 %vm645_vm0, %v3453_v57  ;;  %v7217_v38 = vadd.f32 %v2512_v9, %v2296_v8  ;;  %v3420_v57 = vld [vmem:[#allocation2 + $0x46] sm:$0xff] }
 0x307   : > { %8540 = vst [vmem:[#allocation27_spill] sm:$0xff] %v7217_v38  ;;  %v7229_v38 = vpop.f32.mrf.mxu1 }
 0x308   : > { %v1962_v53 = vpop.f32.mrf.mxu3  ;;  %v2517_v11 = vpop.f32.mrf.mxu2 }
 0x309   : > { %v2021_v31 = vadd.f32 %v1962_v53, %v8541_v30  ;;  %v3454_v30 = vpack.c.bf16 %v3421_v7, %v3420_v57  ;;  %v3423_v57 = vld [vmem:[#allocation2 + $0x5e] sm:$0xff] }
 0x30b   : > { %v2297_v45 = vadd.f32 %v7023_v54, %v2021_v31  ;;  %v8545_v31 = vld [vmem:[#allocation12_spill] sm:$0xff] }
 0x30d   : > { %5661 = vmatmul.msk.bf16.gmra.mxu3 %vm645_vm0, %v2625_v2  ;;  %v7224_v12 = vadd.f32 %v2514_v58, %v2297_v45  ;;  %5753 = vmatmul.msk.bf16.gmra.mxu1 %vm645_vm0, %v3185_v36  ;;  %v2593_v58 = vld [vmem:[#allocation2 + $0x3c] sm:$0xff] }
 0x30e   : > { %v2626_v24 = vpack.c.bf16 %v2593_v58, %v2592_v46  ;;  %v6079_v58 = vld [vmem:[%s8485_s8 + $0x24] sm:$0xf0] }
 0x30f   : > { %8542 = vst [vmem:[#allocation25_spill] sm:$0xff] %v7224_v12 }
 0x310   : > { %v1965_v9 = vpop.f32.mrf.mxu3  ;;  %v2519_v48 = vpop.f32.mrf.mxu2 }
 0x311   : > { %v2022_v8 = vadd.f32 %v1965_v9, %v8543_v4  ;;  %v3160_v9 = vld [vmem:[#allocation2 + $0xc5] sm:$0xff] }
 0x312   : > { %v3186_v4 = vpack.c.bf16 %v3161_v25, %v3160_v9 }
 0x313   : > { %v2298_v53 = vadd.f32 %v7033_v16, %v2022_v8 }
 0x315   : > { %5788 = vmatmul.msk.bf16.gmra.mxu2 %vm645_vm0, %v3454_v30  ;;  %v7232_v54 = vadd.f32 %v2517_v11, %v2298_v53  ;;  %v7240_v11 = vpop.f32.mrf.mxu1  ;;  %v8547_v53 = vld [vmem:[#allocation13_spill] sm:$0xff] }
 0x317   : > { %8544 = vst [vmem:[#allocation5_spill] sm:$0xff] %v7232_v54 }
 0x318   : > { %v1967_v3 = vpop.f32.mrf.mxu3  ;;  %v2522_v45 = vpop.f32.mrf.mxu2 }
 0x319   : > { %v2023_v36 = vadd.f32 %v1967_v3, %v8545_v31  ;;  %v3422_v3 = vld [vmem:[#allocation2 + $0x56] sm:$0xff] }
 0x31b   : > { %v2299_v2 = vadd.f32 %v7046_v32, %v2023_v36  ;;  %v3455_v32 = vpack.c.bf16 %v3423_v57, %v3422_v3  ;;  %v6104_v36 = vld [vmem:[%s8488_s11 + $0x24] sm:$0xf] }
 0x31c   : > { %v8549_v57 = vld [vmem:[#allocation14_spill] sm:$0xff] }
 0x31d   : > { %5662 = vmatmul.msk.bf16.gmra.mxu3 %vm645_vm0, %v2626_v24  ;;  %v7237_v16 = vadd.f32 %v2519_v48, %v2299_v2  ;;  %5754 = vmatmul.msk.bf16.gmra.mxu1 %vm645_vm0, %v3186_v4  ;;  %v5822_v48 = vld [vmem:[%s8485_s8 + $0x20] sm:$0xf]  ;;  %v2595_v4 = vld [vmem:[#allocation2 + $0x4c] sm:$0xff]  ;;  %v2594_v3 = vld [vmem:[#allocation2 + $0x44] sm:$0xff] }
 0x31e   : > { %v5823_v46 = vor.u32 %v6079_v58, %v5822_v48  ;;  %v6078_v48 = vld [vmem:[%s8485_s8 + $0x24] sm:$0xf]  ;;  %v5824_v58 = vld [vmem:[%s8485_s8 + $0x28] sm:$0xf0] }
 0x31f   : > { %8546 = vst [vmem:[#allocation29_spill] sm:$0xff] %v7237_v16 }
 0x320   : > { %v1970_v7 = vpop.f32.mrf.mxu3  ;;  %v2524_v8 = vpop.f32.mrf.mxu2  ;;  %3933 = vmatpush.bf16.msra.mxu3 %v5823_v46 }
 0x321   : > { %v2024_v30 = vadd.f32 %v1970_v7, %v8547_v53  ;;  %v7259_v7 = vpop.f32.mrf.mxu1 }
 0x323   : > { %v2300_v31 = vadd.f32 %v7062_v55, %v2024_v30  ;;  %v5964_v55 = vld [vmem:[%s8488_s11 + $0x28] sm:$0xf0]  ;;  %v3163_v30 = vld [vmem:[#allocation2 + $0xdd] sm:$0xff] }
 0x324   : > { %v5967_v2 = vor.u32 %v6104_v36, %v5964_v55  ;;  %v5962_v36 = vld [vmem:[%s8488_s11 + $0x20] sm:$0xf]  ;;  %v5827_v55 = vor.u32 %v6078_v48, %v5824_v58 }
 0x325   : > { %5789 = vmatmul.msk.bf16.gmra.mxu2 %vm645_vm0, %v3455_v32  ;;  %v7254_v25 = vadd.f32 %v2522_v45, %v2300_v31  ;;  %v3162_v32 = vld [vmem:[#allocation2 + $0xd5] sm:$0xff]  ;;  %v2627_v31 = vpack.c.bf16 %v2595_v4, %v2594_v3  ;;  %v8551_v3 = vld [vmem:[#allocation15_spill] sm:$0xff] }
 0x326   : > { %4789 = vmatpush.bf16.msrb.mxu2 %v5967_v2  ;;  %v3187_v46 = vpack.c.bf16 %v3163_v30, %v3162_v32  ;;  %v6105_v2 = vld [vmem:[%s8488_s11 + $0x24] sm:$0xf0]  ;;  %4032 = vmatpush.bf16.msrb.mxu0 %v5827_v55 }
 0x327   : > { %8548 = vst [vmem:[#allocation6_spill] sm:$0xff] %v7254_v25  ;;  %v3424_v30 = vld [vmem:[#allocation2 + $0x66] sm:$0xff] }
 0x328   : > { %v1972_v24 = vpop.f32.mrf.mxu3  ;;  %v2527_v9 = vpop.f32.mrf.mxu2 }
 0x329   : > { %v2025_v53 = vadd.f32 %v1972_v24, %v8549_v57  ;;  %v7280_v32 = vpop.f32.mrf.mxu1 }
 0x32b   : > { %v2301_v45 = vadd.f32 %v7080_v18, %v2025_v53  ;;  %v5963_v18 = vor.u32 %v6105_v2, %v5962_v36  ;;  %v3425_v53 = vld [vmem:[#allocation2 + $0x6e] sm:$0xff]  ;;  %v2597_v36 = vld [vmem:[#allocation2 + $0x5c] sm:$0xff] }
 0x32c   : > { %v3456_v58 = vpack.c.bf16 %v3425_v53, %v3424_v30  ;;  %v3165_v2 = vld [vmem:[#allocation2 + $0xed] sm:$0xff]  ;;  %v3427_v53 = vld [vmem:[#allocation2 + $0x7e] sm:$0xff] }
 0x32d   : > { %5663 = vmatmul.msk.bf16.gmra.mxu3 %vm645_vm0, %v2627_v31  ;;  %v7276_v24 = vadd.f32 %v2524_v8, %v2301_v45  ;;  %5755 = vmatmul.msk.bf16.gmra.mxu1 %vm645_vm0, %v3187_v46  ;;  %v8553_v46 = vld [vmem:[#allocation16_spill] sm:$0xff]  ;;  %v8555_v30 = vld [vmem:[#allocation17_spill] sm:$0xff] }
 0x32e   : > { %4690 = vmatpush.bf16.msrb.mxu1 %v5963_v18  ;;  %v2596_v18 = vld [vmem:[#allocation2 + $0x54] sm:$0xff] }
 0x32f   : > { %8550 = vst [vmem:[#allocation30_spill] sm:$0xff] %v7276_v24 }
 0x330   : > { %v1975_v4 = vpop.f32.mrf.mxu3  ;;  %v2529_v57 = vpop.f32.mrf.mxu2 }
 0x331   : > { %v2026_v25 = vadd.f32 %v1975_v4, %v8551_v3  ;;  %v2628_v4 = vpack.c.bf16 %v2597_v36, %v2596_v18  ;;  %v3164_v3 = vld [vmem:[#allocation2 + $0xe5] sm:$0xff]  ;;  %v7288_v54 = vpop.f32.mrf.mxu1  ;;  %v3167_v18 = vld [vmem:[#allocation2 + $0xfd] sm:$0xff] }
 0x332   : > { %v3188_v16 = vpack.c.bf16 %v3165_v2, %v3164_v3  ;;  %v8557_v2 = vld [vmem:[#allocation18_spill] sm:$0xff] }
 0x333   : > { %v2302_v48 = vadd.f32 %v7093_v14, %v2026_v25 }
 0x335   : > { %5790 = vmatmul.msk.bf16.gmra.mxu2 %vm645_vm0, %v3456_v58  ;;  %v7284_v31 = vadd.f32 %v2527_v9, %v2302_v48  ;;  %v3426_v58 = vld [vmem:[#allocation2 + $0x76] sm:$0xff] }
 0x337   : > { %8552 = vst [vmem:[#allocation7_spill] sm:$0xff] %v7284_v31 }
 0x338   : > { %v1977_v8 = vpop.f32.mrf.mxu3  ;;  %v2532_v45 = vpop.f32.mrf.mxu2 }
 0x339   : > { %v2027_v55 = vadd.f32 %v1977_v8, %v8553_v46  ;;  %v7299_v46 = vpop.f32.mrf.mxu1 }
 0x33b   : > { %v2303_v24 = vadd.f32 %v7103_v50, %v2027_v55  ;;  %v3457_v50 = vpack.c.bf16 %v3427_v53, %v3426_v58  ;;  %v3429_v58 = vld [vmem:[#allocation2 + $0x8e] sm:$0xff] }
 0x33d   : > { %5664 = vmatmul.msk.bf16.gmra.mxu3 %vm645_vm0, %v2628_v4  ;;  %v7291_v14 = vadd.f32 %v2529_v57, %v2303_v24  ;;  %5756 = vmatmul.msk.bf16.gmra.mxu1 %vm645_vm0, %v3188_v16  ;;  %v2599_v57 = vld [vmem:[#allocation2 + $0x6c] sm:$0xff]  ;;  %v2598_v4 = vld [vmem:[#allocation2 + $0x64] sm:$0xff] }
 0x33f   : > { %8554 = vst [vmem:[#allocation8_spill] sm:$0xff] %v7291_v14 }
 0x340   : > { %v1980_v25 = vpop.f32.mrf.mxu3  ;;  %v2534_v9 = vpop.f32.mrf.mxu2 }
 0x341   : > { %v2028_v48 = vadd.f32 %v1980_v25, %v8555_v30  ;;  %v2629_v25 = vpack.c.bf16 %v2599_v57, %v2598_v4  ;;  %v3166_v30 = vld [vmem:[#allocation2 + $0xf5] sm:$0xff] }
 0x342   : > { %v3189_v14 = vpack.c.bf16 %v3167_v18, %v3166_v30  ;;  %v3169_v30 = vld [vmem:[#allocation2 + $0x10d] sm:$0xff] }
 0x343   : > { %v2304_v8 = vadd.f32 %v7117_v37, %v2028_v48  ;;  %v7303_v37 = vpop.f32.mrf.mxu0 }
 0x345   : > { %5791 = vmatmul.msk.bf16.gmra.mxu2 %vm645_vm0, %v3457_v50  ;;  %v7297_v36 = vadd.f32 %v2532_v45, %v2304_v8  ;;  %v7309_v8 = vpop.f32.mrf.mxu1  ;;  %v8559_v50 = vld [vmem:[#allocation19_spill] sm:$0xff] }
 0x347   : > { %8556 = vst [vmem:[#allocation9_spill] sm:$0xff] %v7297_v36 }
 0x348   : > { %v1982_v55 = vpop.f32.mrf.mxu3  ;;  %v2537_v24 = vpop.f32.mrf.mxu2 }
 0x349   : > { %v2029_v16 = vadd.f32 %v1982_v55, %v8557_v2  ;;  %v3428_v2 = vld [vmem:[#allocation2 + $0x86] sm:$0xff] }
 0x34a   : > { %v3458_v57 = vpack.c.bf16 %v3429_v58, %v3428_v2 }
 0x34b   : > { %v2305_v3 = vadd.f32 %v7135_v20, %v2029_v16  ;;  %v7316_v18 = vpop.f32.mrf.mxu0 }
 0x34d   : > { %5665 = vmatmul.msk.bf16.gmra.mxu3 %vm645_vm0, %v2629_v25  ;;  %v7306_v45 = vadd.f32 %v2534_v9, %v2305_v3  ;;  %5757 = vmatmul.msk.bf16.gmra.mxu1 %vm645_vm0, %v3189_v14  ;;  %v2601_v14 = vld [vmem:[#allocation2 + $0x7c] sm:$0xff]  ;;  %v8561_v3 = vld [vmem:[#allocation20_spill] sm:$0xff]  ;;  %v7319_v36 = vpop.f32.mrf.mxu1 }
 0x34f   : > { %8558 = vst [vmem:[#allocation10_spill] sm:$0xff] %v7306_v45  ;;  %v2600_v45 = vld [vmem:[#allocation2 + $0x74] sm:$0xff] }
 0x350   : > { %v1985_v53 = vpop.f32.mrf.mxu3  ;;  %v2539_v48 = vpop.f32.mrf.mxu2 }
 0x351   : > { %v2030_v55 = vadd.f32 %v1985_v53, %v8559_v50  ;;  %v2630_v50 = vpack.c.bf16 %v2601_v14, %v2600_v45 }
 0x353   : > { %v2306_v20 = vadd.f32 %v7145_v56, %v2030_v55  ;;  %v3168_v56 = vld [vmem:[#allocation2 + $0x105] sm:$0xff] }
 0x354   : > { %v3190_v58 = vpack.c.bf16 %v3169_v30, %v3168_v56  ;;  %v2603_v30 = vld [vmem:[#allocation2 + $0x8c] sm:$0xff]  ;;  %v3171_v56 = vld [vmem:[#allocation2 + $0x11d] sm:$0xff] }
 0x355   : > { %5792 = vmatmul.msk.bf16.gmra.mxu2 %vm645_vm0, %v3458_v57  ;;  %v7314_v16 = vadd.f32 %v2537_v24, %v2306_v20  ;;  %v3431_v20 = vld [vmem:[#allocation2 + $0x9e] sm:$0xff]  ;;  %v7326_v57 = vpop.f32.mrf.mxu0  ;;  %v7330_v45 = vpop.f32.mrf.mxu1 }
 0x357   : > { %8560 = vst [vmem:[#allocation11_spill] sm:$0xff] %v7314_v16  ;;  %v3430_v16 = vld [vmem:[#allocation2 + $0x96] sm:$0xff] }
 0x358   : > { %v1987_v9 = vpop.f32.mrf.mxu3  ;;  %v2542_v4 = vpop.f32.mrf.mxu2 }
 0x359   : > { %v2031_v25 = vadd.f32 %v1987_v9, %v8561_v3  ;;  %v8563_v9 = vld [vmem:[#allocation22_spill] sm:$0xff] }
 0x35b   : > { %v2307_v53 = vadd.f32 %v7169_v60, %v2031_v25  ;;  %v3459_v60 = vpack.c.bf16 %v3431_v20, %v3430_v16 }
 0x35d   : > { %5666 = vmatmul.msk.bf16.gmra.mxu3 %vm645_vm0, %v2630_v50  ;;  %v7323_v24 = vadd.f32 %v2539_v48, %v2307_v53  ;;  %5758 = vmatmul.msk.bf16.gmra.mxu1 %vm645_vm0, %v3190_v58  ;;  %v8565_v53 = vld [vmem:[#allocation23_spill] sm:$0xff] }
 0x35e   : > { %v2602_v58 = vld [vmem:[#allocation2 + $0x84] sm:$0xff] }
 0x35f   : > { %8562 = vst [vmem:[#allocation12_spill] sm:$0xff] %v7323_v24  ;;  %v7336_v24 = vpop.f32.mrf.mxu0 }
 0x360   : > { %v1990_v55 = vpop.f32.mrf.mxu3  ;;  %v2544_v2 = vpop.f32.mrf.mxu2 }
 0x361   : > { %v2032_v3 = vadd.f32 %v1990_v55, %v8563_v9  ;;  %v2631_v9 = vpack.c.bf16 %v2603_v30, %v2602_v58  ;;  %v5816_v30 = vld [vmem:[%s8485_s8 + $0x18] sm:$0xf0] }
 0x363   : > { %v2308_v31 = vadd.f32 %v7191_v19, %v2032_v3  ;;  %v3170_v19 = vld [vmem:[#allocation2 + $0x115] sm:$0xff] }
 0x364   : > { %v3191_v16 = vpack.c.bf16 %v3171_v56, %v3170_v19  ;;  %v5808_v19 = vld [vmem:[%s8485_s8 + $0x8] sm:$0xf0] }
 0x365   : > { %5793 = vmatmul.msk.bf16.gmra.mxu2 %vm645_vm0, %v3459_v60  ;;  %v7333_v14 = vadd.f32 %v2542_v4, %v2308_v31  ;;  %v7343_v31 = vpop.f32.mrf.mxu1  ;;  %v3433_v60 = vld [vmem:[#allocation2 + $0xae] sm:$0xff] }
 0x367   : > { %8564 = vst [vmem:[#allocation13_spill] sm:$0xff] %v7333_v14  ;;  %v3432_v14 = vld [vmem:[#allocation2 + $0xa6] sm:$0xff]  ;;  %v7353_v58 = vpop.f32.mrf.mxu0 }
 0x368   : > { %v1992_v48 = vpop.f32.mrf.mxu3  ;;  %v2547_v25 = vpop.f32.mrf.mxu2  ;;  %8568 = vst [vmem:[#allocation15_spill] sm:$0xff] %v7353_v58  ;;  %v3172_v58 = vld [vmem:[#allocation2 + $0x125] sm:$0xff] }
 0x369   : > { %v2033_v50 = vadd.f32 %v1992_v48, %v8565_v53  ;;  %v8567_v48 = vld [vmem:[#allocation26_spill] sm:$0xff] }
 0x36b   : > { %v2309_v55 = vadd.f32 %v7204_v43, %v2033_v50  ;;  %v6076_v43 = vld [vmem:[%s8485_s8 + $0x14] sm:$0xf]  ;;  %v3460_v50 = vpack.c.bf16 %v3433_v60, %v3432_v14  ;;  %v6077_v14 = vld [vmem:[%s8485_s8 + $0x14] sm:$0xf0] }
 0x36c   : > { %v5819_v56 = vor.u32 %v6076_v43, %v5816_v30  ;;  %v5956_v43 = vld [vmem:[%s8488_s11 + $0x18] sm:$0xf0] }
 0x36d   : > { %5667 = vmatmul.msk.bf16.gmra.mxu3 %vm645_vm0, %v2631_v9  ;;  %v7340_v20 = vadd.f32 %v2544_v2, %v2309_v55  ;;  %5759 = vmatmul.msk.bf16.gmra.mxu1 %vm645_vm0, %v3191_v16  ;;  %v6074_v9 = vld [vmem:[%s8485_s8 + $0x4] sm:$0xf]  ;;  %v7376_v30 = vpop.f32.mrf.mxu1 }
 0x36e   : > { %4033 = vmatpush.bf16.msrb.mxu0 %v5819_v56  ;;  %v5811_v16 = vor.u32 %v6074_v9, %v5808_v19  ;;  %v3173_v56 = vld [vmem:[#allocation2 + $0x12d] sm:$0xff]  ;;  %v6103_v9 = vld [vmem:[%s8488_s11 + $0x14] sm:$0xf0] }
 0x36f   : > { %8566 = vst [vmem:[#allocation14_spill] sm:$0xff] %v7340_v20  ;;  %v5954_v20 = vld [vmem:[%s8488_s11 + $0x10] sm:$0xf]  ;;  %v2604_v19 = vld [vmem:[#allocation2 + $0x94] sm:$0xff] }
 0x370   : > { %v1995_v4 = vpop.f32.mrf.mxu3  ;;  %v2549_v3 = vpop.f32.mrf.mxu2 }
 0x371   : > { %v2034_v53 = vadd.f32 %v1995_v4, %v8567_v48  ;;  %v2605_v48 = vld [vmem:[#allocation2 + $0x9c] sm:$0xff] }
 0x372   : > { %4034 = vmatpush.bf16.msrb.mxu0 %v5811_v16  ;;  %v2632_v12 = vpack.c.bf16 %v2605_v48, %v2604_v19 }
 0x373   : > { %v2310_v2 = vadd.f32 %v7212_v35, %v2034_v53  ;;  %v5814_v35 = vld [vmem:[%s8485_s8 + $0x10] sm:$0xf] }
 0x374   : > { %v5815_v53 = vor.u32 %v6077_v14, %v5814_v35  ;;  %v5955_v35 = vor.u32 %v6103_v9, %v5954_v20 }
 0x375   : > { %5794 = vmatmul.msk.bf16.gmra.mxu2 %vm645_vm0, %v3460_v50  ;;  %v7356_v55 = vadd.f32 %v2547_v25, %v2310_v2  ;;  %v6102_v25 = vld [vmem:[%s8488_s11 + $0x14] sm:$0xf] }
 0x376   : > { %v8570_v2 = vld [vmem:[#allocation28_spill] sm:$0xff]  ;;  %3934 = vmatpush.bf16.msra.mxu3 %v5815_v53  ;;  %4691 = vmatpush.bf16.msrb.mxu1 %v5955_v35 }
 0x377   : > { %8569 = vst [vmem:[#allocation16_spill] sm:$0xff] %v7356_v55  ;;  %v5959_v55 = vor.u32 %v6102_v25, %v5956_v43  ;;  %v7390_v43 = vpop.f32.mrf.mxu0  ;;  %v3434_v53 = vld [vmem:[#allocation2 + $0xb6] sm:$0xff] }
 0x378   : > { %v1997_v4 = vpop.f32.mrf.mxu3  ;;  %v3566_v60 = vpop.f32.mrf.mxu2  ;;  %v3174_v35 = vld [vmem:[#allocation2 + $0x135] sm:$0xff] }
 0x379   : > { %v2035_v50 = vadd.f32 %v1997_v4, %v8570_v2  ;;  %4790 = vmatpush.bf16.msrb.mxu2 %v5959_v55  ;;  %v3192_v4 = vpack.c.bf16 %v3173_v56, %v3172_v58  ;;  %v3461_v58 = vpack.c.bf16 %v3435_v40, %v3434_v53  ;;  %v2606_v40 = vld [vmem:[#allocation2 + $0xa4] sm:$0xff] }
 0x37b   : > { %v2311_v14 = vadd.f32 %v7220_v47, %v2035_v50  ;;  %v7393_v47 = vpop.f32.mrf.mxu1  ;;  %v2607_v50 = vld [vmem:[#allocation2 + $0xac] sm:$0xff] }
 0x37d   : > { %5668 = vmatmul.msk.bf16.gmra.mxu3 %vm645_vm0, %v2632_v12  ;;  %v7387_v25 = vadd.f32 %v2549_v3, %v2311_v14  ;;  %5760 = vmatmul.msk.bf16.gmra.mxu1 %vm645_vm0, %v3192_v4  ;;  %v2633_v14 = vpack.c.bf16 %v2607_v50, %v2606_v40 }
 0x37f   : > { %v7398_v56 = vpop.f32.mrf.mxu0 }
 0x380   : > { %v2738_v2 = vpop.f32.mrf.mxu3  ;;  %v3568_v16 = vpop.f32.mrf.mxu2 }
 0x381   : > { %v2828_v20 = vadd.f32 %v2738_v2, %v6982_v21  ;;  %v7403_v21 = vld [vmem:[%s8483_s6] ss:$0 sm:$0xff] }
 0x383   : > { %v3104_v55 = vadd.f32 %v7020_v63, %v2828_v20  ;;  %v3175_v63 = vld [vmem:[#allocation2 + $0x13d] sm:$0xff]  ;;  %v7407_v2 = vpop.f32.mrf.mxu1 }
 0x384   : > { %v3193_v4 = vpack.c.bf16 %v3175_v63, %v3174_v35 }
 0x385   : > { %v3380_v48 = vadd.f32 %v7229_v38, %v3104_v55  ;;  %5795 = vmatmul.msk.bf16.gmra.mxu2 %vm645_vm0, %v3461_v58  ;;  %v3437_v58 = vld [vmem:[#allocation2 + $0xce] sm:$0xff] }
 0x387   : > { %v3656_v9 = vadd.f32 %v3566_v60, %v3380_v48  ;;  %v7413_v60 = vld [vmem:[%s8484_s7] ss:$0 sm:$0xff] }
 0x388   : > { %v2740_v12 = vpop.f32.mrf.mxu3  ;;  %v3571_v3 = vpop.f32.mrf.mxu2 }
 0x389   : > { %v2829_v19 = vadd.f32 %v2740_v12, %v6994_v41  ;;  %v3696_v20 = vmul.f32 %v7403_v21, %v3656_v9  ;;  %v3436_v9 = vld [vmem:[#allocation2 + $0xc6] sm:$0xff] }
 0x38a   : > { %v3462_v63 = vpack.c.bf16 %v3437_v58, %v3436_v9 }
 0x38b   : > { %v3105_v38 = vadd.f32 %v7030_v62, %v2829_v19  ;;  %v3736_v48 = vadd.f32 %v7413_v60, %v3696_v20  ;;  %v7421_v19 = vpop.f32.mrf.mxu0 }
 0x38d   : > { %v3381_v53 = vadd.f32 %v7240_v11, %v3105_v38  ;;  %5669 = vmatmul.msk.bf16.gmra.mxu3 %vm645_vm0, %v2633_v14  ;;  %5761 = vmatmul.msk.bf16.gmra.mxu1 %vm645_vm0, %v3193_v4  ;;  %v3772_v40 = vmax.f32 %v3736_v48, 0.0  ;;  %v7427_v14 = vpop.f32.mrf.mxu1 }
 0x38f   : > { %v3657_v41 = vadd.f32 %v3568_v16, %v3381_v53  ;;  %v2609_v53 = vld [vmem:[#allocation2 + $0xbc] sm:$0xff] }
 0x390   : > { %v2743_v55 = vpop.f32.mrf.mxu3  ;;  %v3573_v62 = vpop.f32.mrf.mxu2 }
 0x391   : > { %v3697_v12 = vmul.f32 %v7403_v21, %v3657_v41  ;;  %v2830_v50 = vadd.f32 %v2743_v55, %v7005_v42 }
 0x393   : > { %v3737_v35 = vadd.f32 %v7413_v60, %v3697_v12  ;;  %v3106_v11 = vadd.f32 %v7043_v51, %v2830_v50  ;;  %v2608_v51 = vld [vmem:[#allocation2 + $0xb4] sm:$0xff] }
 0x394   : > { %v2634_v48 = vpack.c.bf16 %v2609_v53, %v2608_v51 }
 0x395   : > { %v3773_v38 = vmax.f32 %v3737_v35, 0.0  ;;  %v3382_v16 = vadd.f32 %v7259_v7, %v3106_v11  ;;  %5796 = vmatmul.msk.bf16.gmra.mxu2 %vm645_vm0, %v3462_v63  ;;  %v7435_v7 = vpop.f32.mrf.mxu0  ;;  %v3439_v11 = vld [vmem:[#allocation2 + $0xde] sm:$0xff] }
 0x397   : > { %v7429_v4 = vpack.c.bf16 %v3773_v38, %v3772_v40  ;;  %v3658_v41 = vadd.f32 %v3571_v3, %v3382_v16  ;;  %v3438_v38 = vld [vmem:[#allocation2 + $0xd6] sm:$0xff] }
 0x398   : > { %v2745_v20 = vpop.f32.mrf.mxu3  ;;  %v3576_v42 = vpop.f32.mrf.mxu2 }
 0x399   : > { %v2831_v55 = vadd.f32 %v2745_v20, %v7015_v52  ;;  %5854 = vmatmul.msk.bf16.vlgmr.msrb.gmra.mxu0 %vm645_vm0, %v7429_v4  ;;  %v3698_v12 = vmul.f32 %v7403_v21, %v3658_v41  ;;  %v7440_v52 = vpop.f32.mrf.mxu1  ;;  %v3463_v20 = vpack.c.bf16 %v3439_v11, %v3438_v38  ;;  %v3441_v38 = vld [vmem:[#allocation2 + $0xee] sm:$0xff] }
 0x39b   : > { %v3107_v58 = vadd.f32 %v7060_v13, %v2831_v55  ;;  %v3738_v13 = vadd.f32 %v7413_v60, %v3698_v12 }
 0x39d   : > { %v3383_v50 = vadd.f32 %v7280_v32, %v3107_v58  ;;  %5670 = vmatmul.msk.bf16.gmra.mxu3 %vm645_vm0, %v2634_v48  ;;  %v7449_v55 = vpop.f32.mrf.mxu0  ;;  %v2611_v48 = vld [vmem:[#allocation2 + $0xcc] sm:$0xff] }
 0x39f   : > { %v3659_v9 = vadd.f32 %v3573_v62, %v3383_v50  ;;  %v3774_v62 = vmax.f32 %v3738_v13, 0.0 }
 0x3a0   : > { %v2748_v35 = vpop.f32.mrf.mxu3  ;;  %v3578_v3 = vpop.f32.mrf.mxu2 }
 0x3a1   : > { %v3699_v63 = vmul.f32 %v7403_v21, %v3659_v9  ;;  %v2832_v40 = vadd.f32 %v2748_v35, %v7026_v10  ;;  %v7456_v9 = vpop.f32.mrf.mxu1 }
 0x3a3   : > { %v3108_v16 = vadd.f32 %v7078_v49, %v2832_v40  ;;  %v3739_v32 = vadd.f32 %v7413_v60, %v3699_v63  ;;  %v2610_v49 = vld [vmem:[#allocation2 + $0xc4] sm:$0xff] }
 0x3a4   : > { %v2635_v35 = vpack.c.bf16 %v2611_v48, %v2610_v49  ;;  %v2613_v49 = vld [vmem:[#allocation2 + $0xdc] sm:$0xff] }
 0x3a5   : > { %v3384_v53 = vadd.f32 %v7288_v54, %v3108_v16  ;;  %5797 = vmatmul.msk.bf16.gmra.mxu2 %vm645_vm0, %v3463_v20  ;;  %v3775_v41 = vmax.f32 %v3739_v32, 0.0 }
 0x3a7   : > { %v7451_v51 = vpack.c.bf16 %v3775_v41, %v3774_v62  ;;  %v3660_v12 = vadd.f32 %v3576_v42, %v3384_v53 }
 0x3a8   : > { %v2750_v58 = vpop.f32.mrf.mxu3  ;;  %v3581_v10 = vpop.f32.mrf.mxu2 }
 0x3a9   : > { %v2833_v50 = vadd.f32 %v2750_v58, %v7038_v34  ;;  %5855 = vmatmul.msk.bf16.gmra.mxu0 %vm645_vm0, %v7451_v51  ;;  %v3700_v11 = vmul.f32 %v7403_v21, %v3660_v12  ;;  %v7462_v34 = vpop.f32.mrf.mxu0  ;;  %v7469_v41 = vpop.f32.mrf.mxu1 }
 0x3ab   : > { %v3109_v54 = vadd.f32 %v7091_v5, %v2833_v50  ;;  %v3740_v32 = vadd.f32 %v7413_v60, %v3700_v11  ;;  %v3440_v5 = vld [vmem:[#allocation2 + $0xe6] sm:$0xff] }
 0x3ac   : > { %v3464_v62 = vpack.c.bf16 %v3441_v38, %v3440_v5  ;;  %v6100_v11 = vld [vmem:[%s8488_s11 + $0x4] sm:$0xf] }
 0x3ad   : > { %v3385_v63 = vadd.f32 %v7299_v46, %v3109_v54  ;;  %5671 = vmatmul.msk.bf16.gmra.mxu3 %vm645_vm0, %v2635_v35  ;;  %v3776_v58 = vmax.f32 %v3740_v32, 0.0 }
 0x3af   : > { %v3661_v40 = vadd.f32 %v3578_v3, %v3385_v63  ;;  %v2612_v63 = vld [vmem:[#allocation2 + $0xd4] sm:$0xff] }
 0x3b0   : > { %v2753_v13 = vpop.f32.mrf.mxu3  ;;  %v3583_v42 = vpop.f32.mrf.mxu2  ;;  %v2636_v38 = vpack.c.bf16 %v2613_v49, %v2612_v63  ;;  %v3442_v49 = vld [vmem:[#allocation2 + $0xf6] sm:$0xff] }
 0x3b1   : > { %v3701_v16 = vmul.f32 %v7403_v21, %v3661_v40  ;;  %v2834_v20 = vadd.f32 %v2753_v13, %v7055_v23  ;;  %v7496_v5 = vpop.f32.mrf.mxu1 }
 0x3b3   : > { %v3110_v53 = vadd.f32 %v7101_v29, %v2834_v20  ;;  %v3741_v46 = vadd.f32 %v7413_v60, %v3701_v16  ;;  %v5806_v29 = vld [vmem:[%s8485_s8] sm:$0xf] }
 0x3b5   : > { %v3386_v3 = vadd.f32 %v7309_v8, %v3110_v53  ;;  %5798 = vmatmul.msk.bf16.gmra.mxu2 %vm645_vm0, %v3464_v62  ;;  %v3777_v48 = vmax.f32 %v3741_v46, 0.0  ;;  %v6075_v8 = vld [vmem:[%s8485_s8 + $0x4] sm:$0xf0] }
 0x3b6   : > { %v5807_v40 = vor.u32 %v6075_v8, %v5806_v29 }
 0x3b7   : > { %v7473_v12 = vpack.c.bf16 %v3777_v48, %v3776_v58  ;;  %v3662_v54 = vadd.f32 %v3581_v10, %v3386_v3  ;;  %v7490_v10 = vpop.f32.mrf.mxu0  ;;  %v3443_v3 = vld [vmem:[#allocation2 + $0xfe] sm:$0xff] }
 0x3b8   : > { %v2755_v50 = vpop.f32.mrf.mxu3  ;;  %v3586_v23 = vpop.f32.mrf.mxu2  ;;  %3935 = vmatpush.bf16.msra.mxu3 %v5807_v40 }
 0x3b9   : > { %v2835_v35 = vadd.f32 %v2755_v50, %v7067_v26  ;;  %5856 = vmatmul.msk.bf16.gmra.mxu0 %vm645_vm0, %v7473_v12  ;;  %v5948_v26 = vld [vmem:[%s8488_s11 + $0x8] sm:$0xf0]  ;;  %v3702_v20 = vmul.f32 %v7403_v21, %v3662_v54  ;;  %v5946_v50 = vld [vmem:[%s8488_s11] sm:$0xf] }
 0x3ba   : > { %v5951_v16 = vor.u32 %v6100_v11, %v5948_v26 }
 0x3bb   : > { %v3111_v13 = vadd.f32 %v7115_v39, %v2835_v35  ;;  %v3742_v48 = vadd.f32 %v7413_v60, %v3702_v20  ;;  %v3465_v35 = vpack.c.bf16 %v3443_v3, %v3442_v49 }
 0x3bc   : > { %4791 = vmatpush.bf16.msrb.mxu2 %v5951_v16  ;;  %v7515_v16 = vpop.f32.mrf.mxu1 }
 0x3bd   : > { %v3387_v32 = vadd.f32 %v7319_v36, %v3111_v13  ;;  %5672 = vmatmul.msk.bf16.gmra.mxu3 %vm645_vm0, %v2636_v38  ;;  %v6101_v36 = vld [vmem:[%s8488_s11 + $0x4] sm:$0xf0]  ;;  %v3778_v11 = vmax.f32 %v3742_v48, 0.0  ;;  %v2615_v38 = vld [vmem:[#allocation2 + $0xec] sm:$0xff] }
 0x3be   : > { %v5947_v54 = vor.u32 %v6101_v36, %v5946_v50  ;;  %v3445_v50 = vld [vmem:[#allocation2 + $0x10e] sm:$0xff] }
 0x3bf   : > { %v3663_v53 = vadd.f32 %v3583_v42, %v3387_v32  ;;  %v7509_v8 = vpop.f32.mrf.mxu0  ;;  %v2614_v32 = vld [vmem:[#allocation2 + $0xe4] sm:$0xff] }
 0x3c0   : > { %v2758_v62 = vpop.f32.mrf.mxu3  ;;  %v3588_v46 = vpop.f32.mrf.mxu2  ;;  %4692 = vmatpush.bf16.msrb.mxu1 %v5947_v54 }
 0x3c1   : > { %v3703_v58 = vmul.f32 %v7403_v21, %v3663_v53  ;;  %v2836_v39 = vadd.f32 %v2758_v62, %v7074_v28  ;;  %v2637_v53 = vpack.c.bf16 %v2615_v38, %v2614_v32 }
 0x3c3   : > { %v3112_v42 = vadd.f32 %v7133_v17, %v2836_v39  ;;  %v3743_v29 = vadd.f32 %v7413_v60, %v3703_v58 }
 0x3c4   : > { %v7529_v54 = vpop.f32.mrf.mxu1 }
 0x3c5   : > { %v3388_v28 = vadd.f32 %v7330_v45, %v3112_v42  ;;  %5799 = vmatmul.msk.bf16.gmra.mxu2 %vm645_vm0, %v3465_v35  ;;  %v3779_v63 = vmax.f32 %v3743_v29, 0.0 }
 0x3c7   : > { %v7513_v40 = vpack.c.bf16 %v3779_v63, %v3778_v11  ;;  %v3664_v17 = vadd.f32 %v3586_v23, %v3388_v28  ;;  %v7524_v58 = vpop.f32.mrf.mxu0 }
 0x3c8   : > { %v2760_v26 = vpop.f32.mrf.mxu3  ;;  %v3591_v13 = vpop.f32.mrf.mxu2 }
 0x3c9   : > { %v2837_v20 = vadd.f32 %v2760_v26, %v7086_v33  ;;  %5857 = vmatmul.msk.bf16.gmra.mxu0 %vm645_vm0, %v7513_v40  ;;  %v3704_v62 = vmul.f32 %v7403_v21, %v3664_v17  ;;  %v2617_v26 = vld [vmem:[#allocation2 + $0xfc] sm:$0xff] }
 0x3cb   : > { %v3113_v45 = vadd.f32 %v7143_v22, %v2837_v20  ;;  %v3744_v49 = vadd.f32 %v7413_v60, %v3704_v62  ;;  %v3444_v22 = vld [vmem:[#allocation2 + $0x106] sm:$0xff] }
 0x3cd   : > { %v3389_v3 = vadd.f32 %v7343_v31, %v3113_v45  ;;  %5673 = vmatmul.msk.bf16.gmra.mxu3 %vm645_vm0, %v2637_v53  ;;  %v3466_v31 = vpack.c.bf16 %v3445_v50, %v3444_v22  ;;  %v7543_v45 = vpop.f32.mrf.mxu1 }
 0x3cf   : > { %v3665_v39 = vadd.f32 %v3588_v46, %v3389_v3  ;;  %v3780_v46 = vmax.f32 %v3744_v49, 0.0  ;;  %v7537_v38 = vpop.f32.mrf.mxu0 }
 0x3d0   : > { %v2763_v48 = vpop.f32.mrf.mxu3  ;;  %v3593_v23 = vpop.f32.mrf.mxu2 }
 0x3d1   : > { %v3705_v33 = vmul.f32 %v7403_v21, %v3665_v39  ;;  %v2838_v36 = vadd.f32 %v2763_v48, %v7097_v44  ;;  %v3447_v48 = vld [vmem:[#allocation2 + $0x11e] sm:$0xff] }
 0x3d3   : > { %v3114_v42 = vadd.f32 %v7167_v15, %v2838_v36  ;;  %v3745_v35 = vadd.f32 %v7413_v60, %v3705_v33  ;;  %v2616_v15 = vld [vmem:[#allocation2 + $0xf4] sm:$0xff] }
 0x3d4   : > { %v2638_v32 = vpack.c.bf16 %v2617_v26, %v2616_v15 }
 0x3d5   : > { %v3390_v29 = vadd.f32 %v7376_v30, %v3114_v42  ;;  %5800 = vmatmul.msk.bf16.gmra.mxu2 %vm645_vm0, %v3466_v31  ;;  %v3781_v28 = vmax.f32 %v3745_v35, 0.0  ;;  %v7557_v35 = vpop.f32.mrf.mxu1 }
 0x3d7   : > { %v7535_v11 = vpack.c.bf16 %v3781_v28, %v3780_v46  ;;  %v3666_v17 = vadd.f32 %v3591_v13, %v3390_v29  ;;  %v7551_v36 = vpop.f32.mrf.mxu0 }
 0x3d8   : > { %v2765_v63 = vpop.f32.mrf.mxu3  ;;  %v3596_v44 = vpop.f32.mrf.mxu2 }
 0x3d9   : > { %v2839_v20 = vadd.f32 %v2765_v63, %v7109_v6  ;;  %5858 = vmatmul.msk.bf16.gmra.mxu0 %vm645_vm0, %v7535_v11  ;;  %v3706_v53 = vmul.f32 %v7403_v21, %v3666_v17 }
 0x3db   : > { %v3115_v30 = vadd.f32 %v7189_v0, %v2839_v20  ;;  %v3746_v33 = vadd.f32 %v7413_v60, %v3706_v53  ;;  %v3446_v0 = vld [vmem:[#allocation2 + $0x116] sm:$0xff] }
 0x3dc   : > { %v3467_v22 = vpack.c.bf16 %v3447_v48, %v3446_v0  ;;  %v3448_v0 = vld [vmem:[#allocation2 + $0x126] sm:$0xff] }
 0x3dd   : > { %v3391_v62 = vadd.f32 %v7393_v47, %v3115_v30  ;;  %5674 = vmatmul.msk.bf16.gmra.mxu3 %vm645_vm0, %v2638_v32  ;;  %v6082_v32 = vld [vmem:[%s6261_s18 + $0x8] sm:$0xf0] }
 0x3df   : > { %v3667_v3 = vadd.f32 %v3593_v23, %v3391_v62  ;;  %v3782_v23 = vmax.f32 %v3746_v33, 0.0  ;;  %v7566_v15 = vpop.f32.mrf.mxu0  ;;  %v3449_v62 = vld [vmem:[#allocation2 + $0x12e] sm:$0xff] }
 0x3e0   : > { %v2768_v39 = vpop.f32.mrf.mxu3  ;;  %v3598_v13 = vpop.f32.mrf.mxu2 }
 0x3e1   : > { %v3707_v6 = vmul.f32 %v7403_v21, %v3667_v3  ;;  %v2840_v50 = vadd.f32 %v2768_v39, %v7120_v61 }
 0x3e3   : > { %v3116_v49 = vadd.f32 %v7303_v37, %v2840_v50  ;;  %v3747_v47 = vadd.f32 %v7413_v60, %v3707_v6  ;;  %v2619_v37 = vld [vmem:[#allocation2 + $0x10c] sm:$0xff] }
 0x3e5   : > { %v3392_v42 = vadd.f32 %v7407_v2, %v3116_v49  ;;  %5801 = vmatmul.msk.bf16.gmra.mxu2 %vm645_vm0, %v3467_v22  ;;  %v3783_v31 = vmax.f32 %v3747_v47, 0.0  ;;  %v2618_v2 = vld [vmem:[#allocation2 + $0x104] sm:$0xff]  ;;  %v3468_v22 = vpack.c.bf16 %v3449_v62, %v3448_v0 }
 0x3e6   : > { %v2639_v17 = vpack.c.bf16 %v2619_v37, %v2618_v2  ;;  %v3451_v0 = vld [vmem:[#allocation2 + $0x13e] sm:$0xff] }
 0x3e7   : > { %v7559_v61 = vpack.c.bf16 %v3783_v31, %v3782_v23  ;;  %v3668_v29 = vadd.f32 %v3596_v44, %v3392_v42  ;;  %v5874_v44 = vld [vmem:[%s6261_s18 + $0x8] sm:$0xe] }
 0x3e8   : > { %v2770_v46 = vpop.f32.mrf.mxu3  ;;  %v3601_v28 = vpop.f32.mrf.mxu2  ;;  %v5875_v3 = vor.u32 %v6082_v32, %v5874_v44 }
 0x3e9   : > { %v2841_v63 = vadd.f32 %v2770_v46, %v7128_v1  ;;  %5859 = vmatmul.msk.bf16.gmra.mxu0 %vm645_vm0, %v7559_v61  ;;  %v3708_v20 = vmul.f32 %v7403_v21, %v3668_v29  ;;  %v6083_v1 = vld [vmem:[%s6261_s18 + $0x10] sm:$0xff] }
 0x3ea   : > { %v4425_v49 = vshll.u32 %v5875_v3, 16  ;;  %v4430_v47 = vshrl.u32 %v6083_v1, 16  ;;  %v4433_v42 = vshll.u32 %v6083_v1, 16  ;;  %v2620_v1 = vld [vmem:[#allocation2 + $0x114] sm:$0xff] }
 0x3eb   : > { %v3117_v26 = vadd.f32 %v7316_v18, %v2841_v63  ;;  %v3748_v6 = vadd.f32 %v7413_v60, %v3708_v20  ;;  %v7574_v18 = vpop.f32.mrf.mxu1  ;;  %v7582_v20 = vpop.f32.mrf.mxu0 }
 0x3ec   : > { %v4427_v29 = vrot.slane %v4425_v49, 2  ;;  %v4432_v46 = vrot.slane %v4430_v47, 1  ;;  %v4435_v37 = vrot.slane %v4433_v42, 2 }
 0x3ed   : > { %v3393_v30 = vadd.f32 %v7427_v14, %v3117_v26  ;;  %5675 = vmatmul.msk.bf16.gmra.mxu3 %vm645_vm0, %v2639_v17  ;;  %v4422_v14 = vshrl.u32 %v5875_v3, 16  ;;  %v3784_v2 = vmax.f32 %v3748_v6, 0.0 }
 0x3ee   : > { %v4436_v17 = vor.u32 %v4435_v37, %v4432_v46 }
 0x3ef   : > { %v3669_v53 = vadd.f32 %v3598_v13, %v3393_v30  ;;  %v4424_v31 = vrot.slane %v4422_v14, 1  ;;  %v6084_v14 = vld [vmem:[%s6261_s18 + $0x18] sm:$0xff] }
 0x3f0   : > { %v2773_v39 = vpop.f32.mrf.mxu3  ;;  %v3603_v48 = vpop.f32.mrf.mxu2 }
 0x3f1   : > { %v3709_v50 = vmul.f32 %v7403_v21, %v3669_v53  ;;  %v2842_v33 = vadd.f32 %v2773_v39, %v7139_v27  ;;  %v4428_v26 = vor.u32 %v4427_v29, %v4424_v31  ;;  %v2621_v53 = vld [vmem:[#allocation2 + $0x11c] sm:$0xff]  ;;  %v4439_v31 = vshrl.u32 %v6084_v14, 16 }
 0x3f2   : > { %v2640_v39 = vpack.c.bf16 %v2621_v53, %v2620_v1  ;;  %v4442_v29 = vshll.u32 %v6084_v14, 16 }
 0x3f3   : > { %v3118_v13 = vadd.f32 %v7326_v57, %v2842_v33  ;;  %v3749_v23 = vadd.f32 %v7413_v60, %v3709_v50  ;;  %v7587_v62 = vsel %vm4420_vm1, %v4428_v26, %v4436_v17  ;;  %v7594_v3 = vpop.f32.mrf.mxu1  ;;  %v7602_v42 = vpop.f32.mrf.mxu0 }
 0x3f4   : > { %5976 = vmatmul.msk.bf16.vlgmr.msrb.gmra.mxu1 %vm645_vm0, %v7587_v62 }
 0x3f5   : > { %v3394_v63 = vadd.f32 %v7440_v52, %v3118_v13  ;;  %5802 = vmatmul.msk.bf16.gmra.mxu2 %vm645_vm0, %v3468_v22  ;;  %v3785_v27 = vmax.f32 %v3749_v23, 0.0 }
 0x3f7   : > { %v7584_v30 = vpack.c.bf16 %v3785_v27, %v3784_v2  ;;  %v3670_v57 = vadd.f32 %v3601_v28, %v3394_v63  ;;  %v4441_v63 = vrot.slane %v4439_v31, 1  ;;  %v4444_v2 = vrot.slane %v4442_v29, 2 }
 0x3f8   : > { %v2775_v44 = vpop.f32.mrf.mxu3  ;;  %v3606_v32 = vpop.f32.mrf.mxu2 }
 0x3f9   : > { %v2843_v52 = vadd.f32 %v2775_v44, %v7151_v59  ;;  %5860 = vmatmul.msk.bf16.gmra.mxu0 %vm645_vm0, %v7584_v30  ;;  %v3710_v6 = vmul.f32 %v7403_v21, %v3670_v57  ;;  %v3450_v59 = vld [vmem:[#allocation2 + $0x136] sm:$0xff]  ;;  %v4445_v53 = vor.u32 %v4444_v2, %v4441_v63 }
 0x3fa   : > { %v3469_v46 = vpack.c.bf16 %v3451_v0, %v3450_v59 }
 0x3fb   : > { %v3119_v28 = vadd.f32 %v7336_v24, %v2843_v52  ;;  %v3750_v47 = vadd.f32 %v7413_v60, %v3710_v6  ;;  %v8571_v24 = vld [vmem:[#allocation21_spill] sm:$0xff]  ;;  %v7608_v27 = vpop.f32.mrf.mxu1  ;;  %v2623_v6 = vld [vmem:[#allocation2 + $0x12c] sm:$0xff]  ;;  %v7619_v0 = vpop.f32.mrf.mxu0 }
 0x3fd   : > { %v3395_v50 = vadd.f32 %v7456_v9, %v3119_v28  ;;  %5676 = vmatmul.msk.bf16.gmra.mxu3 %vm645_vm0, %v2640_v39  ;;  %v8572_v9 = vld [vmem:[#allocation15_spill] sm:$0xff]  ;;  %v3786_v57 = vmax.f32 %v3750_v47, 0.0 }
 0x3ff   : > { %v3671_v33 = vadd.f32 %v3603_v48, %v3395_v50  ;;  %v4446_v50 = vsel %vm4420_vm1, %v4436_v17, %v4445_v53 }
 0x400   : > { %v2778_v49 = vpop.f32.mrf.mxu3  ;;  %v3608_v22 = vpop.f32.mrf.mxu2 }
 0x401   : > { %v3711_v13 = vmul.f32 %v7403_v21, %v3671_v33  ;;  %v2844_v23 = vadd.f32 %v2778_v49, %v8571_v24  ;;  %v8573_v33 = vld [vmem:[#allocation3_spill] sm:$0xff]  ;;  %v6085_v24 = vld [vmem:[%s6261_s18 + $0x20] sm:$0xff] }
 0x403   : > { %v3120_v37 = vadd.f32 %v8572_v9, %v2844_v23  ;;  %v3751_v48 = vadd.f32 %v7413_v60, %v3711_v13  ;;  %v7625_v17 = vpop.f32.mrf.mxu1  ;;  %v8574_v9 = vld [vmem:[#allocation24_spill] sm:$0xff] }
 0x404   : > { %5977 = vmatmul.msk.bf16.gmra.mxu1 %vm645_vm0, %v4446_v50 }
 0x405   : > { %v3396_v26 = vadd.f32 %v7469_v41, %v3120_v37  ;;  %5803 = vmatmul.msk.bf16.gmra.mxu2 %vm645_vm0, %v3469_v46  ;;  %v3787_v44 = vmax.f32 %v3751_v48, 0.0  ;;  %v2622_v41 = vld [vmem:[#allocation2 + $0x124] sm:$0xff]  ;;  %v4451_v48 = vshll.u32 %v6085_v24, 16 }
 0x406   : > { %v2641_v49 = vpack.c.bf16 %v2623_v6, %v2622_v41 }
 0x407   : > { %v7612_v52 = vpack.c.bf16 %v3787_v44, %v3786_v57  ;;  %v3672_v1 = vadd.f32 %v3606_v32, %v3396_v26  ;;  %v4453_v26 = vrot.slane %v4451_v48, 2  ;;  %v7633_v57 = vpop.f32.mrf.mxu0 }
 0x408   : > { %v2780_v28 = vpop.f32.mrf.mxu3  ;;  %v3611_v39 = vpop.f32.mrf.mxu2 }
 0x409   : > { %v2845_v59 = vadd.f32 %v2780_v28, %v8573_v33  ;;  %5861 = vmatmul.msk.bf16.gmra.mxu0 %vm645_vm0, %v7612_v52  ;;  %v3712_v32 = vmul.f32 %v7403_v21, %v3672_v1 }
 0x40b   : > { %v3121_v14 = vadd.f32 %v7390_v43, %v2845_v59  ;;  %v3752_v29 = vadd.f32 %v7413_v60, %v3712_v32  ;;  %v4448_v43 = vshrl.u32 %v6085_v24, 16  ;;  %v7641_v41 = vpop.f32.mrf.mxu1 }
 0x40d   : > { %v3397_v47 = vadd.f32 %v7496_v5, %v3121_v14  ;;  %5677 = vmatmul.msk.bf16.gmra.mxu3 %vm645_vm0, %v2641_v49  ;;  %v4450_v2 = vrot.slane %v4448_v43, 1  ;;  %v3788_v44 = vmax.f32 %v3752_v29, 0.0  ;;  %v8575_v49 = vld [vmem:[#allocation4_spill] sm:$0xff] }
 0x40f   : > { %v3673_v13 = vadd.f32 %v3608_v22, %v3397_v47  ;;  %v4454_v28 = vor.u32 %v4453_v26, %v4450_v2 }
 0x410   : > { %v2783_v23 = vpop.f32.mrf.mxu3  ;;  %v3613_v31 = vpop.f32.mrf.mxu2 }
 0x411   : > { %v3713_v46 = vmul.f32 %v7403_v21, %v3673_v13  ;;  %v2846_v37 = vadd.f32 %v2783_v23, %v8574_v9 }
 0x413   : > { %v3122_v63 = vadd.f32 %v7398_v56, %v2846_v37  ;;  %v3753_v5 = vadd.f32 %v7413_v60, %v3713_v46  ;;  %v4455_v56 = vsel %vm4420_vm1, %v4445_v53, %v4454_v28  ;;  %v7652_v53 = vpop.f32.mrf.mxu0  ;;  %v8576_v46 = vld [vmem:[#allocation27_spill] sm:$0xff]  ;;  %v7658_v48 = vpop.f32.mrf.mxu1 }
 0x414   : > { %5978 = vmatmul.msk.bf16.gmra.mxu1 %vm645_vm0, %v4455_v56 }
 0x415   : > { %v3398_v22 = vadd.f32 %v7515_v16, %v3122_v63  ;;  %5994 = vmatmul.msk.bf16.vlgmr.msrb.gmra.mxu2 %vm645_vm0, %v7587_v62  ;;  %v3789_v1 = vmax.f32 %v3753_v5, 0.0 }
 0x417   : > { %v7638_v6 = vpack.c.bf16 %v3789_v1, %v3788_v44  ;;  %v3674_v14 = vadd.f32 %v3611_v39, %v3398_v22  ;;  %v6086_v39 = vld [vmem:[%s6261_s18 + $0x28] sm:$0xff] }
 0x418   : > { %v2785_v33 = vpop.f32.mrf.mxu3  ;;  %v3616_v59 = vpop.f32.mrf.mxu2  ;;  %v4460_v43 = vshll.u32 %v6086_v39, 16 }
 0x419   : > { %v2847_v32 = vadd.f32 %v2785_v33, %v8575_v49  ;;  %5862 = vmatmul.msk.bf16.gmra.mxu0 %vm645_vm0, %v7638_v6  ;;  %v3714_v62 = vmul.f32 %v7403_v21, %v3674_v14 }
 0x41a   : > { %v4462_v5 = vrot.slane %v4460_v43, 2 }
 0x41b   : > { %v3123_v16 = vadd.f32 %v7421_v19, %v2847_v32  ;;  %v3754_v37 = vadd.f32 %v7413_v60, %v3714_v62  ;;  %v4457_v19 = vshrl.u32 %v6086_v39, 16  ;;  %v7667_v49 = vpop.f32.mrf.mxu0  ;;  %v8577_v32 = vld [vmem:[#allocation25_spill] sm:$0xff] }
 0x41d   : > { %v3399_v47 = vadd.f32 %v7529_v54, %v3123_v16  ;;  %5836 = vmatmul.msk.bf16.vlgmr.msra.gmra.mxu3 %vm645_vm0, %v7429_v4  ;;  %v4459_v63 = vrot.slane %v4457_v19, 1  ;;  %v3790_v2 = vmax.f32 %v3754_v37, 0.0 }
 0x41f   : > { %v3675_v13 = vadd.f32 %v3613_v31, %v3399_v47  ;;  %v4463_v22 = vor.u32 %v4462_v5, %v4459_v63 }
 0x420   : > { %v2788_v24 = vpop.f32.mrf.mxu3  ;;  %v3618_v23 = vpop.f32.mrf.mxu2 }
 0x421   : > { %v3715_v29 = vmul.f32 %v7403_v21, %v3675_v13  ;;  %v2848_v9 = vadd.f32 %v2788_v24, %v8576_v46  ;;  %v4464_v14 = vsel %vm4420_vm1, %v4454_v28, %v4463_v22 }
 0x423   : > { %v3124_v54 = vadd.f32 %v7435_v7, %v2848_v9  ;;  %v3755_v4 = vadd.f32 %v7413_v60, %v3715_v29  ;;  %v8578_v29 = vld [vmem:[#allocation5_spill] sm:$0xff]  ;;  %v7684_v19 = vpop.f32.mrf.mxu0 }
 0x424   : > { %5979 = vmatmul.msk.bf16.gmra.mxu1 %vm645_vm0, %v4464_v14 }
 0x425   : > { %v3400_v31 = vadd.f32 %v7543_v45, %v3124_v54  ;;  %5995 = vmatmul.msk.bf16.gmra.mxu2 %vm645_vm0, %v4446_v50  ;;  %v3791_v26 = vmax.f32 %v3755_v4, 0.0  ;;  %v7674_v50 = vpop.f32.mrf.mxu1 }
 0x427   : > { %v7664_v44 = vpack.c.bf16 %v3791_v26, %v3790_v2  ;;  %v3676_v7 = vadd.f32 %v3616_v59, %v3400_v31  ;;  %v6087_v59 = vld [vmem:[%s6261_s18 + $0x30] sm:$0xff] }
 0x428   : > { %v2790_v1 = vpop.f32.mrf.mxu3  ;;  %v3621_v33 = vpop.f32.mrf.mxu2  ;;  %v4469_v37 = vshll.u32 %v6087_v59, 16 }
 0x429   : > { %v2849_v16 = vadd.f32 %v2790_v1, %v8577_v32  ;;  %5863 = vmatmul.msk.bf16.gmra.mxu0 %vm645_vm0, %v7664_v44  ;;  %v3716_v62 = vmul.f32 %v7403_v21, %v3676_v7  ;;  %v8579_v32 = vld [vmem:[#allocation29_spill] sm:$0xff] }
 0x42b   : > { %v3125_v45 = vadd.f32 %v7449_v55, %v2849_v16  ;;  %v3756_v9 = vadd.f32 %v7413_v60, %v3716_v62  ;;  %v4466_v55 = vshrl.u32 %v6087_v59, 16 }
 0x42d   : > { %v3401_v47 = vadd.f32 %v7557_v35, %v3125_v45  ;;  %5837 = vmatmul.msk.bf16.gmra.mxu3 %vm645_vm0, %v7451_v51  ;;  %v4468_v54 = vrot.slane %v4466_v55, 1  ;;  %v4471_v51 = vrot.slane %v4469_v37, 2  ;;  %v3792_v4 = vmax.f32 %v3756_v9, 0.0  ;;  %v7690_v31 = vpop.f32.mrf.mxu1 }
 0x42f   : > { %v3677_v28 = vadd.f32 %v3618_v23, %v3401_v47  ;;  %v4472_v5 = vor.u32 %v4471_v51, %v4468_v54 }
 0x430   : > { %v2793_v13 = vpop.f32.mrf.mxu3  ;;  %v3623_v39 = vpop.f32.mrf.mxu2 }
 0x431   : > { %v3717_v24 = vmul.f32 %v7403_v21, %v3677_v28  ;;  %v2850_v46 = vadd.f32 %v2793_v13, %v8578_v29 }
 0x433   : > { %v3126_v43 = vadd.f32 %v7462_v34, %v2850_v46  ;;  %v3757_v35 = vadd.f32 %v7413_v60, %v3717_v24  ;;  %v4473_v34 = vsel %vm4420_vm1, %v4463_v22, %v4472_v5  ;;  %v8580_v24 = vld [vmem:[#allocation6_spill] sm:$0xff] }
 0x434   : > { %5980 = vmatmul.msk.bf16.gmra.mxu1 %vm645_vm0, %v4473_v34 }
 0x435   : > { %v3402_v23 = vadd.f32 %v7574_v18, %v3126_v43  ;;  %5996 = vmatmul.msk.bf16.gmra.mxu2 %vm645_vm0, %v4455_v56  ;;  %v3793_v63 = vmax.f32 %v3757_v35, 0.0  ;;  %v7699_v18 = vpop.f32.mrf.mxu0  ;;  %v7707_v59 = vpop.f32.mrf.mxu1 }
 0x437   : > { %v7692_v2 = vpack.c.bf16 %v3793_v63, %v3792_v4  ;;  %v3678_v7 = vadd.f32 %v3621_v33, %v3402_v23  ;;  %v6088_v33 = vld [vmem:[%s6261_s18 + $0x38] sm:$0xff] }
 0x438   : > { %v2795_v26 = vpop.f32.mrf.mxu3  ;;  %v3626_v1 = vpop.f32.mrf.mxu2  ;;  %v4478_v9 = vshll.u32 %v6088_v33, 16 }
 0x439   : > { %v2851_v16 = vadd.f32 %v2795_v26, %v8579_v32  ;;  %5864 = vmatmul.msk.bf16.gmra.mxu0 %vm645_vm0, %v7692_v2  ;;  %v3718_v45 = vmul.f32 %v7403_v21, %v3678_v7  ;;  %v8581_v7 = vld [vmem:[#allocation30_spill] sm:$0xff] }
 0x43b   : > { %v3127_v56 = vadd.f32 %v7490_v10, %v2851_v16  ;;  %v3758_v46 = vadd.f32 %v7413_v60, %v3718_v45  ;;  %v4475_v10 = vshrl.u32 %v6088_v33, 16  ;;  %v6089_v45 = vld [vmem:[%s6261_s18 + $0x40] sm:$0xff] }
 0x43d   : > { %v3403_v62 = vadd.f32 %v7594_v3, %v3127_v56  ;;  %5838 = vmatmul.msk.bf16.gmra.mxu3 %vm645_vm0, %v7473_v12  ;;  %v4477_v37 = vrot.slane %v4475_v10, 1  ;;  %v4480_v12 = vrot.slane %v4478_v9, 2  ;;  %v3794_v35 = vmax.f32 %v3758_v46, 0.0 }
 0x43f   : > { %v3679_v22 = vadd.f32 %v3623_v39, %v3403_v62  ;;  %v7714_v39 = vpop.f32.mrf.mxu0  ;;  %v4481_v51 = vor.u32 %v4480_v12, %v4477_v37 }
 0x440   : > { %v2798_v47 = vpop.f32.mrf.mxu3  ;;  %v3628_v28 = vpop.f32.mrf.mxu2 }
 0x441   : > { %v3719_v13 = vmul.f32 %v7403_v21, %v3679_v22  ;;  %v2852_v29 = vadd.f32 %v2798_v47, %v8580_v24  ;;  %v8582_v47 = vld [vmem:[#allocation7_spill] sm:$0xff] }
 0x443   : > { %v3128_v55 = vadd.f32 %v7509_v8, %v2852_v29  ;;  %v3759_v3 = vadd.f32 %v7413_v60, %v3719_v13  ;;  %v4482_v8 = vsel %vm4420_vm1, %v4472_v5, %v4481_v51  ;;  %v4487_v29 = vshll.u32 %v6089_v45, 16 }
 0x444   : > { %5981 = vmatmul.msk.bf16.gmra.mxu1 %vm645_vm0, %v4482_v8 }
 0x445   : > { %v3404_v43 = vadd.f32 %v7608_v27, %v3128_v55  ;;  %5997 = vmatmul.msk.bf16.gmra.mxu2 %vm645_vm0, %v4464_v14  ;;  %v3795_v54 = vmax.f32 %v3759_v3, 0.0  ;;  %v7725_v27 = vpop.f32.mrf.mxu1 }
 0x447   : > { %v7718_v23 = vpack.c.bf16 %v3795_v54, %v3794_v35  ;;  %v3680_v26 = vadd.f32 %v3626_v1, %v3404_v43  ;;  %v7732_v5 = vpop.f32.mrf.mxu0 }
 0x448   : > { %v2800_v4 = vpop.f32.mrf.mxu3  ;;  %v3631_v63 = vpop.f32.mrf.mxu2 }
 0x449   : > { %v2853_v32 = vadd.f32 %v2800_v4, %v8581_v7  ;;  %5865 = vmatmul.msk.bf16.gmra.mxu0 %vm645_vm0, %v7718_v23  ;;  %v3720_v16 = vmul.f32 %v7403_v21, %v3680_v26  ;;  %v8583_v26 = vld [vmem:[#allocation8_spill] sm:$0xff] }
 0x44b   : > { %v3129_v14 = vadd.f32 %v7524_v58, %v2853_v32  ;;  %v3760_v24 = vadd.f32 %v7413_v60, %v3720_v16  ;;  %v4484_v58 = vshrl.u32 %v6089_v45, 16  ;;  %v8584_v45 = vld [vmem:[#allocation9_spill] sm:$0xff] }
 0x44d   : > { %v3405_v56 = vadd.f32 %v7625_v17, %v3129_v14  ;;  %5839 = vmatmul.msk.bf16.gmra.mxu3 %vm645_vm0, %v7513_v40  ;;  %v4486_v10 = vrot.slane %v4484_v58, 1  ;;  %v4489_v40 = vrot.slane %v4487_v29, 2  ;;  %v7740_v9 = vpop.f32.mrf.mxu1  ;;  %v3796_v55 = vmax.f32 %v3760_v24, 0.0 }
 0x44f   : > { %v3681_v1 = vadd.f32 %v3628_v28, %v3405_v56  ;;  %v4490_v37 = vor.u32 %v4489_v40, %v4486_v10  ;;  %v7747_v54 = vpop.f32.mrf.mxu0 }
 0x450   : > { %v2803_v62 = vpop.f32.mrf.mxu3  ;;  %v3633_v22 = vpop.f32.mrf.mxu2 }
 0x451   : > { %v3721_v33 = vmul.f32 %v7403_v21, %v3681_v1  ;;  %v2854_v13 = vadd.f32 %v2803_v62, %v8582_v47 }
 0x453   : > { %v3130_v46 = vadd.f32 %v7537_v38, %v2854_v13  ;;  %v3761_v17 = vadd.f32 %v7413_v60, %v3721_v33  ;;  %v4491_v38 = vsel %vm4420_vm1, %v4481_v51, %v4490_v37 }
 0x454   : > { %5982 = vmatmul.msk.bf16.gmra.mxu1 %vm645_vm0, %v4491_v38 }
 0x455   : > { %v3406_v28 = vadd.f32 %v7641_v41, %v3130_v46  ;;  %5998 = vmatmul.msk.bf16.gmra.mxu2 %vm645_vm0, %v4473_v34  ;;  %v3797_v3 = vmax.f32 %v3761_v17, 0.0  ;;  %v7758_v51 = vpop.f32.mrf.mxu1 }
 0x457   : > { %v7744_v12 = vpack.c.bf16 %v3797_v3, %v3796_v55  ;;  %v3682_v4 = vadd.f32 %v3631_v63, %v3406_v28  ;;  %v6090_v63 = vld [vmem:[%s6261_s18 + $0x48] sm:$0xff]  ;;  %v7764_v13 = vpop.f32.mrf.mxu0 }
 0x458   : > { %v2805_v43 = vpop.f32.mrf.mxu3  ;;  %v3636_v35 = vpop.f32.mrf.mxu2  ;;  %v4496_v47 = vshll.u32 %v6090_v63, 16 }
 0x459   : > { %v2855_v7 = vadd.f32 %v2805_v43, %v8583_v26  ;;  %5866 = vmatmul.msk.bf16.gmra.mxu0 %vm645_vm0, %v7744_v12  ;;  %v3722_v34 = vmul.f32 %v7403_v21, %v3682_v4  ;;  %v8585_v43 = vld [vmem:[#allocation10_spill] sm:$0xff] }
 0x45a   : > { %v4498_v58 = vrot.slane %v4496_v47, 2 }
 0x45b   : > { %v3131_v41 = vadd.f32 %v7551_v36, %v2855_v7  ;;  %v3762_v33 = vadd.f32 %v7413_v60, %v3722_v34  ;;  %v4493_v36 = vshrl.u32 %v6090_v63, 16 }
 0x45d   : > { %v3407_v32 = vadd.f32 %v7658_v48, %v3131_v41  ;;  %5840 = vmatmul.msk.bf16.gmra.mxu3 %vm645_vm0, %v7535_v11  ;;  %v4495_v24 = vrot.slane %v4493_v36, 1  ;;  %v3798_v29 = vmax.f32 %v3762_v33, 0.0  ;;  %v7773_v3 = vpop.f32.mrf.mxu1 }
 0x45f   : > { %v3683_v14 = vadd.f32 %v3633_v22, %v3407_v32  ;;  %v4499_v17 = vor.u32 %v4498_v58, %v4495_v24 }
 0x460   : > { %v2808_v16 = vpop.f32.mrf.mxu3  ;;  %v3638_v56 = vpop.f32.mrf.mxu2 }
 0x461   : > { %v3723_v1 = vmul.f32 %v7403_v21, %v3683_v14  ;;  %v2856_v62 = vadd.f32 %v2808_v16, %v8584_v45  ;;  %v4500_v55 = vsel %vm4420_vm1, %v4490_v37, %v4499_v17  ;;  %v8586_v14 = vld [vmem:[#allocation11_spill] sm:$0xff] }
 0x463   : > { %v3132_v48 = vadd.f32 %v7566_v15, %v2856_v62  ;;  %v3763_v11 = vadd.f32 %v7413_v60, %v3723_v1 }
 0x464   : > { %5983 = vmatmul.msk.bf16.gmra.mxu1 %vm645_vm0, %v4500_v55 }
 0x465   : > { %v3408_v22 = vadd.f32 %v7674_v50, %v3132_v48  ;;  %5999 = vmatmul.msk.bf16.gmra.mxu2 %vm645_vm0, %v4482_v8  ;;  %v3799_v46 = vmax.f32 %v3763_v11, 0.0  ;;  %v7780_v8 = vpop.f32.mrf.mxu0  ;;  %v7790_v45 = vpop.f32.mrf.mxu1 }
 0x467   : > { %v7770_v10 = vpack.c.bf16 %v3799_v46, %v3798_v29  ;;  %v3684_v15 = vadd.f32 %v3636_v35, %v3408_v22  ;;  %v6091_v35 = vld [vmem:[%s6261_s18 + $0x50] sm:$0xff]  ;;  %v7814_v46 = vld [vmem:[%s8483_s6] ss:$0 sm:$0xff] }
 0x468   : > { %v2810_v40 = vpop.f32.mrf.mxu3  ;;  %v3641_v28 = vpop.f32.mrf.mxu2  ;;  %v4505_v1 = vshll.u32 %v6091_v35, 16  ;;  %v8587_v22 = vld [vmem:[#allocation12_spill] sm:$0xff] }
 0x469   : > { %v2857_v4 = vadd.f32 %v2810_v40, %v8585_v43  ;;  %5867 = vmatmul.msk.bf16.gmra.mxu0 %vm645_vm0, %v7770_v10  ;;  %v3724_v26 = vmul.f32 %v7403_v21, %v3684_v15  ;;  %v6092_v15 = vld [vmem:[%s6261_s18 + $0x58] sm:$0xff] }
 0x46b   : > { %v3133_v50 = vadd.f32 %v7582_v20, %v2857_v4  ;;  %v3764_v16 = vadd.f32 %v7413_v60, %v3724_v26  ;;  %v4502_v20 = vshrl.u32 %v6091_v35, 16  ;;  %v8588_v26 = vld [vmem:[#allocation13_spill] sm:$0xff]  ;;  %v4511_v35 = vshrl.u32 %v6092_v15, 16 }
 0x46d   : > { %v3409_v7 = vadd.f32 %v7690_v31, %v3133_v50  ;;  %5841 = vmatmul.msk.bf16.gmra.mxu3 %vm645_vm0, %v7559_v61  ;;  %v4504_v33 = vrot.slane %v4502_v20, 1  ;;  %v4507_v61 = vrot.slane %v4505_v1, 2  ;;  %v3800_v36 = vmax.f32 %v3764_v16, 0.0  ;;  %v7796_v48 = vpop.f32.mrf.mxu0 }
 0x46f   : > { %v3685_v37 = vadd.f32 %v3638_v56, %v3409_v7  ;;  %v4508_v47 = vor.u32 %v4507_v61, %v4504_v33 }
 0x470   : > { %v2813_v41 = vpop.f32.mrf.mxu3  ;;  %v3643_v34 = vpop.f32.mrf.mxu2 }
 0x471   : > { %v3725_v32 = vmul.f32 %v7403_v21, %v3685_v37  ;;  %v2858_v63 = vadd.f32 %v2813_v41, %v8586_v14  ;;  %v7828_v37 = vld [vmem:[%s8484_s7] ss:$0 sm:$0xff]  ;;  %v4513_v14 = vrot.slane %v4511_v35, 1 }
 0x472   : > { %v4961_v35 = vld [vmem:[%s8490_s13] sm:$0x3] }
 0x473   : > { %v3134_v62 = vadd.f32 %v7602_v42, %v2858_v63  ;;  %v3765_v31 = vadd.f32 %v7413_v60, %v3725_v32  ;;  %v7801_v42 = vsel %vm4420_vm1, %v4499_v17, %v4508_v47  ;;  %v4514_v32 = vshll.u32 %v6092_v15, 16 }
 0x474   : > { %5984 = vmatmul.msk.bf16.gmra.mxu1 %vm645_vm0, %v7801_v42 }
 0x475   : > { %v3410_v56 = vadd.f32 %v7707_v59, %v3134_v62  ;;  %6000 = vmatmul.msk.bf16.gmra.mxu2 %vm645_vm0, %v4491_v38  ;;  %v3801_v21 = vmax.f32 %v3765_v31, 0.0  ;;  %v7809_v38 = vpop.f32.mrf.mxu1  ;;  %v7821_v50 = vpop.f32.mrf.mxu0  ;;  %v4516_v1 = vrot.slane %v4514_v32, 2 }
 0x477   : > { %v7798_v11 = vpack.c.bf16 %v3801_v21, %v3800_v36  ;;  %v3686_v60 = vadd.f32 %v3641_v28, %v3410_v56  ;;  %v4517_v31 = vor.u32 %v4516_v1, %v4513_v14  ;;  %v8589_v56 = vld [vmem:[#allocation14_spill] sm:$0xff] }
 0x478   : > { %v2815_v24 = vpop.f32.mrf.mxu3  ;;  %v3646_v58 = vpop.f32.mrf.mxu2 }
 0x479   : > { %v2859_v29 = vadd.f32 %v2815_v24, %v8587_v22  ;;  %5868 = vmatmul.msk.bf16.gmra.mxu0 %vm645_vm0, %v7798_v11  ;;  %v3726_v17 = vmul.f32 %v7814_v46, %v3686_v60  ;;  %v7843_v21 = vsel %vm4420_vm1, %v4508_v47, %v4517_v31  ;;  %v4126_v47 = vld [vmem:[%s8486_s9] sm:$0x3] }
 0x47b   : > { %v3135_v59 = vadd.f32 %v7619_v0, %v2859_v29  ;;  %v6093_v29 = vld [vmem:[%s6261_s18 + $0x60] sm:$0xff] }
 0x47d   : > { %v3411_v40 = vadd.f32 %v7725_v27, %v3135_v59  ;;  %5842 = vmatmul.msk.bf16.gmra.mxu3 %vm645_vm0, %v7584_v30  ;;  %v3766_v27 = vadd.f32 %v7828_v37, %v3726_v17 }
 0x47f   : > { %v3687_v28 = vadd.f32 %v3643_v34, %v3411_v40  ;;  %v7833_v34 = vpop.f32.mrf.mxu1  ;;  %v3802_v16 = vmax.f32 %v3766_v27, 0.0  ;;  %v4204_v27 = vld [vmem:[%s8487_s10] sm:$0x3] }
 0x480   : > { %v2818_v43 = vpop.f32.mrf.mxu3  ;;  %v3648_v4 = vpop.f32.mrf.mxu2 }
 0x481   : > { %v3727_v0 = vmul.f32 %v7814_v46, %v3687_v28  ;;  %v2860_v7 = vadd.f32 %v2818_v43, %v8588_v26  ;;  %v4520_v43 = vshrl.u32 %v6093_v29, 16 }
 0x483   : > { %v3136_v30 = vadd.f32 %v7633_v57, %v2860_v7  ;;  %v3767_v41 = vadd.f32 %v7828_v37, %v3727_v0 }
 0x484   : > { %5985 = vmatmul.msk.bf16.gmra.mxu1 %vm645_vm0, %v7843_v21 }
 0x485   : > { %v3412_v63 = vadd.f32 %v7740_v9, %v3136_v30  ;;  %6001 = vmatmul.msk.bf16.gmra.mxu2 %vm645_vm0, %v4500_v55  ;;  %v3803_v20 = vmax.f32 %v3767_v41, 0.0  ;;  %v7847_v9 = vpop.f32.mrf.mxu0  ;;  %v4522_v30 = vrot.slane %v4520_v43, 1 }
 0x487   : > { %v7837_v62 = vpack.c.bf16 %v3803_v20, %v3802_v16  ;;  %v3688_v57 = vadd.f32 %v3646_v58, %v3412_v63  ;;  %v7850_v24 = vpop.f32.mrf.mxu1 }
 0x488   : > { %v2820_v33 = vpop.f32.mrf.mxu3  ;;  %v3651_v61 = vpop.f32.mrf.mxu2 }
 0x489   : > { %v2861_v36 = vadd.f32 %v2820_v33, %v8589_v56  ;;  %5869 = vmatmul.msk.bf16.gmra.mxu0 %vm645_vm0, %v7837_v62  ;;  %v3728_v60 = vmul.f32 %v7814_v46, %v3688_v57  ;;  %v7889_v33 = vperm.slane %v4204_v27, 1  ;;  %v7891_v57 = vperm.slane %v4961_v35, 1 }
 0x48b   : > { %v3137_v55 = vadd.f32 %v7652_v53, %v2861_v36  ;;  %v8590_v53 = vld [vmem:[#allocation16_spill] sm:$0xff]  ;;  %v3768_v15 = vadd.f32 %v7828_v37, %v3728_v60 }
 0x48d   : > { %v3413_v58 = vadd.f32 %v7758_v51, %v3137_v55  ;;  %5843 = vmatmul.msk.bf16.gmra.mxu3 %vm645_vm0, %v7612_v52  ;;  %v4883_v51 = vld [vmem:[%s8489_s12] sm:$0x3]  ;;  %v4523_v52 = vshll.u32 %v6093_v29, 16  ;;  %v7878_v32 = vpop.f32.mrf.mxu0  ;;  %v3804_v63 = vmax.f32 %v3768_v15, 0.0  ;;  %v7921_v15 = vperm.slane %v4126_v47, 0 }
 0x48e   : > { %v7895_v36 = vperm.slane %v4883_v51, 0 }
 0x48f   : > { %v3689_v22 = vadd.f32 %v3648_v4, %v3413_v58  ;;  %v7866_v4 = vperm.slane %v4126_v47, 1  ;;  %v7870_v7 = vpop.f32.mrf.mxu1  ;;  %v4525_v41 = vrot.slane %v4523_v52, 2  ;;  %v6094_v52 = vld [vmem:[%s6261_s18 + $0x68] sm:$0xff] }
 0x490   : > { %v2823_v59 = vpop.f32.mrf.mxu3  ;;  %v3653_v17 = vpop.f32.mrf.mxu2 }
 0x491   : > { %v3729_v40 = vmul.f32 %v7814_v46, %v3689_v22  ;;  %v2862_v28 = vadd.f32 %v2823_v59, %v8590_v53  ;;  %v7885_v20 = vor.u32 %v4525_v41, %v4522_v30  ;;  %v4133_v1 = vmul.f32 %v7866_v4, %v7699_v18 }
 0x492   : > { %v4889_v59 = vmul.f32 %v7895_v36, %v7809_v38  ;;  %v4529_v41 = vshrl.u32 %v6094_v52, 16 }
 0x493   : > { %v3138_v0 = vadd.f32 %v7667_v49, %v2862_v28  ;;  %v3769_v26 = vadd.f32 %v7828_v37, %v3729_v40  ;;  %v7883_v49 = vperm.slane %v4883_v51, 1  ;;  %v7903_v18 = vsel %vm4420_vm1, %v4517_v31, %v7885_v20 }
 0x494   : > { %5986 = vmatmul.msk.bf16.gmra.mxu1 %vm645_vm0, %v7903_v18  ;;  %v4211_v22 = vadd.f32 %v7889_v33, %v4133_v1  ;;  %v7915_v40 = vperm.slane %v4961_v35, 0 }
 0x495   : > { %v3414_v14 = vadd.f32 %v7773_v3, %v3138_v0  ;;  %6002 = vmatmul.msk.bf16.gmra.mxu2 %vm645_vm0, %v7801_v42  ;;  %v3805_v16 = vmax.f32 %v3769_v26, 0.0  ;;  %v7930_v38 = vpop.f32.mrf.mxu0 }
 0x497   : > { %v7893_v56 = vpack.c.bf16 %v3805_v16, %v3804_v63  ;;  %v3690_v55 = vadd.f32 %v3651_v61, %v3414_v14  ;;  %v7911_v61 = vpop.f32.mrf.mxu1  ;;  %v4532_v14 = vshll.u32 %v6094_v52, 16 }
 0x498   : > { %v2825_v3 = vpop.f32.mrf.mxu3  ;;  %v4793_v42 = vpop.f32.mrf.mxu2 }
 0x499   : > { %v2863_v60 = vadd.f32 %v2825_v3, %v7387_v25  ;;  %v4890_v58 = vmul.f32 %v7883_v49, %v4793_v42  ;;  %5870 = vmatmul.msk.bf16.gmra.mxu0 %vm645_vm0, %v7893_v56  ;;  %v3730_v31 = vmul.f32 %v7814_v46, %v3690_v55  ;;  %v4534_v3 = vrot.slane %v4532_v14, 2 }
 0x49b   : > { %v3139_v29 = vadd.f32 %v7684_v19, %v2863_v60  ;;  %v4968_v25 = vadd.f32 %v7891_v57, %v4890_v58  ;;  %v4135_v19 = vmul.f32 %v7866_v4, %v7714_v39  ;;  %v3770_v39 = vadd.f32 %v7828_v37, %v3730_v31 }
 0x49d   : > { %v3415_v53 = vadd.f32 %v7790_v45, %v3139_v29  ;;  %v5040_v28 = vadd.f32 %v4968_v25, %v4211_v22  ;;  %5844 = vmatmul.msk.bf16.gmra.mxu3 %vm645_vm0, %v7638_v6  ;;  %v7932_v45 = vperm.slane %v4204_v27, 0  ;;  %v4967_v6 = vadd.f32 %v7915_v40, %v4889_v59 }
 0x49e   : > { %v3806_v60 = vmax.f32 %v3770_v39, 0.0  ;;  %v4137_v22 = vmul.f32 %v7866_v4, %v7732_v5 }
 0x49f   : > { %v3691_v51 = vadd.f32 %v3653_v17, %v3415_v53  ;;  %v5112_v43 = vmax.f32 %v5040_v28, 0.0  ;;  %v4213_v17 = vadd.f32 %v7889_v33, %v4135_v19  ;;  %v7945_v1 = vpop.f32.mrf.mxu1  ;;  %v7955_v19 = vpop.f32.mrf.mxu0 }
 0x4a0   : > { %v3937_v47 = vpop.f32.mrf.mxu3  ;;  %v4795_v0 = vpop.f32.mrf.mxu2 }
 0x4a1   : > { %v3731_v26 = vmul.f32 %v7814_v46, %v3691_v51  ;;  %5184 = vst [vmem:[%s7926_s23 + $0x8] sm:$0xff] %v5112_v43  ;;  %v4132_v35 = vmul.f32 %v7921_v15, %v3937_v47  ;;  %v4892_v30 = vmul.f32 %v7883_v49, %v4795_v0  ;;  %v4531_v46 = vrot.slane %v4529_v41, 1  ;;  %v6095_v41 = vld [vmem:[%s6261_s18 + $0x70] sm:$0xff] }
 0x4a3   : > { %v4210_v27 = vadd.f32 %v7932_v45, %v4132_v35  ;;  %v4970_v63 = vadd.f32 %v7891_v57, %v4892_v30  ;;  %v3771_v16 = vadd.f32 %v7828_v37, %v3731_v26  ;;  %v4535_v29 = vor.u32 %v4534_v3, %v4531_v46 }
 0x4a4   : > { %v4891_v37 = vmul.f32 %v7895_v36, %v7833_v34  ;;  %v4215_v34 = vadd.f32 %v7889_v33, %v4137_v22  ;;  %v4139_v35 = vmul.f32 %v7866_v4, %v7747_v54  ;;  %v4541_v46 = vshll.u32 %v6095_v41, 16 }
 0x4a5   : > { %v5039_v42 = vadd.f32 %v4967_v6, %v4210_v27  ;;  %v5042_v55 = vadd.f32 %v4970_v63, %v4213_v17  ;;  %6003 = vmatmul.msk.bf16.gmra.mxu2 %vm645_vm0, %v7843_v21  ;;  %v3807_v58 = vmax.f32 %v3771_v16, 0.0  ;;  %v7964_v5 = vsel %vm4420_vm1, %v7885_v20, %v4535_v29 }
 0x4a6   : > { %5987 = vmatmul.msk.bf16.gmra.mxu1 %vm645_vm0, %v7964_v5  ;;  %v4969_v43 = vadd.f32 %v7915_v40, %v4891_v37  ;;  %v4893_v20 = vmul.f32 %v7895_v36, %v7850_v24  ;;  %v4538_v24 = vshrl.u32 %v6095_v41, 16  ;;  %v4141_v37 = vmul.f32 %v7866_v4, %v7764_v13  ;;  %v6096_v41 = vld [vmem:[%s6261_s18 + $0x78] sm:$0xff] }
 0x4a7   : > { %v5111_v25 = vmax.f32 %v5039_v42, 0.0  ;;  %v5114_v59 = vmax.f32 %v5042_v55, 0.0  ;;  %v7953_v31 = vpack.c.bf16 %v3807_v58, %v3806_v60  ;;  %v7973_v47 = vpop.f32.mrf.mxu1  ;;  %v4543_v60 = vrot.slane %v4541_v46, 2 }
 0x4a8   : > { %v3939_v53 = vpop.f32.mrf.mxu3  ;;  %v4798_v28 = vpop.f32.mrf.mxu2  ;;  %v4971_v27 = vadd.f32 %v7915_v40, %v4893_v20  ;;  %v4540_v55 = vrot.slane %v4538_v24, 1  ;;  %v4219_v13 = vadd.f32 %v7889_v33, %v4141_v37  ;;  %v4550_v24 = vshll.u32 %v6096_v41, 16 }
 0x4a9   : > { %5183 = vst [vmem:[%s7926_s23] sm:$0xff] %v5111_v25  ;;  %v4134_v21 = vmul.f32 %v7921_v15, %v3939_v53  ;;  %v4894_v51 = vmul.f32 %v7883_v49, %v4798_v28  ;;  %5871 = vmatmul.msk.bf16.gmra.mxu0 %vm645_vm0, %v7953_v31  ;;  %v4895_v53 = vmul.f32 %v7895_v36, %v7870_v7 }
 0x4aa   : > { %5186 = vst [vmem:[%s7926_s23 + $0x18] sm:$0xff] %v5114_v59  ;;  %v4544_v25 = vor.u32 %v4543_v60, %v4540_v55  ;;  %v8030_v55 = vpop.f32.mrf.mxu0  ;;  %v4145_v37 = vmul.f32 %v7866_v4, %v7796_v48 }
 0x4ab   : > { %v4212_v52 = vadd.f32 %v7932_v45, %v4134_v21  ;;  %v4972_v6 = vadd.f32 %v7891_v57, %v4894_v51  ;;  %v4973_v7 = vadd.f32 %v7915_v40, %v4895_v53  ;;  %v4899_v53 = vmul.f32 %v7895_v36, %v7945_v1 }
 0x4ac   : > { %v4223_v48 = vadd.f32 %v7889_v33, %v4145_v37 }
 0x4ad   : > { %v5041_v0 = vadd.f32 %v4969_v43, %v4212_v52  ;;  %v5044_v26 = vadd.f32 %v4972_v6, %v4215_v34  ;;  %5845 = vmatmul.msk.bf16.gmra.mxu3 %vm645_vm0, %v7664_v44  ;;  %v4217_v44 = vadd.f32 %v7889_v33, %v4139_v35  ;;  %v8002_v52 = vsel %vm4420_vm1, %v4535_v29, %v4544_v25 }
 0x4ae   : > { %v4897_v29 = vmul.f32 %v7895_v36, %v7911_v61  ;;  %v4143_v35 = vmul.f32 %v7866_v4, %v7780_v8  ;;  %v4547_v61 = vshrl.u32 %v6096_v41, 16  ;;  %v4977_v1 = vadd.f32 %v7915_v40, %v4899_v53 }
 0x4af   : > { %v5113_v30 = vmax.f32 %v5041_v0, 0.0  ;;  %v5116_v39 = vmax.f32 %v5044_v26, 0.0  ;;  %v7990_v42 = vpop.f32.mrf.mxu1 }
 0x4b0   : > { %v3942_v14 = vpop.f32.mrf.mxu3  ;;  %v4800_v17 = vpop.f32.mrf.mxu2  ;;  %v4903_v37 = vmul.f32 %v7895_v36, %v7990_v42 }
 0x4b1   : > { %5185 = vst [vmem:[%s7926_s23 + $0x10] sm:$0xff] %v5113_v30  ;;  %v4136_v63 = vmul.f32 %v7921_v15, %v3942_v14  ;;  %v4896_v16 = vmul.f32 %v7883_v49, %v4800_v17 }
 0x4b2   : > { %5188 = vst [vmem:[%s7926_s23 + $0x28] sm:$0xff] %v5116_v39  ;;  %v4981_v42 = vadd.f32 %v7915_v40, %v4903_v37 }
 0x4b3   : > { %v4214_v54 = vadd.f32 %v7932_v45, %v4136_v63  ;;  %v4974_v3 = vadd.f32 %v7891_v57, %v4896_v16 }
 0x4b5   : > { %v5043_v58 = vadd.f32 %v4971_v27, %v4214_v54  ;;  %v5046_v22 = vadd.f32 %v4974_v3, %v4217_v44  ;;  %6004 = vmatmul.msk.bf16.gmra.mxu2 %vm645_vm0, %v7903_v18  ;;  %v4975_v27 = vadd.f32 %v7915_v40, %v4897_v29  ;;  %v4549_v54 = vrot.slane %v4547_v61, 1 }
 0x4b6   : > { %5988 = vmatmul.msk.bf16.gmra.mxu1 %vm645_vm0, %v8002_v52  ;;  %v4552_v3 = vrot.slane %v4550_v24, 2  ;;  %v4147_v29 = vmul.f32 %v7866_v4, %v7821_v50 }
 0x4b7   : > { %v5115_v59 = vmax.f32 %v5043_v58, 0.0  ;;  %v5118_v28 = vmax.f32 %v5046_v22, 0.0  ;;  %v8011_v0 = vpop.f32.mrf.mxu1 }
 0x4b8   : > { %v3944_v21 = vpop.f32.mrf.mxu3  ;;  %v4803_v51 = vpop.f32.mrf.mxu2  ;;  %v4553_v22 = vor.u32 %v4552_v3, %v4549_v54 }
 0x4b9   : > { %5187 = vst [vmem:[%s7926_s23 + $0x20] sm:$0xff] %v5115_v59  ;;  %v4138_v34 = vmul.f32 %v7921_v15, %v3944_v21  ;;  %v4898_v43 = vmul.f32 %v7883_v49, %v4803_v51 }
 0x4ba   : > { %5190 = vst [vmem:[%s7926_s23 + $0x38] sm:$0xff] %v5118_v28 }
 0x4bb   : > { %v4216_v18 = vadd.f32 %v7932_v45, %v4138_v34  ;;  %v4976_v6 = vadd.f32 %v7891_v57, %v4898_v43 }
 0x4bd   : > { %v5045_v20 = vadd.f32 %v4973_v7, %v4216_v18  ;;  %v5048_v26 = vadd.f32 %v4976_v6, %v4219_v13  ;;  %5846 = vmatmul.msk.bf16.gmra.mxu3 %vm645_vm0, %v7692_v2  ;;  %v4221_v2 = vadd.f32 %v7889_v33, %v4143_v35  ;;  %v8042_v13 = vsel %vm4420_vm1, %v4544_v25, %v4553_v22 }
 0x4be   : > { %v4901_v25 = vmul.f32 %v7895_v36, %v7973_v47 }
 0x4bf   : > { %v5117_v30 = vmax.f32 %v5045_v20, 0.0  ;;  %v5120_v39 = vmax.f32 %v5048_v26, 0.0  ;;  %v8028_v44 = vpop.f32.mrf.mxu1  ;;  %v8059_v26 = vpop.f32.mrf.mxu0 }
 0x4c0   : > { %v3947_v14 = vpop.f32.mrf.mxu3  ;;  %v4805_v17 = vpop.f32.mrf.mxu2 }
 0x4c1   : > { %5189 = vst [vmem:[%s7926_s23 + $0x30] sm:$0xff] %v5117_v30  ;;  %v4140_v63 = vmul.f32 %v7921_v15, %v3947_v14  ;;  %v4900_v16 = vmul.f32 %v7883_v49, %v4805_v17  ;;  %v4979_v17 = vadd.f32 %v7915_v40, %v4901_v25 }
 0x4c2   : > { %5192 = vst [vmem:[%s7926_s23 + $0x48] sm:$0xff] %v5120_v39  ;;  %v6097_v39 = vld [vmem:[%s6261_s18 + $0x80] sm:$0xff] }
 0x4c3   : > { %v4218_v46 = vadd.f32 %v7932_v45, %v4140_v63  ;;  %v4978_v8 = vadd.f32 %v7891_v57, %v4900_v16  ;;  %v4556_v63 = vshrl.u32 %v6097_v39, 16  ;;  %v4225_v16 = vadd.f32 %v7889_v33, %v4147_v29  ;;  %v6098_v29 = vld [vmem:[%s6261_s18 + $0x88] sm:$0xff] }
 0x4c5   : > { %v5047_v60 = vadd.f32 %v4975_v27, %v4218_v46  ;;  %v5050_v58 = vadd.f32 %v4978_v8, %v4221_v2  ;;  %6005 = vmatmul.msk.bf16.gmra.mxu2 %vm645_vm0, %v7964_v5  ;;  %v4558_v2 = vrot.slane %v4556_v63, 1 }
 0x4c6   : > { %5989 = vmatmul.msk.bf16.gmra.mxu1 %vm645_vm0, %v8042_v13 }
 0x4c7   : > { %v5119_v59 = vmax.f32 %v5047_v60, 0.0  ;;  %v5122_v28 = vmax.f32 %v5050_v58, 0.0  ;;  %v8051_v18 = vpop.f32.mrf.mxu1  ;;  %v4149_v60 = vmul.f32 %v7866_v4, %v7847_v9 }
 0x4c8   : > { %v3949_v21 = vpop.f32.mrf.mxu3  ;;  %v4808_v51 = vpop.f32.mrf.mxu2 }
 0x4c9   : > { %5191 = vst [vmem:[%s7926_s23 + $0x40] sm:$0xff] %v5119_v59  ;;  %v4142_v34 = vmul.f32 %v7921_v15, %v3949_v21  ;;  %v4902_v43 = vmul.f32 %v7883_v49, %v4808_v51  ;;  %v8078_v21 = vpop.f32.mrf.mxu0  ;;  %v4227_v9 = vadd.f32 %v7889_v33, %v4149_v60 }
 0x4ca   : > { %5194 = vst [vmem:[%s7926_s23 + $0x58] sm:$0xff] %v5122_v28 }
 0x4cb   : > { %v4220_v5 = vadd.f32 %v7932_v45, %v4142_v34  ;;  %v4980_v7 = vadd.f32 %v7891_v57, %v4902_v43 }
 0x4cd   : > { %v5049_v6 = vadd.f32 %v4977_v1, %v4220_v5  ;;  %v5052_v20 = vadd.f32 %v4980_v7, %v4223_v48  ;;  %5847 = vmatmul.msk.bf16.gmra.mxu3 %vm645_vm0, %v7718_v23  ;;  %v4559_v23 = vshll.u32 %v6097_v39, 16 }
 0x4cf   : > { %v5121_v35 = vmax.f32 %v5049_v6, 0.0  ;;  %v5124_v30 = vmax.f32 %v5052_v20, 0.0  ;;  %v8070_v24 = vpop.f32.mrf.mxu1  ;;  %v4561_v46 = vrot.slane %v4559_v23, 2  ;;  %v4151_v6 = vmul.f32 %v7866_v4, %v7878_v32 }
 0x4d0   : > { %v3952_v41 = vpop.f32.mrf.mxu3  ;;  %v4810_v14 = vpop.f32.mrf.mxu2 }
 0x4d1   : > { %5193 = vst [vmem:[%s7926_s23 + $0x50] sm:$0xff] %v5121_v35  ;;  %v4144_v27 = vmul.f32 %v7921_v15, %v3952_v41  ;;  %v4904_v47 = vmul.f32 %v7883_v49, %v4810_v14  ;;  %v4562_v3 = vor.u32 %v4561_v46, %v4558_v2  ;;  %v4153_v46 = vmul.f32 %v7866_v4, %v7930_v38 }
 0x4d2   : > { %5196 = vst [vmem:[%s7926_s23 + $0x68] sm:$0xff] %v5124_v30 }
 0x4d3   : > { %v4222_v50 = vadd.f32 %v7932_v45, %v4144_v27  ;;  %v4982_v61 = vadd.f32 %v7891_v57, %v4904_v47  ;;  %v8108_v27 = vpop.f32.mrf.mxu0  ;;  %v4231_v38 = vadd.f32 %v7889_v33, %v4153_v46 }
 0x4d5   : > { %v5051_v8 = vadd.f32 %v4979_v17, %v4222_v50  ;;  %v5054_v54 = vadd.f32 %v4982_v61, %v4225_v16  ;;  %6006 = vmatmul.msk.bf16.gmra.mxu2 %vm645_vm0, %v8002_v52  ;;  %v8084_v52 = vsel %vm4420_vm1, %v4553_v22, %v4562_v3  ;;  %v4905_v22 = vmul.f32 %v7895_v36, %v8011_v0 }
 0x4d6   : > { %5990 = vmatmul.msk.bf16.gmra.mxu1 %vm645_vm0, %v8084_v52  ;;  %v4565_v0 = vshrl.u32 %v6098_v29, 16  ;;  %v4568_v17 = vshll.u32 %v6098_v29, 16 }
 0x4d7   : > { %v5123_v58 = vmax.f32 %v5051_v8, 0.0  ;;  %v5126_v59 = vmax.f32 %v5054_v54, 0.0  ;;  %v8093_v1 = vpop.f32.mrf.mxu1  ;;  %v4983_v39 = vadd.f32 %v7915_v40, %v4905_v22  ;;  %v4907_v54 = vmul.f32 %v7895_v36, %v8028_v44 }
 0x4d8   : > { %v3954_v53 = vpop.f32.mrf.mxu3  ;;  %v4813_v28 = vpop.f32.mrf.mxu2  ;;  %v4567_v23 = vrot.slane %v4565_v0, 1  ;;  %v4570_v16 = vrot.slane %v4568_v17, 2 }
 0x4d9   : > { %5195 = vst [vmem:[%s7926_s23 + $0x60] sm:$0xff] %v5123_v58  ;;  %v4146_v51 = vmul.f32 %v7921_v15, %v3954_v53  ;;  %v4906_v34 = vmul.f32 %v7883_v49, %v4813_v28  ;;  %v4985_v44 = vadd.f32 %v7915_v40, %v4907_v54 }
 0x4da   : > { %5198 = vst [vmem:[%s7926_s23 + $0x78] sm:$0xff] %v5126_v59  ;;  %v4571_v2 = vor.u32 %v4570_v16, %v4567_v23 }
 0x4db   : > { %v4224_v43 = vadd.f32 %v7932_v45, %v4146_v51  ;;  %v4984_v48 = vadd.f32 %v7891_v57, %v4906_v34 }
 0x4dc   : > { %v8124_v28 = vsel %vm4420_vm1, %v4562_v3, %v4571_v2 }
 0x4dd   : > { %v5053_v5 = vadd.f32 %v4981_v42, %v4224_v43  ;;  %v5056_v7 = vadd.f32 %v4984_v48, %v4227_v9  ;;  %5848 = vmatmul.msk.bf16.gmra.mxu3 %vm645_vm0, %v7744_v12  ;;  %v4229_v12 = vadd.f32 %v7889_v33, %v4151_v6  ;;  %v8135_v9 = vpop.f32.mrf.mxu0  ;;  %v4909_v42 = vmul.f32 %v7895_v36, %v8051_v18 }
 0x4de   : > { %v4155_v48 = vmul.f32 %v7866_v4, %v7955_v19 }
 0x4df   : > { %v5125_v25 = vmax.f32 %v5053_v5, 0.0  ;;  %v5128_v20 = vmax.f32 %v5056_v7, 0.0  ;;  %v8112_v63 = vpop.f32.mrf.mxu1  ;;  %v6099_v7 = vld [vmem:[%s6261_s18 + $0x90] sm:$0xff] }
 0x4e0   : > { %v3957_v35 = vpop.f32.mrf.mxu3  ;;  %v4815_v30 = vpop.f32.mrf.mxu2  ;;  %v4574_v18 = vshrl.u32 %v6099_v7, 16 }
 0x4e1   : > { %5197 = vst [vmem:[%s7926_s23 + $0x70] sm:$0xff] %v5125_v25  ;;  %v4148_v41 = vmul.f32 %v7921_v15, %v3957_v35  ;;  %v4908_v14 = vmul.f32 %v7883_v49, %v4815_v30  ;;  %v4577_v30 = vshll.u32 %v6099_v7, 16 }
 0x4e2   : > { %5200 = vst [vmem:[%s7926_s23 + $0x88] sm:$0xff] %v5128_v20  ;;  %v4987_v20 = vadd.f32 %v7915_v40, %v4909_v42 }
 0x4e3   : > { %v4226_v32 = vadd.f32 %v7932_v45, %v4148_v41  ;;  %v4986_v47 = vadd.f32 %v7891_v57, %v4908_v14  ;;  %v4576_v14 = vrot.slane %v4574_v18, 1  ;;  %v4579_v0 = vrot.slane %v4577_v30, 2 }
 0x4e5   : > { %v5055_v50 = vadd.f32 %v4983_v39, %v4226_v32  ;;  %v5058_v61 = vadd.f32 %v4986_v47, %v4229_v12  ;;  %6007 = vmatmul.msk.bf16.gmra.mxu2 %vm645_vm0, %v8042_v13  ;;  %v4580_v32 = vor.u32 %v4579_v0, %v4576_v14  ;;  %v4157_v47 = vmul.f32 %v7866_v4, %v8030_v55  ;;  %v8158_v23 = vpop.f32.mrf.mxu0 }
 0x4e6   : > { %5991 = vmatmul.msk.bf16.gmra.mxu1 %vm645_vm0, %v8124_v28  ;;  %v4161_v14 = vmul.f32 %v7866_v4, %v8078_v21 }
 0x4e7   : > { %v5127_v8 = vmax.f32 %v5055_v50, 0.0  ;;  %v5130_v60 = vmax.f32 %v5058_v61, 0.0  ;;  %v8133_v34 = vpop.f32.mrf.mxu1  ;;  %v4911_v50 = vmul.f32 %v7895_v36, %v8070_v24  ;;  %v4235_v55 = vadd.f32 %v7889_v33, %v4157_v47 }
 0x4e8   : > { %v3959_v58 = vpop.f32.mrf.mxu3  ;;  %v4818_v37 = vpop.f32.mrf.mxu2  ;;  %v4239_v21 = vadd.f32 %v7889_v33, %v4161_v14 }
 0x4e9   : > { %5199 = vst [vmem:[%s7926_s23 + $0x80] sm:$0xff] %v5127_v8  ;;  %v4150_v59 = vmul.f32 %v7921_v15, %v3959_v58  ;;  %v4910_v53 = vmul.f32 %v7883_v49, %v4818_v37  ;;  %v4989_v58 = vadd.f32 %v7915_v40, %v4911_v50 }
 0x4ea   : > { %5202 = vst [vmem:[%s7926_s23 + $0x98] sm:$0xff] %v5130_v60 }
 0x4eb   : > { %v4228_v13 = vadd.f32 %v7932_v45, %v4150_v59  ;;  %v4988_v51 = vadd.f32 %v7891_v57, %v4910_v53  ;;  %v4318_v53 = vld [vmem:[%s6261_s18 + $0x98] sm:$0x3] }
 0x4ed   : > { %v5057_v3 = vadd.f32 %v4985_v44, %v4228_v13  ;;  %v5060_v43 = vadd.f32 %v4988_v51, %v4231_v38  ;;  %5849 = vmatmul.msk.bf16.gmra.mxu3 %vm645_vm0, %v7770_v10  ;;  %v4233_v10 = vadd.f32 %v7889_v33, %v4155_v48  ;;  %v4400_v13 = vunpack.c.l.b16 %v4318_v53 }
 0x4ee   : > { %v4159_v51 = vmul.f32 %v7866_v4, %v8059_v26 }
 0x4ef   : > { %v5129_v5 = vmax.f32 %v5057_v3, 0.0  ;;  %v5132_v22 = vmax.f32 %v5060_v43, 0.0  ;;  %v8152_v41 = vpop.f32.mrf.mxu1  ;;  %v4419_v43 = vpack.c.b16 %v4400_v13, %v4400_v13 }
 0x4f0   : > { %v3962_v6 = vpop.f32.mrf.mxu3  ;;  %v4820_v25 = vpop.f32.mrf.mxu2 }
 0x4f1   : > { %5201 = vst [vmem:[%s7926_s23 + $0x90] sm:$0xff] %v5129_v5  ;;  %v4152_v29 = vmul.f32 %v7921_v15, %v3962_v6  ;;  %v4912_v35 = vmul.f32 %v7883_v49, %v4820_v25  ;;  %v4586_v25 = vshll.u32 %v4419_v43, 16 }
 0x4f2   : > { %5204 = vst [vmem:[%s7926_s23 + $0xa8] sm:$0xff] %v5132_v22  ;;  %v8184_v22 = vpop.f32.mrf.mxu0 }
 0x4f3   : > { %v4230_v39 = vadd.f32 %v7932_v45, %v4152_v29  ;;  %v4990_v19 = vadd.f32 %v7891_v57, %v4912_v35  ;;  %v4588_v30 = vrot.slane %v4586_v25, 2 }
 0x4f5   : > { %v5059_v17 = vadd.f32 %v4987_v20, %v4230_v39  ;;  %v5062_v12 = vadd.f32 %v4990_v19, %v4233_v10  ;;  %6008 = vmatmul.msk.bf16.gmra.mxu2 %vm645_vm0, %v8084_v52  ;;  %v8166_v52 = vsel %vm4420_vm1, %v4571_v2, %v4580_v32  ;;  %v4913_v2 = vmul.f32 %v7895_v36, %v8093_v1 }
 0x4f6   : > { %5992 = vmatmul.msk.bf16.gmra.mxu1 %vm645_vm0, %v8166_v52  ;;  %v4237_v20 = vadd.f32 %v7889_v33, %v4159_v51 }
 0x4f7   : > { %v5131_v16 = vmax.f32 %v5059_v17, 0.0  ;;  %v5134_v61 = vmax.f32 %v5062_v12, 0.0  ;;  %v8175_v59 = vpop.f32.mrf.mxu1  ;;  %v4991_v7 = vadd.f32 %v7915_v40, %v4913_v2  ;;  %v4915_v17 = vmul.f32 %v7895_v36, %v8112_v63 }
 0x4f8   : > { %v3964_v46 = vpop.f32.mrf.mxu3  ;;  %v4823_v8 = vpop.f32.mrf.mxu2 }
 0x4f9   : > { %5203 = vst [vmem:[%s7926_s23 + $0xa0] sm:$0xff] %v5131_v16  ;;  %v4154_v54 = vmul.f32 %v7921_v15, %v3964_v46  ;;  %v4914_v60 = vmul.f32 %v7883_v49, %v4823_v8  ;;  %v4993_v63 = vadd.f32 %v7915_v40, %v4915_v17 }
 0x4fa   : > { %5206 = vst [vmem:[%s7926_s23 + $0xb8] sm:$0xff] %v5134_v61 }
 0x4fb   : > { %v4232_v24 = vadd.f32 %v7932_v45, %v4154_v54  ;;  %v4992_v37 = vadd.f32 %v7891_v57, %v4914_v60 }
 0x4fd   : > { %v5061_v38 = vadd.f32 %v4989_v58, %v4232_v24  ;;  %v5064_v44 = vadd.f32 %v4992_v37, %v4235_v55  ;;  %5850 = vmatmul.msk.bf16.gmra.mxu3 %vm645_vm0, %v7798_v11  ;;  %v4583_v11 = vshrl.u32 %v4419_v43, 16  ;;  %v4917_v55 = vmul.f32 %v7895_v36, %v8133_v34 }
 0x4fe   : > { %v4163_v24 = vmul.f32 %v7866_v4, %v8108_v27 }
 0x4ff   : > { %v5133_v3 = vmax.f32 %v5061_v38, 0.0  ;;  %v5136_v42 = vmax.f32 %v5064_v44, 0.0  ;;  %v8194_v35 = vpop.f32.mrf.mxu1  ;;  %v4585_v18 = vrot.slane %v4583_v11, 1  ;;  %v4995_v44 = vadd.f32 %v7915_v40, %v4917_v55 }
 0x500   : > { %v3967_v48 = vpop.f32.mrf.mxu3  ;;  %v4825_v5 = vpop.f32.mrf.mxu2  ;;  %v4241_v34 = vadd.f32 %v7889_v33, %v4163_v24 }
 0x501   : > { %5205 = vst [vmem:[%s7926_s23 + $0xb0] sm:$0xff] %v5133_v3  ;;  %v4156_v1 = vmul.f32 %v7921_v15, %v3967_v48  ;;  %v4916_v6 = vmul.f32 %v7883_v49, %v4825_v5  ;;  %v4589_v19 = vor.u32 %v4588_v30, %v4585_v18  ;;  %v4165_v5 = vmul.f32 %v7866_v4, %v8135_v9 }
 0x502   : > { %5208 = vst [vmem:[%s7926_s23 + $0xc8] sm:$0xff] %v5136_v42  ;;  %v4921_v30 = vmul.f32 %v7895_v36, %v8175_v59 }
 0x503   : > { %v4234_v26 = vadd.f32 %v7932_v45, %v4156_v1  ;;  %v4994_v29 = vadd.f32 %v7891_v57, %v4916_v6  ;;  %v8206_v46 = vsel %vm4420_vm1, %v4580_v32, %v4589_v19  ;;  %v4919_v1 = vmul.f32 %v7895_v36, %v8152_v41 }
 0x504   : > { %v4167_v19 = vmul.f32 %v7866_v4, %v8158_v23 }
 0x505   : > { %v5063_v10 = vadd.f32 %v4991_v7, %v4234_v26  ;;  %v5066_v39 = vadd.f32 %v4994_v29, %v4237_v20  ;;  %6009 = vmatmul.msk.bf16.gmra.mxu2 %vm645_vm0, %v8124_v28  ;;  %v8212_v28 = vpop.f32.mrf.mxu0  ;;  %v4243_v29 = vadd.f32 %v7889_v33, %v4165_v5 }
 0x506   : > { %5993 = vmatmul.msk.bf16.gmra.mxu1 %vm645_vm0, %v8206_v46 }
 0x507   : > { %v5135_v0 = vmax.f32 %v5063_v10, 0.0  ;;  %v5138_v12 = vmax.f32 %v5066_v39, 0.0  ;;  %v8217_v60 = vpop.f32.mrf.mxu1 }
 0x508   : > { %v3969_v47 = vpop.f32.mrf.mxu3  ;;  %v4828_v16 = vpop.f32.mrf.mxu2 }
 0x509   : > { %5207 = vst [vmem:[%s7926_s23 + $0xc0] sm:$0xff] %v5135_v0  ;;  %v4158_v50 = vmul.f32 %v7921_v15, %v3969_v47  ;;  %v4918_v61 = vmul.f32 %v7883_v49, %v4828_v16  ;;  %v4999_v16 = vadd.f32 %v7915_v40, %v4921_v30 }
 0x50a   : > { %5210 = vst [vmem:[%s7926_s23 + $0xd8] sm:$0xff] %v5138_v12 }
 0x50b   : > { %v4236_v8 = vadd.f32 %v7932_v45, %v4158_v50  ;;  %v4996_v54 = vadd.f32 %v7891_v57, %v4918_v61 }
 0x50d   : > { %v5065_v32 = vadd.f32 %v4993_v63, %v4236_v8  ;;  %v5068_v58 = vadd.f32 %v4996_v54, %v4239_v21  ;;  %5851 = vmatmul.msk.bf16.gmra.mxu3 %vm645_vm0, %v7837_v62  ;;  %v8235_v42 = vpop.f32.mrf.mxu0  ;;  %v4169_v8 = vmul.f32 %v7866_v4, %v8184_v22 }
 0x50f   : > { %v5137_v37 = vmax.f32 %v5065_v32, 0.0  ;;  %v5140_v53 = vmax.f32 %v5068_v58, 0.0  ;;  %v8233_v3 = vpop.f32.mrf.mxu1  ;;  %v4923_v32 = vmul.f32 %v7895_v36, %v8194_v35  ;;  %v4247_v22 = vadd.f32 %v7889_v33, %v4169_v8 }
 0x510   : > { %v3972_v38 = vpop.f32.mrf.mxu3  ;;  %v4830_v2 = vpop.f32.mrf.mxu2 }
 0x511   : > { %5209 = vst [vmem:[%s7926_s23 + $0xd0] sm:$0xff] %v5137_v37  ;;  %v4160_v13 = vmul.f32 %v7921_v15, %v3972_v38  ;;  %v4920_v51 = vmul.f32 %v7883_v49, %v4830_v2  ;;  %v5001_v2 = vadd.f32 %v7915_v40, %v4923_v32 }
 0x512   : > { %5212 = vst [vmem:[%s7926_s23 + $0xe8] sm:$0xff] %v5140_v53 }
 0x513   : > { %v4238_v62 = vadd.f32 %v7932_v45, %v4160_v13  ;;  %v4998_v27 = vadd.f32 %v7891_v57, %v4920_v51  ;;  %v4925_v51 = vmul.f32 %v7895_v36, %v8217_v60 }
 0x515   : > { %v5067_v43 = vadd.f32 %v4995_v44, %v4238_v62  ;;  %v5070_v48 = vadd.f32 %v4998_v27, %v4241_v34  ;;  %6010 = vmatmul.msk.bf16.gmra.mxu2 %vm645_vm0, %v8166_v52  ;;  %v4997_v52 = vadd.f32 %v7915_v40, %v4919_v1  ;;  %v8259_v14 = vpop.f32.mrf.mxu0  ;;  %v4171_v62 = vmul.f32 %v7866_v4, %v8212_v28 }
 0x517   : > { %v5139_v7 = vmax.f32 %v5067_v43, 0.0  ;;  %v5142_v6 = vmax.f32 %v5070_v48, 0.0  ;;  %v8255_v39 = vpop.f32.mrf.mxu1 }
 0x518   : > { %v3974_v11 = vpop.f32.mrf.mxu3  ;;  %v4833_v25 = vpop.f32.mrf.mxu2 }
 0x519   : > { %5211 = vst [vmem:[%s7926_s23 + $0xe0] sm:$0xff] %v5139_v7  ;;  %v4162_v20 = vmul.f32 %v7921_v15, %v3974_v11  ;;  %v4922_v26 = vmul.f32 %v7883_v49, %v4833_v25  ;;  %v5003_v7 = vadd.f32 %v7915_v40, %v4925_v51 }
 0x51a   : > { %5214 = vst [vmem:[%s7926_s23 + $0xf8] sm:$0xff] %v5142_v6 }
 0x51b   : > { %v4240_v9 = vadd.f32 %v7932_v45, %v4162_v20  ;;  %v5000_v18 = vadd.f32 %v7891_v57, %v4922_v26 }
 0x51d   : > { %v5069_v41 = vadd.f32 %v4997_v52, %v4240_v9  ;;  %v5072_v10 = vadd.f32 %v5000_v18, %v4243_v29  ;;  %5852 = vmatmul.msk.bf16.gmra.mxu3 %vm645_vm0, %v7893_v56  ;;  %v4245_v56 = vadd.f32 %v7889_v33, %v4167_v19  ;;  %v8277_v53 = vpop.f32.mrf.mxu0  ;;  %v4173_v29 = vmul.f32 %v7866_v4, %v8235_v42 }
 0x51e   : > { %v4927_v9 = vmul.f32 %v7895_v36, %v8233_v3 }
 0x51f   : > { %v5141_v0 = vmax.f32 %v5069_v41, 0.0  ;;  %v5144_v17 = vmax.f32 %v5072_v10, 0.0  ;;  %v8275_v58 = vpop.f32.mrf.mxu1 }
 0x520   : > { %v3977_v12 = vpop.f32.mrf.mxu3  ;;  %v4835_v47 = vpop.f32.mrf.mxu2 }
 0x521   : > { %5213 = vst [vmem:[%s7926_s23 + $0xf0] sm:$0xff] %v5141_v0  ;;  %v4164_v59 = vmul.f32 %v7921_v15, %v3977_v12  ;;  %v4924_v50 = vmul.f32 %v7883_v49, %v4835_v47  ;;  %v4251_v0 = vadd.f32 %v7889_v33, %v4173_v29 }
 0x522   : > { %5216 = vst [vmem:[%s7926_s23 + $0x108] sm:$0xff] %v5144_v17  ;;  %v5005_v17 = vadd.f32 %v7915_v40, %v4927_v9 }
 0x523   : > { %v4242_v61 = vadd.f32 %v7932_v45, %v4164_v59  ;;  %v5002_v23 = vadd.f32 %v7891_v57, %v4924_v50  ;;  %v4929_v59 = vmul.f32 %v7895_v36, %v8255_v39 }
 0x525   : > { %v5071_v21 = vadd.f32 %v4999_v16, %v4242_v61  ;;  %v5074_v63 = vadd.f32 %v5002_v23, %v4245_v56  ;;  %6011 = vmatmul.msk.bf16.gmra.mxu2 %vm645_vm0, %v8206_v46  ;;  %v4093_v11 = vpop.f32.mrf.mxu0  ;;  %v4175_v56 = vmul.f32 %v7866_v4, %v8259_v14  ;;  %v5007_v8 = vadd.f32 %v7915_v40, %v4929_v59 }
 0x527   : > { %v5143_v54 = vmax.f32 %v5071_v21, 0.0  ;;  %v5146_v55 = vmax.f32 %v5074_v63, 0.0  ;;  %v4749_v60 = vpop.f32.mrf.mxu1 }
 0x528   : > { %v3979_v24 = vpop.f32.mrf.mxu3  ;;  %v4838_v37 = vpop.f32.mrf.mxu2 }
 0x529   : > { %5215 = vst [vmem:[%s7926_s23 + $0x100] sm:$0xff] %v5143_v54  ;;  %v4166_v38 = vmul.f32 %v7921_v15, %v3979_v24  ;;  %v4926_v46 = vmul.f32 %v7883_v49, %v4838_v37 }
 0x52a   : > { %5218 = vst [vmem:[%s7926_s23 + $0x118] sm:$0xff] %v5146_v55  ;;  %v4253_v55 = vadd.f32 %v7889_v33, %v4175_v56 }
 0x52b   : > { %v4244_v35 = vadd.f32 %v7932_v45, %v4166_v38  ;;  %v5004_v44 = vadd.f32 %v7891_v57, %v4926_v46  ;;  %v4177_v46 = vmul.f32 %v7866_v4, %v8277_v53 }
 0x52d   : > { %v5073_v13 = vadd.f32 %v5001_v2, %v4244_v35  ;;  %v5076_v34 = vadd.f32 %v5004_v44, %v4247_v22  ;;  %5853 = vmatmul.msk.bf16.gmra.mxu3 %vm645_vm0, %v7953_v31  ;;  %v4249_v31 = vadd.f32 %v7889_v33, %v4171_v62  ;;  %v4096_v47 = vpop.f32.mrf.mxu0  ;;  %v4931_v35 = vmul.f32 %v7895_v36, %v8275_v58 }
 0x52f   : > { %v5145_v27 = vmax.f32 %v5073_v13, 0.0  ;;  %v5148_v43 = vmax.f32 %v5076_v34, 0.0  ;;  %v4751_v3 = vpop.f32.mrf.mxu1 }
 0x530   : > { %v3982_v48 = vpop.f32.mrf.mxu3  ;;  %v4840_v5 = vpop.f32.mrf.mxu2 }
 0x531   : > { %5217 = vst [vmem:[%s7926_s23 + $0x110] sm:$0xff] %v5145_v27  ;;  %v4168_v1 = vmul.f32 %v7921_v15, %v3982_v48  ;;  %v4928_v6 = vmul.f32 %v7883_v49, %v4840_v5  ;;  %v4255_v27 = vadd.f32 %v7889_v33, %v4177_v46  ;;  %v4933_v5 = vmul.f32 %v7895_v36, %v4749_v60 }
 0x532   : > { %5220 = vst [vmem:[%s7926_s23 + $0x128] sm:$0xff] %v5148_v43  ;;  %v5009_v43 = vadd.f32 %v7915_v40, %v4931_v35 }
 0x533   : > { %v4246_v28 = vadd.f32 %v7932_v45, %v4168_v1  ;;  %v5006_v25 = vadd.f32 %v7891_v57, %v4928_v6  ;;  %v4179_v1 = vmul.f32 %v7866_v4, %v4093_v11  ;;  %v5011_v29 = vadd.f32 %v7915_v40, %v4933_v5 }
 0x535   : > { %v5075_v20 = vadd.f32 %v5003_v7, %v4246_v28  ;;  %v5078_v26 = vadd.f32 %v5006_v25, %v4249_v31  ;;  %v4098_v22 = vpop.f32.mrf.mxu0  ;;  %v4257_v60 = vadd.f32 %v7889_v33, %v4179_v1 }
 0x537   : > { %v5147_v52 = vmax.f32 %v5075_v20, 0.0  ;;  %v5150_v18 = vmax.f32 %v5078_v26, 0.0  ;;  %v4754_v38 = vpop.f32.mrf.mxu1 }
 0x538   : > { %v3984_v41 = vpop.f32.mrf.mxu3  ;;  %v4843_v30 = vpop.f32.mrf.mxu2 }
 0x539   : > { %5219 = vst [vmem:[%s7926_s23 + $0x120] sm:$0xff] %v5147_v52  ;;  %v4170_v10 = vmul.f32 %v7921_v15, %v3984_v41  ;;  %v4930_v19 = vmul.f32 %v7883_v49, %v4843_v30 }
 0x53a   : > { %5222 = vst [vmem:[%s7926_s23 + $0x138] sm:$0xff] %v5150_v18 }
 0x53b   : > { %v4248_v42 = vadd.f32 %v7932_v45, %v4170_v10  ;;  %v5008_v12 = vadd.f32 %v7891_v57, %v4930_v19  ;;  %v4181_v10 = vmul.f32 %v7866_v4, %v4096_v47 }
 0x53d   : > { %v5077_v16 = vadd.f32 %v5005_v17, %v4248_v42  ;;  %v5080_v50 = vadd.f32 %v5008_v12, %v4251_v0  ;;  %v4101_v26 = vpop.f32.mrf.mxu0  ;;  %v4935_v0 = vmul.f32 %v7895_v36, %v4751_v3  ;;  %v4259_v56 = vadd.f32 %v7889_v33, %v4181_v10 }
 0x53f   : > { %v5149_v61 = vmax.f32 %v5077_v16, 0.0  ;;  %v5152_v23 = vmax.f32 %v5080_v50, 0.0  ;;  %v4756_v28 = vpop.f32.mrf.mxu1  ;;  %v5013_v47 = vadd.f32 %v7915_v40, %v4935_v0 }
 0x540   : > { %v3987_v21 = vpop.f32.mrf.mxu3  ;;  %v4845_v63 = vpop.f32.mrf.mxu2 }
 0x541   : > { %5221 = vst [vmem:[%s7926_s23 + $0x130] sm:$0xff] %v5149_v61  ;;  %v4172_v54 = vmul.f32 %v7921_v15, %v3987_v21  ;;  %v4932_v32 = vmul.f32 %v7883_v49, %v4845_v63  ;;  %v4937_v63 = vmul.f32 %v7895_v36, %v4754_v38 }
 0x542   : > { %5224 = vst [vmem:[%s7926_s23 + $0x148] sm:$0xff] %v5152_v23 }
 0x543   : > { %v4250_v39 = vadd.f32 %v7932_v45, %v4172_v54  ;;  %v5010_v14 = vadd.f32 %v7891_v57, %v4932_v32  ;;  %v4183_v54 = vmul.f32 %v7866_v4, %v4098_v22 }
 0x545   : > { %v5079_v24 = vadd.f32 %v5007_v8, %v4250_v39  ;;  %v5082_v37 = vadd.f32 %v5010_v14, %v4253_v55  ;;  %v4103_v61 = vpop.f32.mrf.mxu0 }
 0x547   : > { %v5151_v2 = vmax.f32 %v5079_v24, 0.0  ;;  %v5154_v44 = vmax.f32 %v5082_v37, 0.0  ;;  %v4759_v50 = vpop.f32.mrf.mxu1  ;;  %v5015_v24 = vadd.f32 %v7915_v40, %v4937_v63 }
 0x548   : > { %v3989_v13 = vpop.f32.mrf.mxu3  ;;  %v4848_v51 = vpop.f32.mrf.mxu2 }
 0x549   : > { %5223 = vst [vmem:[%s7926_s23 + $0x140] sm:$0xff] %v5151_v2  ;;  %v4174_v34 = vmul.f32 %v7921_v15, %v3989_v13  ;;  %v4934_v62 = vmul.f32 %v7883_v49, %v4848_v51  ;;  %v4261_v2 = vadd.f32 %v7889_v33, %v4183_v54 }
 0x54a   : > { %5226 = vst [vmem:[%s7926_s23 + $0x158] sm:$0xff] %v5154_v44 }
 0x54b   : > { %v4252_v53 = vadd.f32 %v7932_v45, %v4174_v34  ;;  %v5012_v48 = vadd.f32 %v7891_v57, %v4934_v62  ;;  %v4185_v34 = vmul.f32 %v7866_v4, %v4101_v26 }
 0x54d   : > { %v5081_v58 = vadd.f32 %v5009_v43, %v4252_v53  ;;  %v5084_v7 = vadd.f32 %v5012_v48, %v4255_v27  ;;  %v4106_v44 = vpop.f32.mrf.mxu0  ;;  %v4939_v27 = vmul.f32 %v7895_v36, %v4756_v28 }
 0x54f   : > { %v5153_v6 = vmax.f32 %v5081_v58, 0.0  ;;  %v5156_v31 = vmax.f32 %v5084_v7, 0.0  ;;  %v4761_v35 = vpop.f32.mrf.mxu1  ;;  %v4263_v7 = vadd.f32 %v7889_v33, %v4185_v34  ;;  %v5017_v1 = vadd.f32 %v7915_v40, %v4939_v27 }
 0x550   : > { %v3992_v25 = vpop.f32.mrf.mxu3  ;;  %v4850_v20 = vpop.f32.mrf.mxu2 }
 0x551   : > { %5225 = vst [vmem:[%s7926_s23 + $0x150] sm:$0xff] %v5153_v6  ;;  %v4176_v52 = vmul.f32 %v7921_v15, %v3992_v25  ;;  %v4936_v9 = vmul.f32 %v7883_v49, %v4850_v20  ;;  %v4941_v25 = vmul.f32 %v7895_v36, %v4759_v50  ;;  %v4943_v50 = vmul.f32 %v7895_v36, %v4761_v35 }
 0x552   : > { %5228 = vst [vmem:[%s7926_s23 + $0x168] sm:$0xff] %v5156_v31 }
 0x553   : > { %v4254_v11 = vadd.f32 %v7932_v45, %v4176_v52  ;;  %v5014_v18 = vadd.f32 %v7891_v57, %v4936_v9  ;;  %v5021_v54 = vadd.f32 %v7915_v40, %v4943_v50 }
 0x555   : > { %v5083_v41 = vadd.f32 %v5011_v29, %v4254_v11  ;;  %v5086_v30 = vadd.f32 %v5014_v18, %v4257_v60  ;;  %v4187_v29 = vmul.f32 %v7866_v4, %v4103_v61  ;;  %v4108_v52 = vpop.f32.mrf.mxu0 }
 0x557   : > { %v5155_v19 = vmax.f32 %v5083_v41, 0.0  ;;  %v5158_v17 = vmax.f32 %v5086_v30, 0.0  ;;  %v4764_v26 = vpop.f32.mrf.mxu1  ;;  %v5019_v41 = vadd.f32 %v7915_v40, %v4941_v25 }
 0x558   : > { %v3994_v42 = vpop.f32.mrf.mxu3  ;;  %v4853_v12 = vpop.f32.mrf.mxu2 }
 0x559   : > { %5227 = vst [vmem:[%s7926_s23 + $0x160] sm:$0xff] %v5155_v19  ;;  %v4178_v16 = vmul.f32 %v7921_v15, %v3994_v42  ;;  %v4938_v59 = vmul.f32 %v7883_v49, %v4853_v12  ;;  %v4265_v19 = vadd.f32 %v7889_v33, %v4187_v29 }
 0x55a   : > { %5230 = vst [vmem:[%s7926_s23 + $0x178] sm:$0xff] %v5158_v17 }
 0x55b   : > { %v4256_v23 = vadd.f32 %v7932_v45, %v4178_v16  ;;  %v5016_v3 = vadd.f32 %v7891_v57, %v4938_v59  ;;  %v4189_v16 = vmul.f32 %v7866_v4, %v4106_v44 }
 0x55d   : > { %v5085_v21 = vadd.f32 %v5013_v47, %v4256_v23  ;;  %v5088_v8 = vadd.f32 %v5016_v3, %v4259_v56  ;;  %v4111_v3 = vpop.f32.mrf.mxu0 }
 0x55f   : > { %v5157_v32 = vmax.f32 %v5085_v21, 0.0  ;;  %v5160_v55 = vmax.f32 %v5088_v8, 0.0  ;;  %v4766_v61 = vpop.f32.mrf.mxu1  ;;  %v4267_v8 = vadd.f32 %v7889_v33, %v4189_v16 }
 0x560   : > { %v3997_v39 = vpop.f32.mrf.mxu3  ;;  %v4855_v14 = vpop.f32.mrf.mxu2 }
 0x561   : > { %5229 = vst [vmem:[%s7926_s23 + $0x170] sm:$0xff] %v5157_v32  ;;  %v4180_v37 = vmul.f32 %v7921_v15, %v3997_v39  ;;  %v4940_v46 = vmul.f32 %v7883_v49, %v4855_v14  ;;  %v4945_v14 = vmul.f32 %v7895_v36, %v4764_v26 }
 0x562   : > { %5232 = vst [vmem:[%s7926_s23 + $0x188] sm:$0xff] %v5160_v55 }
 0x563   : > { %v4258_v38 = vadd.f32 %v7932_v45, %v4180_v37  ;;  %v5018_v22 = vadd.f32 %v7891_v57, %v4940_v46  ;;  %v4191_v37 = vmul.f32 %v7866_v4, %v4108_v52  ;;  %v5023_v35 = vadd.f32 %v7915_v40, %v4945_v14 }
 0x565   : > { %v5087_v13 = vadd.f32 %v5015_v24, %v4258_v38  ;;  %v5090_v51 = vadd.f32 %v5018_v22, %v4261_v2  ;;  %v4269_v34 = vadd.f32 %v7889_v33, %v4191_v37 }
 0x567   : > { %v5159_v62 = vmax.f32 %v5087_v13, 0.0  ;;  %v5162_v43 = vmax.f32 %v5090_v51, 0.0  ;;  %v4769_v51 = vpop.f32.mrf.mxu1 }
 0x568   : > { %v3999_v53 = vpop.f32.mrf.mxu3  ;;  %v4858_v48 = vpop.f32.mrf.mxu2 }
 0x569   : > { %5231 = vst [vmem:[%s7926_s23 + $0x180] sm:$0xff] %v5159_v62  ;;  %v4182_v58 = vmul.f32 %v7921_v15, %v3999_v53  ;;  %v4942_v5 = vmul.f32 %v7883_v49, %v4858_v48  ;;  %v4113_v62 = vpop.f32.mrf.mxu0 }
 0x56a   : > { %5234 = vst [vmem:[%s7926_s23 + $0x198] sm:$0xff] %v5162_v43 }
 0x56b   : > { %v4260_v6 = vadd.f32 %v7932_v45, %v4182_v58  ;;  %v5020_v31 = vadd.f32 %v7891_v57, %v4942_v5  ;;  %v4193_v58 = vmul.f32 %v7866_v4, %v4111_v3 }
 0x56d   : > { %v5089_v28 = vadd.f32 %v5017_v1, %v4260_v6  ;;  %v5092_v20 = vadd.f32 %v5020_v31, %v4263_v7  ;;  %v4947_v7 = vmul.f32 %v7895_v36, %v4766_v61 }
 0x56f   : > { %v5161_v9 = vmax.f32 %v5089_v28, 0.0  ;;  %v5164_v60 = vmax.f32 %v5092_v20, 0.0  ;;  %v4271_v20 = vadd.f32 %v7889_v33, %v4193_v58  ;;  %v5025_v26 = vadd.f32 %v7915_v40, %v4947_v7 }
 0x570   : > { %v4002_v11 = vpop.f32.mrf.mxu3  ;;  %v4860_v18 = vpop.f32.mrf.mxu2 }
 0x571   : > { %5233 = vst [vmem:[%s7926_s23 + $0x190] sm:$0xff] %v5161_v9  ;;  %v4184_v30 = vmul.f32 %v7921_v15, %v4002_v11  ;;  %v4944_v10 = vmul.f32 %v7883_v49, %v4860_v18  ;;  %v4771_v9 = vpop.f32.mrf.mxu1  ;;  %v4949_v18 = vmul.f32 %v7895_v36, %v4769_v51 }
 0x572   : > { %5236 = vst [vmem:[%s7926_s23 + $0x1a8] sm:$0xff] %v5164_v60  ;;  %v4116_v60 = vpop.f32.mrf.mxu0 }
 0x573   : > { %v4262_v0 = vadd.f32 %v7932_v45, %v4184_v30  ;;  %v5022_v17 = vadd.f32 %v7891_v57, %v4944_v10  ;;  %v4195_v30 = vmul.f32 %v7866_v4, %v4113_v62  ;;  %v4197_v3 = vmul.f32 %v7866_v4, %v4116_v60 }
 0x575   : > { %v5091_v42 = vadd.f32 %v5019_v41, %v4262_v0  ;;  %v5094_v12 = vadd.f32 %v5022_v17, %v4265_v19 }
 0x577   : > { %v5163_v59 = vmax.f32 %v5091_v42, 0.0  ;;  %v5166_v56 = vmax.f32 %v5094_v12, 0.0  ;;  %v5027_v42 = vadd.f32 %v7915_v40, %v4949_v18 }
 0x578   : > { %v4004_v47 = vpop.f32.mrf.mxu3  ;;  %v4863_v23 = vpop.f32.mrf.mxu2 }
 0x579   : > { %5235 = vst [vmem:[%s7926_s23 + $0x1a0] sm:$0xff] %v5163_v59  ;;  %v4186_v21 = vmul.f32 %v7921_v15, %v4004_v47  ;;  %v4946_v63 = vmul.f32 %v7883_v49, %v4863_v23  ;;  %v4273_v59 = vadd.f32 %v7889_v33, %v4195_v30  ;;  %v4774_v23 = vpop.f32.mrf.mxu1 }
 0x57a   : > { %5238 = vst [vmem:[%s7926_s23 + $0x1b8] sm:$0xff] %v5166_v56 }
 0x57b   : > { %v4264_v32 = vadd.f32 %v7932_v45, %v4186_v21  ;;  %v5024_v55 = vadd.f32 %v7891_v57, %v4946_v63  ;;  %v4118_v21 = vpop.f32.mrf.mxu0 }
 0x57d   : > { %v5093_v39 = vadd.f32 %v5021_v54, %v4264_v32  ;;  %v5096_v24 = vadd.f32 %v5024_v55, %v4267_v8  ;;  %v4951_v8 = vmul.f32 %v7895_v36, %v4771_v9 }
 0x57f   : > { %v5165_v46 = vmax.f32 %v5093_v39, 0.0  ;;  %v5168_v2 = vmax.f32 %v5096_v24, 0.0  ;;  %v4275_v24 = vadd.f32 %v7889_v33, %v4197_v3  ;;  %v5029_v37 = vadd.f32 %v7915_v40, %v4951_v8 }
 0x580   : > { %v4007_v38 = vpop.f32.mrf.mxu3  ;;  %v4865_v22 = vpop.f32.mrf.mxu2 }
 0x581   : > { %5237 = vst [vmem:[%s7926_s23 + $0x1b0] sm:$0xff] %v5165_v46  ;;  %v4188_v44 = vmul.f32 %v7921_v15, %v4007_v38  ;;  %v4948_v13 = vmul.f32 %v7883_v49, %v4865_v22  ;;  %v4953_v22 = vmul.f32 %v7895_v36, %v4774_v23 }
 0x582   : > { %5240 = vst [vmem:[%s7926_s23 + $0x1c8] sm:$0xff] %v5168_v2 }
 0x583   : > { %v4266_v27 = vadd.f32 %v7932_v45, %v4188_v44  ;;  %v5026_v43 = vadd.f32 %v7891_v57, %v4948_v13  ;;  %v4199_v44 = vmul.f32 %v7866_v4, %v4118_v21  ;;  %v4121_v58 = vpop.f32.mrf.mxu0 }
 0x585   : > { %v5095_v53 = vadd.f32 %v5023_v35, %v4266_v27  ;;  %v5098_v48 = vadd.f32 %v5026_v43, %v4269_v34  ;;  %v4776_v34 = vpop.f32.mrf.mxu1  ;;  %v5031_v43 = vadd.f32 %v7915_v40, %v4953_v22 }
 0x587   : > { %v5167_v5 = vmax.f32 %v5095_v53, 0.0  ;;  %v5170_v1 = vmax.f32 %v5098_v48, 0.0 }
 0x588   : > { %v4009_v6 = vpop.f32.mrf.mxu3  ;;  %v4868_v31 = vpop.f32.mrf.mxu2 }
 0x589   : > { %5239 = vst [vmem:[%s7926_s23 + $0x1c0] sm:$0xff] %v5167_v5  ;;  %v4190_v28 = vmul.f32 %v7921_v15, %v4009_v6  ;;  %v4950_v25 = vmul.f32 %v7883_v49, %v4868_v31  ;;  %v4277_v5 = vadd.f32 %v7889_v33, %v4199_v44 }
 0x58a   : > { %5242 = vst [vmem:[%s7926_s23 + $0x1d8] sm:$0xff] %v5170_v1 }
 0x58b   : > { %v4268_v29 = vadd.f32 %v7932_v45, %v4190_v28  ;;  %v5028_v52 = vadd.f32 %v7891_v57, %v4950_v25  ;;  %v4201_v28 = vmul.f32 %v7866_v4, %v4121_v58 }
 0x58d   : > { %v5097_v11 = vadd.f32 %v5025_v26, %v4268_v29  ;;  %v5100_v41 = vadd.f32 %v5028_v52, %v4271_v20  ;;  %v4955_v20 = vmul.f32 %v7895_v36, %v4776_v34  ;;  %v4279_v18 = vadd.f32 %v7889_v33, %v4201_v28 }
 0x58f   : > { %v5169_v10 = vmax.f32 %v5097_v11, 0.0  ;;  %v5172_v19 = vmax.f32 %v5100_v41, 0.0  ;;  %v4779_v11 = vpop.f32.mrf.mxu1  ;;  %v5033_v41 = vadd.f32 %v7915_v40, %v4955_v20 }
 0x590   : > { %v4012_v0 = vpop.f32.mrf.mxu3  ;;  %v4870_v17 = vpop.f32.mrf.mxu2 }
 0x591   : > { %5241 = vst [vmem:[%s7926_s23 + $0x1d0] sm:$0xff] %v5169_v10  ;;  %v4192_v12 = vmul.f32 %v7921_v15, %v4012_v0  ;;  %v4952_v16 = vmul.f32 %v7883_v49, %v4870_v17  ;;  %v4957_v17 = vmul.f32 %v7895_v36, %v4779_v11 }
 0x592   : > { %5244 = vst [vmem:[%s7926_s23 + $0x1e8] sm:$0xff] %v5172_v19  ;;  %v4123_v19 = vpop.f32.mrf.mxu0 }
 0x593   : > { %v4270_v50 = vadd.f32 %v7932_v45, %v4192_v12  ;;  %v5030_v56 = vadd.f32 %v7891_v57, %v4952_v16  ;;  %v4203_v12 = vmul.f32 %v7866_v4, %v4123_v19 }
 0x595   : > { %v5099_v61 = vadd.f32 %v5027_v42, %v4270_v50  ;;  %v5102_v47 = vadd.f32 %v5030_v56, %v4273_v59  ;;  %v4281_v3 = vadd.f32 %v7889_v33, %v4203_v12 }
 0x597   : > { %v5171_v63 = vmax.f32 %v5099_v61, 0.0  ;;  %v5174_v54 = vmax.f32 %v5102_v47, 0.0  ;;  %v5035_v61 = vadd.f32 %v7915_v40, %v4957_v17 }
 0x598   : > { %v4014_v32 = vpop.f32.mrf.mxu3  ;;  %v4873_v55 = vpop.f32.mrf.mxu2 }
 0x599   : > { %5243 = vst [vmem:[%s7926_s23 + $0x1e0] sm:$0xff] %v5171_v63  ;;  %v4194_v39 = vmul.f32 %v7921_v15, %v4014_v32  ;;  %v4954_v14 = vmul.f32 %v7883_v49, %v4873_v55  ;;  %v4781_v63 = vpop.f32.mrf.mxu1 }
 0x59a   : > { %5246 = vst [vmem:[%s7926_s23 + $0x1f8] sm:$0xff] %v5174_v54  ;;  %v4959_v55 = vmul.f32 %v7895_v36, %v4781_v63 }
 0x59b   : > { %v4272_v46 = vadd.f32 %v7932_v45, %v4194_v39  ;;  %v5032_v2 = vadd.f32 %v7891_v57, %v4954_v14 }
 0x59d   : > { %v5101_v38 = vadd.f32 %v5029_v37, %v4272_v46  ;;  %v5104_v35 = vadd.f32 %v5032_v2, %v4275_v24 }
 0x59f   : > { %v5173_v13 = vmax.f32 %v5101_v38, 0.0  ;;  %v5176_v51 = vmax.f32 %v5104_v35, 0.0 }
 0x5a0   : > { %v4017_v62 = vpop.f32.mrf.mxu3  ;;  %v4875_v27 = vpop.f32.mrf.mxu2 }
 0x5a1   : > { %5245 = vst [vmem:[%s7926_s23 + $0x1f0] sm:$0xff] %v5173_v13  ;;  %v4196_v53 = vmul.f32 %v7921_v15, %v4017_v62  ;;  %v4956_v48 = vmul.f32 %v7883_v49, %v4875_v27 }
 0x5a2   : > { %5248 = vst [vmem:[%s7926_s23 + $0x208] sm:$0xff] %v5176_v51 }
 0x5a3   : > { %v4274_v7 = vadd.f32 %v7932_v45, %v4196_v53  ;;  %v5034_v1 = vadd.f32 %v7891_v57, %v4956_v48 }
 0x5a5   : > { %v5103_v6 = vadd.f32 %v5031_v43, %v4274_v7  ;;  %v5106_v31 = vadd.f32 %v5034_v1, %v4277_v5 }
 0x5a7   : > { %v5175_v25 = vmax.f32 %v5103_v6, 0.0  ;;  %v5178_v26 = vmax.f32 %v5106_v31, 0.0 }
 0x5a8   : > { %v4019_v29 = vpop.f32.mrf.mxu3  ;;  %v4878_v52 = vpop.f32.mrf.mxu2 }
 0x5a9   : > { %5247 = vst [vmem:[%s7926_s23 + $0x200] sm:$0xff] %v5175_v25  ;;  %v4198_v9 = vmul.f32 %v7921_v15, %v4019_v29  ;;  %v4958_v60 = vmul.f32 %v7883_v49, %v4878_v52 }
 0x5aa   : > { %5250 = vst [vmem:[%s7926_s23 + $0x218] sm:$0xff] %v5178_v26 }
 0x5ab   : > { %v4276_v30 = vadd.f32 %v7932_v45, %v4198_v9  ;;  %v5036_v10 = vadd.f32 %v7891_v57, %v4958_v60 }
 0x5ad   : > { %v5105_v0 = vadd.f32 %v5033_v41, %v4276_v30  ;;  %v5108_v42 = vadd.f32 %v5036_v10, %v4279_v18 }
 0x5af   : > { %v5177_v16 = vmax.f32 %v5105_v0, 0.0  ;;  %v5180_v59 = vmax.f32 %v5108_v42, 0.0 }
 0x5b0   : > { %v4022_v50 = vpop.f32.mrf.mxu3  ;;  %v4880_v56 = vpop.f32.mrf.mxu2 }
 0x5b1   : > { %5249 = vst [vmem:[%s7926_s23 + $0x210] sm:$0xff] %v5177_v16  ;;  %v4200_v47 = vmul.f32 %v7921_v15, %v4022_v50  ;;  %v4960_v23 = vmul.f32 %v7883_v49, %v4880_v56  ;;  %v5037_v49 = vadd.f32 %v7915_v40, %v4959_v55 }
 0x5b2   : > { %5252 = vst [vmem:[%s7926_s23 + $0x228] sm:$0xff] %v5180_v59 }
 0x5b3   : > { %v4278_v21 = vadd.f32 %v7932_v45, %v4200_v47  ;;  %v5038_v4 = vadd.f32 %v7891_v57, %v4960_v23 }
 0x5b5   : > { %v5107_v8 = vadd.f32 %v5035_v61, %v4278_v21  ;;  %v5110_v54 = vadd.f32 %v5038_v4, %v4281_v3 }
 0x5b7   : > { %v5179_v32 = vmax.f32 %v5107_v8, 0.0  ;;  %v5182_v39 = vmax.f32 %v5110_v54, 0.0 }
 0x5b8   : > { %v4024_v14 = vpop.f32.mrf.mxu3 }
 0x5b9   : > { %5251 = vst [vmem:[%s7926_s23 + $0x220] sm:$0xff] %v5179_v32  ;;  %v4202_v24 = vmul.f32 %v7921_v15, %v4024_v14 }
 0x5ba   : > { %5254 = vst [vmem:[%s7926_s23 + $0x238] sm:$0xff] %v5182_v39 }
 0x5bb   : > { %v4280_v33 = vadd.f32 %v7932_v45, %v4202_v24 }
 0x5bd   : > { %v5109_v37 = vadd.f32 %v5037_v49, %v4280_v33 }
 0x5bf   : > { %v5181_v46 = vmax.f32 %v5109_v37, 0.0 }
 0x5c1   : > { %5253 = vst [vmem:[%s7926_s23 + $0x230] sm:$0xff] %v5181_v46 }
 0x5c2 PF: > { %s24_s29 = sadd.s32 1, %s6148_s29  }
 0x5c3   : > { %p21_p4 = scmp.ge.s32.totalorder %s24_s29, 4  }
 0x5c5   :  { %23 = sbr.rel (!%p21_p4) target bundleno = 1 (0x1), region = 114 }

</bundles_post_ra>
